<compile_context>
chip_gen: v6e
topology: v6e:2x2x1
jax: 0.10.0
libtpu: 0.0.40
codegen_flags: <defaults>
</compile_context>

<pallas_src>
import functools

import jax
import jax.numpy as jnp
from jax.experimental import pallas as pl
from jax.experimental.pallas import tpu as pltpu


# ------------------------------ grid helpers ------------------------------

def _grid_split(batch_size):
    """Split the batch over the grid: 2 'parallel' steps when possible (v7x = 2 TCs)."""
    if batch_size % 2 == 0 and batch_size >= 2:
        return 2, batch_size // 2
    return 1, batch_size


# ------------------------------ in-kernel helpers ------------------------------

def _softmax_lastdim(s, approx=True):
    # Safe softmax: tolerates fully -inf rows (returns an all-zero row instead of NaN).
    m = jnp.maximum(jnp.max(s, axis=-1, keepdims=True), -1e30)
    e = jnp.exp(s - m)
    denom = jnp.maximum(jnp.sum(e, axis=-1, keepdims=True), 1e-30)
    if approx:
        return e * pl.reciprocal(denom, approx=True)
    return e / denom


def _argmax_lastdim(s):
    # First-occurrence argmax along the last axis (matches torch.argmax).
    m = jnp.max(s, axis=-1, keepdims=True)
    n = s.shape[-1]
    iota = jax.lax.broadcasted_iota(jnp.int32, s.shape, len(s.shape) - 1)
    cand = jnp.where(s >= m, iota, n)
    return jnp.min(cand, axis=-1, keepdims=True).astype(jnp.int32)


def _instance_norm(x_flat, tb, n, gamma, beta):
    # InstanceNorm1d over the node axis, biased variance, eps=1e-5, per-channel affine.
    x3 = x_flat.reshape(tb, n, x_flat.shape[-1])
    mean = jnp.mean(x3, axis=1, keepdims=True)
    cent = x3 - mean
    var = jnp.mean(cent * cent, axis=1, keepdims=True)
    y = cent * jax.lax.rsqrt(var + 1e-5) * gamma + beta
    return y.reshape(x_flat.shape)


def _mha_concat(q3, k3, v3, o_scratch, head_num, qkv_dim, mask=None):
    """Batched multi-head attention.

    q3: (TB, P, H*d), k3/v3: (TB, N, H*d), mask: (TB, P, N) additive or None.
    Per-head outputs are written into the VMEM scratch o_scratch (TB*P, H*d) so the
    head-merge is a single combine matmul outside.  Returns o_concat (TB*P, H*d).
    """
    d = qkv_dim
    scale = 1.0 / float(d) ** 0.5
    tb, p, _ = q3.shape
    for h in range(head_num):
        lo = h * d
        qh = q3[:, :, lo:lo + d]
        kh = k3[:, :, lo:lo + d]
        vh = v3[:, :, lo:lo + d]
        s = jnp.einsum('bqd,bkd->bqk', qh, kh,
                       preferred_element_type=jnp.float32) * scale
        if mask is not None:
            s = s + mask
        pattn = _softmax_lastdim(s)
        oh = jnp.einsum('bqk,bkd->bqd', pattn, vh,
                        preferred_element_type=jnp.float32)
        o_scratch[:, lo:lo + d] = oh.reshape(tb * p, d)
    return o_scratch[...]


# ------------------------------ fused encoder kernel ------------------------------

def _encoder_kernel(feat_ref, sel_ref, wd_ref, bd_ref, wn_ref, bn_ref,
                    wqkv_ref, wcomb_ref, bcomb_ref,
                    n1g_ref, n1b_ref, w1_ref, b1_ref, w2_ref, b2_ref,
                    n2g_ref, n2b_ref, wkv_ref,
                    out_ref, o_scr_ref, *, layer_num, head_num, qkv_dim):
    feat = feat_ref[...]                          # (TB, N, Fin) raw features (padded)
    tb, n, fin = feat.shape
    sel = sel_ref[...]                            # (N, 1) 1.0 for hotel/depot rows
    hd = head_num * qkv_dim

    # Embedding: depot rows use the depot linear, node rows use the node linear.
    flat = feat.reshape(tb * n, fin)
    emb_d = jnp.dot(flat, wd_ref[...], preferred_element_type=jnp.float32) + bd_ref[...]
    emb_n = jnp.dot(flat, wn_ref[...], preferred_element_type=jnp.float32) + bn_ref[...]
    e_dim = emb_d.shape[-1]
    x = (sel * emb_d.reshape(tb, n, e_dim)
         + (1.0 - sel) * emb_n.reshape(tb, n, e_dim)).reshape(tb * n, e_dim)

    for l in range(layer_num):
        qkv = jnp.dot(x, wqkv_ref[l], preferred_element_type=jnp.float32)   # (TB*N, 3*hd)
        qkv3 = qkv.reshape(tb, n, 3 * hd)
        o_concat = _mha_concat(qkv3[:, :, 0:hd], qkv3[:, :, hd:2 * hd],
                               qkv3[:, :, 2 * hd:3 * hd], o_scr_ref,
                               head_num, qkv_dim)                           # (TB*N, hd)
        mh = jnp.dot(o_concat, wcomb_ref[l],
                     preferred_element_type=jnp.float32) + bcomb_ref[l]
        out1 = _instance_norm(x + mh, tb, n, n1g_ref[l], n1b_ref[l])
        h1 = jnp.maximum(
            jnp.dot(out1, w1_ref[l], preferred_element_type=jnp.float32) + b1_ref[l], 0.0)
        out2 = jnp.dot(h1, w2_ref[l], preferred_element_type=jnp.float32) + b2_ref[l]
        x = _instance_norm(out1 + out2, tb, n, n2g_ref[l], n2b_ref[l])

    # decoder set_kv fused here; emit one merged lane-denser slab [enc | K|V].
    kv = jnp.dot(x, wkv_ref[...], preferred_element_type=jnp.float32)       # (TB*N, 2*hd)
    out = jnp.concatenate([x, kv], axis=-1).reshape(tb, n, e_dim + 2 * hd)
    out_ref[...] = out.astype(out_ref.dtype)


def encoder_forward(p, mp, feat, sel):
    B, N, Fin = feat.shape
    E = mp['embedding_dim']
    H = mp['head_num']
    d = mp['qkv_dim']
    F = mp['ff_hidden_dim']
    L = mp['encoder_layer_num']
    hd = H * d
    G, TB = _grid_split(B)
    e = p['enc']

    def const_spec(shape):
        nd = len(shape)
        return pl.BlockSpec(shape, lambda g, _nd=nd: (0,) * _nd)

    kern = functools.partial(_encoder_kernel, layer_num=L, head_num=H, qkv_dim=d)
    enc_kv = pl.pallas_call(
        kern,
        out_shape=jax.ShapeDtypeStruct((B, N, E + 2 * hd), jnp.float32),
        grid=(G,),
        in_specs=[
            pl.BlockSpec((TB, N, Fin), lambda g: (g, 0, 0)),    # feat (batch-folded)
            const_spec((N, 1)),                                 # hotel/depot selector
            const_spec((Fin, E)), const_spec((1, E)),           # depot embedding
            const_spec((Fin, E)), const_spec((1, E)),           # node embedding
            const_spec((L, E, 3 * hd)),                         # fused Wq|Wk|Wv per layer
            const_spec((L, hd, E)), const_spec((L, 1, E)),      # multi_head_combine
            const_spec((L, 1, E)), const_spec((L, 1, E)),       # norm1 gamma/beta
            const_spec((L, E, F)), const_spec((L, 1, F)),       # FF W1/b1
            const_spec((L, F, E)), const_spec((L, 1, E)),       # FF W2/b2
            const_spec((L, 1, E)), const_spec((L, 1, E)),       # norm2 gamma/beta
            const_spec((E, 2 * hd)),                            # decoder fused Wk|Wv
        ],
        out_specs=pl.BlockSpec((TB, N, E + 2 * hd), lambda g: (g, 0, 0)),
        scratch_shapes=[pltpu.VMEM((TB * N, hd), jnp.float32)],
        compiler_params=pltpu.CompilerParams(dimension_semantics=("parallel",)),
    )(feat, sel, p['emb_depot_w'], p['emb_depot_b'], p['emb_node_w'], p['emb_node_b'],
      e['wqkv'], e['wcomb'], e['bcomb'], e['n1g'], e['n1b'],
      e['w1'], e['b1'], e['w2'], e['b2'], e['n2g'], e['n2b'],
      p['decoder']['Wkv'])
    return enc_kv


# ------------------------------ fused decoder-step kernel ------------------------------

def _decoder_kernel(slab_ref, cn_ref, load_ref, mask_ref,
                    wqm_ref, wql_ref, wcomb_ref, bcomb_ref,
                    sel_ref, *rest, head_num, qkv_dim, embedding_dim,
                    sqrt_embedding_dim, logit_clipping, return_probs):
    if return_probs:
        probs_ref, o_scr_ref = rest
    else:
        (o_scr_ref,) = rest

    E = embedding_dim
    hd = head_num * qkv_dim
    slab = slab_ref[...]                     # (TB, N, E + 2*hd)
    tb, n, _ = slab.shape
    enc = slab[:, :, 0:E]                    # encoded nodes (also single-head key)
    kv = slab[:, :, E:E + 2 * hd]            # precomputed decoder K|V
    idx = cn_ref[...]                        # (TB, P, 1) int32 current node per rollout
    ld = load_ref[...]                       # (TB, P, 1) remaining length
    mask = mask_ref[...]                     # (TB, P, N) additive -inf mask
    p_dim = idx.shape[1]

    # gather encoded_last_node via batched one-hot matmul (no dynamic gather needed)
    iota = jax.lax.broadcasted_iota(jnp.int32, (tb, p_dim, n), 2)
    onehot = (iota == idx).astype(jnp.float32)
    last = jnp.einsum('bpn,bne->bpe', onehot, enc,
                      preferred_element_type=jnp.float32)                 # (TB, P, E)

    # Wq_last([last, load]) with the concat folded into a split matmul
    q2d = (jnp.dot(last.reshape(tb * p_dim, E), wqm_ref[...],
                   preferred_element_type=jnp.float32)
           + ld.reshape(tb * p_dim, 1) * wql_ref[...])                    # (TB*P, hd)
    q3 = q2d.reshape(tb, p_dim, hd)

    o_concat = _mha_concat(q3, kv[:, :, 0:hd], kv[:, :, hd:2 * hd],
                           o_scr_ref, head_num, qkv_dim, mask=mask)       # (TB*P, hd)
    mh = jnp.dot(o_concat, wcomb_ref[...],
                 preferred_element_type=jnp.float32) + bcomb_ref[...]     # (TB*P, E)
    mh3 = mh.reshape(tb, p_dim, E)

    score = jnp.einsum('bpe,bne->bpn', mh3, enc, preferred_element_type=jnp.float32)
    score = logit_clipping * jnp.tanh(score * (1.0 / sqrt_embedding_dim)) + mask

    sel_ref[...] = _argmax_lastdim(score)                                 # (TB, P, 1) int32
    if return_probs:
        probs_ref[...] = _softmax_lastdim(score, approx=False).astype(jnp.float32)


def decoder_step(dp, mp, enc_kv, current_node, remaining_len, ninf_mask,
                 return_probs=False):
    B, N, _ = enc_kv.shape
    P = current_node.shape[1]
    E = mp['embedding_dim']
    H = mp['head_num']
    d = mp['qkv_dim']
    hd = H * d
    G, TB = _grid_split(B)
    cn = current_node.astype(jnp.int32).reshape(B, P, 1)
    ld = remaining_len.astype(jnp.float32).reshape(B, P, 1)

    out_shape = [jax.ShapeDtypeStruct((B, P, 1), jnp.int32)]
    out_specs = [pl.BlockSpec((TB, P, 1), lambda g: (g, 0, 0))]
    if return_probs:
        out_shape.append(jax.ShapeDtypeStruct((B, P, N), jnp.float32))
        out_specs.append(pl.BlockSpec((TB, P, N), lambda g: (g, 0, 0)))

    kern = functools.partial(_decoder_kernel, head_num=H, qkv_dim=d, embedding_dim=E,
                             sqrt_embedding_dim=float(mp['sqrt_embedding_dim']),
                             logit_clipping=float(mp['logit_clipping']),
                             return_probs=return_probs)
    outs = pl.pallas_call(
        kern,
        out_shape=tuple(out_shape),
        grid=(G,),
        in_specs=[
            pl.BlockSpec((TB, N, E + 2 * hd), lambda g: (g, 0, 0)),   # merged enc|K|V slab
            pl.BlockSpec((TB, P, 1), lambda g: (g, 0, 0)),            # current node
            pl.BlockSpec((TB, P, 1), lambda g: (g, 0, 0)),            # remaining length
            pl.BlockSpec((TB, P, N), lambda g: (g, 0, 0)),            # ninf mask
            pl.BlockSpec((E, hd), lambda g: (0, 0)),                  # Wq_last (main part)
            pl.BlockSpec((1, hd), lambda g: (0, 0)),                  # Wq_last (load column)
            pl.BlockSpec((hd, E), lambda g: (0, 0)),                  # multi_head_combine W
            pl.BlockSpec((1, E), lambda g: (0, 0)),                   # multi_head_combine b
        ],
        out_specs=tuple(out_specs),
        scratch_shapes=[pltpu.VMEM((TB * P, hd), jnp.float32)],
        compiler_params=pltpu.CompilerParams(dimension_semantics=("parallel",)),
    )(enc_kv, cn, ld, ninf_mask, dp['Wq_main'], dp['Wq_load'], dp['comb_w'], dp['comb_b'])

    selected = outs[0][:, :, 0]
    if return_probs:
        return selected, outs[1]
    return selected, None


# ------------------------------ parameter init ------------------------------

def _linear_init(key, fan_in, fan_out, bias=True):
    kw, kb = jax.random.split(key)
    bound = 1.0 / (fan_in ** 0.5)
    w = jax.random.uniform(kw, (fan_in, fan_out), jnp.float32, -bound, bound)
    b = jax.random.uniform(kb, (fan_out,), jnp.float32, -bound, bound) if bias else None
    return w, b


def init_params(key, mp):
    E = mp['embedding_dim']
    H = mp['head_num']
    d = mp['qkv_dim']
    F = mp['ff_hidden_dim']
    L = mp['encoder_layer_num']
    hd = H * d
    node_in = 4 if mp['stochastic_prize'] else 3
    fin = max(3, node_in)
    keys = iter(jax.random.split(key, 8 * L + 16))

    p = {}
    wd, bd = _linear_init(next(keys), 3, E)
    wn, bn = _linear_init(next(keys), node_in, E)
    p['emb_depot_w'] = jnp.zeros((fin, E), jnp.float32).at[:3].set(wd)
    p['emb_depot_b'] = bd.reshape(1, E)
    p['emb_node_w'] = jnp.zeros((fin, E), jnp.float32).at[:node_in].set(wn)
    p['emb_node_b'] = bn.reshape(1, E)

    wqkv, wcomb, bcomb = [], [], []
    n1g, n1b, n2g, n2b = [], [], [], []
    w1s, b1s, w2s, b2s = [], [], [], []
    for _ in range(L):
        wq, _ = _linear_init(next(keys), E, hd, bias=False)
        wk, _ = _linear_init(next(keys), E, hd, bias=False)
        wv, _ = _linear_init(next(keys), E, hd, bias=False)
        wqkv.append(jnp.concatenate([wq, wk, wv], axis=1))
        cw, cb = _linear_init(next(keys), hd, E)
        wcomb.append(cw)
        bcomb.append(cb.reshape(1, E))
        n1g.append(jnp.ones((1, E), jnp.float32))
        n1b.append(jnp.zeros((1, E), jnp.float32))
        w1, b1 = _linear_init(next(keys), E, F)
        w2, b2 = _linear_init(next(keys), F, E)
        w1s.append(w1); b1s.append(b1.reshape(1, F))
        w2s.append(w2); b2s.append(b2.reshape(1, E))
        n2g.append(jnp.ones((1, E), jnp.float32))
        n2b.append(jnp.zeros((1, E), jnp.float32))
    p['enc'] = dict(
        wqkv=jnp.stack(wqkv), wcomb=jnp.stack(wcomb), bcomb=jnp.stack(bcomb),
        n1g=jnp.stack(n1g), n1b=jnp.stack(n1b),
        w1=jnp.stack(w1s), b1=jnp.stack(b1s), w2=jnp.stack(w2s), b2=jnp.stack(b2s),
        n2g=jnp.stack(n2g), n2b=jnp.stack(n2b))

    wq_last, _ = _linear_init(next(keys), E + 1, hd, bias=False)
    wk_dec, _ = _linear_init(next(keys), E, hd, bias=False)
    wv_dec, _ = _linear_init(next(keys), E, hd, bias=False)
    comb_w, comb_b = _linear_init(next(keys), hd, E)
    p['decoder'] = dict(
        Wq_main=wq_last[:E], Wq_load=wq_last[E:E + 1],
        Wkv=jnp.concatenate([wk_dec, wv_dec], axis=1),
        comb_w=comb_w, comb_b=comb_b.reshape(1, E))
    return p


# ------------------------------ model wrappers ------------------------------

def model_pre_forward(p, mp, reset_state):
    depot_xy = reset_state['depot_xy']                                  # (B, hotel, 2)
    B, hotel, _ = depot_xy.shape
    day = jnp.broadcast_to(reset_state['day_number'][:, None, :1], (B, hotel, 1))
    depot_feat = jnp.concatenate([depot_xy, day], axis=2)               # (B, hotel, 3)
    node_xy = reset_state['node_xy']
    node_prize = reset_state['node_prize']
    if mp['stochastic_prize']:
        node_feat = jnp.concatenate([node_xy, node_prize], axis=2)
    else:
        node_feat = jnp.concatenate([node_xy, node_prize[:, :, None]], axis=2)

    fin = max(depot_feat.shape[2], node_feat.shape[2])

    def pad(t):
        extra = fin - t.shape[2]
        return t if extra == 0 else jnp.pad(t, ((0, 0), (0, 0), (0, extra)))

    feat = jnp.concatenate([pad(depot_feat), pad(node_feat)], axis=1)   # (B, N, fin)
    N = feat.shape[1]
    sel = (jnp.arange(N) < hotel).astype(jnp.float32).reshape(N, 1)

    # single merged (B, N, E + 2*H*d) slab: [encoded_nodes | decoder K|V]
    return encoder_forward(p, mp, feat, sel)


def model_forward(p, mp, enc_kv, state, training=False):
    batch_size, pomo_size = state['BATCH_IDX'].shape
    hotel_size = state['HOTEL_IDX'].shape[2]
    if state['selected_count'] == 0:
        selected = jnp.zeros((batch_size, pomo_size), jnp.int32)
        prob = jnp.ones((batch_size, pomo_size), jnp.float32)
    elif state['selected_count'] == 1:
        selected = jnp.tile(
            jnp.arange(hotel_size, pomo_size + hotel_size, dtype=jnp.int32)[None, :],
            (batch_size, 1))
        selected = jnp.where(state['finished'], 0, selected)
        prob = jnp.ones((batch_size, pomo_size), jnp.float32)
    else:
        if training or mp['eval_type'] == 'softmax':
            # TODO(synk): multinomial rejection-sampling loop has no clean Pallas equivalent.
            raise NotImplementedError("sampling path not implemented; use eval_type='argmax'")
        # TODO(synk): fusing multiple decode steps into one pallas_call needs the environment
        # transition (mask / current-node / remaining-length update) expressed in-kernel.
        selected, prob = decoder_step(p['decoder'], mp, enc_kv,
                                      state['current_node'], state['remaining_len'],
                                      state['ninf_mask'], return_probs=False)
    return selected, prob


# ----------------------------------- main -------------------------------------

if __name__ == "__main__":
    MODEL_PARAMS = dict(
        embedding_dim=32,
        sqrt_embedding_dim=32 ** 0.5,
        encoder_layer_num=2,
        qkv_dim=8,
        head_num=4,
        logit_clipping=10.0,
        ff_hidden_dim=64,
        eval_type='argmax',
        stochastic_prize=False,
    )

    B, hotel, n_nodes, pomo = 4, 2, 6, 6        # B even -> grid=(2,), 2 batches per block
    N = hotel + n_nodes
    E = MODEL_PARAMS['embedding_dim']
    hd = MODEL_PARAMS['head_num'] * MODEL_PARAMS['qkv_dim']

    key = jax.random.PRNGKey(0)
    kp, k1, k2, k3, k4, k5 = jax.random.split(key, 6)
    params = init_params(kp, MODEL_PARAMS)

    reset_state = dict(
        depot_xy=jax.random.uniform(k1, (B, hotel, 2), jnp.float32),
        day_number=jnp.ones((B, 1), jnp.float32),
        node_xy=jax.random.uniform(k2, (B, n_nodes, 2), jnp.float32),
        node_prize=jax.random.uniform(k3, (B, n_nodes), jnp.float32),
    )

    enc_kv = jax.block_until_ready(model_pre_forward(params, MODEL_PARAMS, reset_state))
    encoded_nodes = enc_kv[:, :, :E]
    kv_cat = enc_kv[:, :, E:]

    # state at selected_count >= 2 (the decoder hot path)
    ninf_mask = jnp.where(
        jax.random.uniform(k4, (B, pomo, N)) < 0.3, -jnp.inf, 0.0
    ).astype(jnp.float32)
    ninf_mask = ninf_mask.at[:, :, 0].set(0.0)  # keep at least one feasible node per row
    state = dict(
        selected_count=2,
        BATCH_IDX=jnp.tile(jnp.arange(B)[:, None], (1, pomo)),
        POMO_IDX=jnp.tile(jnp.arange(pomo)[None, :], (B, 1)),
        HOTEL_IDX=jnp.tile(jnp.arange(hotel)[None, None, :], (B, pomo, 1)),
        current_node=jnp.tile(jnp.arange(hotel, hotel + pomo, dtype=jnp.int32)[None, :], (B, 1)),
        remaining_len=jax.random.uniform(k5, (B, pomo), jnp.float32, 1.0, 3.0),
        ninf_mask=ninf_mask,
        finished=jnp.zeros((B, pomo), bool),
    )

    selected, prob = model_forward(params, MODEL_PARAMS, enc_kv, state, training=False)
    selected = jax.block_until_ready(selected)

    # also exercise the probs-emitting variant and cross-check the in-kernel argmax
    sel2, probs = decoder_step(params['decoder'], MODEL_PARAMS, enc_kv,
                               state['current_node'], state['remaining_len'],
                               state['ninf_mask'], return_probs=True)
    probs = jax.block_until_ready(probs)

    assert selected.shape == (B, pomo) and selected.dtype == jnp.int32
    assert encoded_nodes.shape == (B, N, E)
    assert kv_cat.shape == (B, N, 2 * hd)
    assert bool(jnp.all(jnp.isfinite(encoded_nodes)))
    assert bool(jnp.all(jnp.isfinite(probs)))
    assert bool(jnp.all((selected >= 0) & (selected < N)))
    assert bool(jnp.all(selected == sel2))
    assert bool(jnp.all(selected == jnp.argmax(probs, axis=2)))
    assert bool(jnp.allclose(jnp.sum(probs, axis=2), 1.0, atol=1e-3))
    print("KERNEL_OK")
</pallas_src>

<mosaic_0001>
module attributes {stable_mosaic.version = 11 : i64} {
  func.func @_encoder_kernel(%arg0: i32, %arg1: memref<2x8x3xf32, #tpu.memory_space<vmem>>, %arg2: memref<8x1xf32, #tpu.memory_space<vmem>>, %arg3: memref<3x32xf32, #tpu.memory_space<vmem>>, %arg4: memref<1x32xf32, #tpu.memory_space<vmem>>, %arg5: memref<3x32xf32, #tpu.memory_space<vmem>>, %arg6: memref<1x32xf32, #tpu.memory_space<vmem>>, %arg7: memref<2x32x96xf32, #tpu.memory_space<vmem>>, %arg8: memref<2x32x32xf32, #tpu.memory_space<vmem>>, %arg9: memref<2x1x32xf32, #tpu.memory_space<vmem>>, %arg10: memref<2x1x32xf32, #tpu.memory_space<vmem>>, %arg11: memref<2x1x32xf32, #tpu.memory_space<vmem>>, %arg12: memref<2x32x64xf32, #tpu.memory_space<vmem>>, %arg13: memref<2x1x64xf32, #tpu.memory_space<vmem>>, %arg14: memref<2x64x32xf32, #tpu.memory_space<vmem>>, %arg15: memref<2x1x32xf32, #tpu.memory_space<vmem>>, %arg16: memref<2x1x32xf32, #tpu.memory_space<vmem>>, %arg17: memref<2x1x32xf32, #tpu.memory_space<vmem>>, %arg18: memref<32x64xf32, #tpu.memory_space<vmem>>, %arg19: memref<2x8x96xf32, #tpu.memory_space<vmem>>, %arg20: memref<16x32xf32, #tpu.memory_space<vmem>>) attributes {dimension_semantics = [#tpu.dimension_semantics<parallel>], iteration_bounds = array<i64: 2>, scalar_prefetch = 0 : i64, scratch_operands = 1 : i64, tpu.core_type = #tpu.core_type<tc>, window_params = [{transform_indices = @transform_0, window_bounds = array<i64: 2, 8, 3>}, {pipeline_mode = #tpu.pipeline_mode<synchronous>, transform_indices = @transform_1, window_bounds = array<i64: 8, 1>}, {pipeline_mode = #tpu.pipeline_mode<synchronous>, transform_indices = @transform_2, window_bounds = array<i64: 3, 32>}, {pipeline_mode = #tpu.pipeline_mode<synchronous>, transform_indices = @transform_3, window_bounds = array<i64: 1, 32>}, {pipeline_mode = #tpu.pipeline_mode<synchronous>, transform_indices = @transform_4, window_bounds = array<i64: 3, 32>}, {pipeline_mode = #tpu.pipeline_mode<synchronous>, transform_indices = @transform_5, window_bounds = array<i64: 1, 32>}, {pipeline_mode = #tpu.pipeline_mode<synchronous>, transform_indices = @transform_6, window_bounds = array<i64: 2, 32, 96>}, {pipeline_mode = #tpu.pipeline_mode<synchronous>, transform_indices = @transform_7, window_bounds = array<i64: 2, 32, 32>}, {pipeline_mode = #tpu.pipeline_mode<synchronous>, transform_indices = @transform_8, window_bounds = array<i64: 2, 1, 32>}, {pipeline_mode = #tpu.pipeline_mode<synchronous>, transform_indices = @transform_9, window_bounds = array<i64: 2, 1, 32>}, {pipeline_mode = #tpu.pipeline_mode<synchronous>, transform_indices = @transform_10, window_bounds = array<i64: 2, 1, 32>}, {pipeline_mode = #tpu.pipeline_mode<synchronous>, transform_indices = @transform_11, window_bounds = array<i64: 2, 32, 64>}, {pipeline_mode = #tpu.pipeline_mode<synchronous>, transform_indices = @transform_12, window_bounds = array<i64: 2, 1, 64>}, {pipeline_mode = #tpu.pipeline_mode<synchronous>, transform_indices = @transform_13, window_bounds = array<i64: 2, 64, 32>}, {pipeline_mode = #tpu.pipeline_mode<synchronous>, transform_indices = @transform_14, window_bounds = array<i64: 2, 1, 32>}, {pipeline_mode = #tpu.pipeline_mode<synchronous>, transform_indices = @transform_15, window_bounds = array<i64: 2, 1, 32>}, {pipeline_mode = #tpu.pipeline_mode<synchronous>, transform_indices = @transform_16, window_bounds = array<i64: 2, 1, 32>}, {pipeline_mode = #tpu.pipeline_mode<synchronous>, transform_indices = @transform_17, window_bounds = array<i64: 32, 64>}, {transform_indices = @transform_18, window_bounds = array<i64: 2, 8, 96>}]} {
    %c0 = arith.constant 0 : index
    %c0_0 = arith.constant 0 : index
    %c0_1 = arith.constant 0 : index
    %0 = vector.load %arg1[%c0, %c0_0, %c0_1] : memref<2x8x3xf32, #tpu.memory_space<vmem>>, vector<2x8x3xf32>
    %c0_2 = arith.constant 0 : index
    %c0_3 = arith.constant 0 : index
    %1 = vector.load %arg2[%c0_2, %c0_3] : memref<8x1xf32, #tpu.memory_space<vmem>>, vector<8x1xf32>
    %2 = vector.shape_cast %0 : vector<2x8x3xf32> to vector<16x3xf32>
    %c0_4 = arith.constant 0 : index
    %c0_5 = arith.constant 0 : index
    %3 = vector.load %arg3[%c0_4, %c0_5] : memref<3x32xf32, #tpu.memory_space<vmem>>, vector<3x32xf32>
    %cst = arith.constant dense<0.000000e+00> : vector<16x32xf32>
    %4 = tpu.matmul %2, %3, %cst {dimension_numbers = #tpu.dot_dimension_numbers<[1], [0], [0], [1], [0, 0, 1, 1], [], []>} : vector<16x3xf32>, vector<3x32xf32>, vector<16x32xf32> -> vector<16x32xf32>
    %c0_6 = arith.constant 0 : index
    %c0_7 = arith.constant 0 : index
    %5 = vector.load %arg4[%c0_6, %c0_7] : memref<1x32xf32, #tpu.memory_space<vmem>>, vector<1x32xf32>
    %6 = vector.broadcast %5 : vector<1x32xf32> to vector<16x32xf32>
    %7 = arith.addf %4, %6 : vector<16x32xf32>
    %c0_8 = arith.constant 0 : index
    %c0_9 = arith.constant 0 : index
    %8 = vector.load %arg5[%c0_8, %c0_9] : memref<3x32xf32, #tpu.memory_space<vmem>>, vector<3x32xf32>
    %cst_10 = arith.constant dense<0.000000e+00> : vector<16x32xf32>
    %9 = tpu.matmul %2, %8, %cst_10 {dimension_numbers = #tpu.dot_dimension_numbers<[1], [0], [0], [1], [0, 0, 1, 1], [], []>} : vector<16x3xf32>, vector<3x32xf32>, vector<16x32xf32> -> vector<16x32xf32>
    %c0_11 = arith.constant 0 : index
    %c0_12 = arith.constant 0 : index
    %10 = vector.load %arg6[%c0_11, %c0_12] : memref<1x32xf32, #tpu.memory_space<vmem>>, vector<1x32xf32>
    %11 = vector.broadcast %10 : vector<1x32xf32> to vector<16x32xf32>
    %12 = arith.addf %9, %11 : vector<16x32xf32>
    %13 = vector.shape_cast %7 : vector<16x32xf32> to vector<2x8x32xf32>
    %14 = vector.shape_cast %1 : vector<8x1xf32> to vector<1x8x1xf32>
    %15 = vector.broadcast %14 : vector<1x8x1xf32> to vector<2x8x32xf32>
    %16 = arith.mulf %15, %13 : vector<2x8x32xf32>
    %cst_13 = arith.constant 1.000000e+00 : f32
    %17 = vector.broadcast %cst_13 : f32 to vector<8x1xf32>
    %18 = arith.subf %17, %1 : vector<8x1xf32>
    %19 = vector.shape_cast %12 : vector<16x32xf32> to vector<2x8x32xf32>
    %20 = vector.shape_cast %18 : vector<8x1xf32> to vector<1x8x1xf32>
    %21 = vector.broadcast %20 : vector<1x8x1xf32> to vector<2x8x32xf32>
    %22 = arith.mulf %21, %19 : vector<2x8x32xf32>
    %23 = arith.addf %16, %22 : vector<2x8x32xf32>
    %24 = vector.shape_cast %23 : vector<2x8x32xf32> to vector<16x32xf32>
    %c0_14 = arith.constant 0 : index
    %c0_15 = arith.constant 0 : index
    %c0_16 = arith.constant 0 : index
    %25 = vector.load %arg7[%c0_14, %c0_15, %c0_16] : memref<2x32x96xf32, #tpu.memory_space<vmem>>, vector<1x32x96xf32>
    %26 = vector.shape_cast %25 : vector<1x32x96xf32> to vector<32x96xf32>
    %cst_17 = arith.constant dense<0.000000e+00> : vector<16x96xf32>
    %27 = tpu.matmul %24, %26, %cst_17 {dimension_numbers = #tpu.dot_dimension_numbers<[1], [0], [0], [1], [0, 0, 1, 1], [], []>} : vector<16x32xf32>, vector<32x96xf32>, vector<16x96xf32> -> vector<16x96xf32>
    %28 = vector.shape_cast %27 : vector<16x96xf32> to vector<2x8x96xf32>
    %29 = vector.extract_strided_slice %28 {offsets = [0, 0, 0], sizes = [2, 8, 32], strides = [1, 1, 1]} : vector<2x8x96xf32> to vector<2x8x32xf32>
    %30 = vector.extract_strided_slice %28 {offsets = [0, 0, 32], sizes = [2, 8, 32], strides = [1, 1, 1]} : vector<2x8x96xf32> to vector<2x8x32xf32>
    %31 = vector.extract_strided_slice %28 {offsets = [0, 0, 64], sizes = [2, 8, 32], strides = [1, 1, 1]} : vector<2x8x96xf32> to vector<2x8x32xf32>
    %32 = vector.extract_strided_slice %29 {offsets = [0, 0, 0], sizes = [2, 8, 8], strides = [1, 1, 1]} : vector<2x8x32xf32> to vector<2x8x8xf32>
    %33 = vector.extract_strided_slice %30 {offsets = [0, 0, 0], sizes = [2, 8, 8], strides = [1, 1, 1]} : vector<2x8x32xf32> to vector<2x8x8xf32>
    %34 = vector.extract_strided_slice %31 {offsets = [0, 0, 0], sizes = [2, 8, 8], strides = [1, 1, 1]} : vector<2x8x32xf32> to vector<2x8x8xf32>
    "tpu.trace_start"() <{level = 10 : i32, message = "bqd,bkd->bqk"}> : () -> ()
    %cst_18 = arith.constant dense<0.000000e+00> : vector<2x8x8xf32>
    %35 = tpu.matmul %32, %33, %cst_18 {dimension_numbers = #tpu.dot_dimension_numbers<[2], [2], [1], [1], [0, 0, 0, 1, 1, 1], [0], [0]>} : vector<2x8x8xf32>, vector<2x8x8xf32>, vector<2x8x8xf32> -> vector<2x8x8xf32>
    "tpu.trace_stop"() : () -> ()
    %cst_19 = arith.constant 0.353553385 : f32
    %36 = vector.broadcast %cst_19 : f32 to vector<2x8x8xf32>
    %37 = arith.mulf %35, %36 : vector<2x8x8xf32>
    %cst_20 = arith.constant dense<0xFF800000> : vector<2x8xf32>
    %38 = vector.multi_reduction <maximumf>, %37, %cst_20 [2] : vector<2x8x8xf32> to vector<2x8xf32>
    %39 = vector.shape_cast %38 : vector<2x8xf32> to vector<2x8x1xf32>
    %cst_21 = arith.constant -1.000000e+30 : f32
    %40 = vector.broadcast %cst_21 : f32 to vector<2x8x1xf32>
    %41 = arith.maximumf %39, %40 : vector<2x8x1xf32>
    %42 = vector.broadcast %41 : vector<2x8x1xf32> to vector<2x8x8xf32>
    %43 = arith.subf %37, %42 : vector<2x8x8xf32>
    %44 = math.exp %43 : vector<2x8x8xf32>
    %cst_22 = arith.constant dense<0.000000e+00> : vector<2x8xf32>
    %45 = vector.multi_reduction <add>, %44, %cst_22 [2] : vector<2x8x8xf32> to vector<2x8xf32>
    %46 = vector.shape_cast %45 : vector<2x8xf32> to vector<2x8x1xf32>
    %cst_23 = arith.constant 1.000000e-30 : f32
    %47 = vector.broadcast %cst_23 : f32 to vector<2x8x1xf32>
    %48 = arith.maximumf %46, %47 : vector<2x8x1xf32>
    %49 = tpu.reciprocal %48 {approx = true} : vector<2x8x1xf32> -> vector<2x8x1xf32>
    %50 = vector.broadcast %49 : vector<2x8x1xf32> to vector<2x8x8xf32>
    %51 = arith.mulf %44, %50 : vector<2x8x8xf32>
    "tpu.trace_start"() <{level = 10 : i32, message = "bqk,bkd->bqd"}> : () -> ()
    %cst_24 = arith.constant dense<0.000000e+00> : vector<2x8x8xf32>
    %52 = tpu.matmul %51, %34, %cst_24 {dimension_numbers = #tpu.dot_dimension_numbers<[2], [1], [1], [2], [0, 0, 0, 1, 1, 2], [0], [0]>} : vector<2x8x8xf32>, vector<2x8x8xf32>, vector<2x8x8xf32> -> vector<2x8x8xf32>
    "tpu.trace_stop"() : () -> ()
    %53 = vector.shape_cast %52 : vector<2x8x8xf32> to vector<16x8xf32>
    %c0_25 = arith.constant 0 : index
    %c0_26 = arith.constant 0 : index
    %54 = vector.load %arg20[%c0_25, %c0_26] : memref<16x32xf32, #tpu.memory_space<vmem>>, vector<16x8xf32>
    tpu.vector_store %arg20[%c0_25, %c0_26], %53 {strides = array<i32>} : memref<16x32xf32, #tpu.memory_space<vmem>>, vector<16x8xf32>,
    %55 = vector.extract_strided_slice %29 {offsets = [0, 0, 8], sizes = [2, 8, 8], strides = [1, 1, 1]} : vector<2x8x32xf32> to vector<2x8x8xf32>
    %56 = vector.extract_strided_slice %30 {offsets = [0, 0, 8], sizes = [2, 8, 8], strides = [1, 1, 1]} : vector<2x8x32xf32> to vector<2x8x8xf32>
    %57 = vector.extract_strided_slice %31 {offsets = [0, 0, 8], sizes = [2, 8, 8], strides = [1, 1, 1]} : vector<2x8x32xf32> to vector<2x8x8xf32>
    "tpu.trace_start"() <{level = 10 : i32, message = "bqd,bkd->bqk"}> : () -> ()
    %cst_27 = arith.constant dense<0.000000e+00> : vector<2x8x8xf32>
    %58 = tpu.matmul %55, %56, %cst_27 {dimension_numbers = #tpu.dot_dimension_numbers<[2], [2], [1], [1], [0, 0, 0, 1, 1, 1], [0], [0]>} : vector<2x8x8xf32>, vector<2x8x8xf32>, vector<2x8x8xf32> -> vector<2x8x8xf32>
    "tpu.trace_stop"() : () -> ()
    %cst_28 = arith.constant 0.353553385 : f32
    %59 = vector.broadcast %cst_28 : f32 to vector<2x8x8xf32>
    %60 = arith.mulf %58, %59 : vector<2x8x8xf32>
    %cst_29 = arith.constant dense<0xFF800000> : vector<2x8xf32>
    %61 = vector.multi_reduction <maximumf>, %60, %cst_29 [2] : vector<2x8x8xf32> to vector<2x8xf32>
    %62 = vector.shape_cast %61 : vector<2x8xf32> to vector<2x8x1xf32>
    %cst_30 = arith.constant -1.000000e+30 : f32
    %63 = vector.broadcast %cst_30 : f32 to vector<2x8x1xf32>
    %64 = arith.maximumf %62, %63 : vector<2x8x1xf32>
    %65 = vector.broadcast %64 : vector<2x8x1xf32> to vector<2x8x8xf32>
    %66 = arith.subf %60, %65 : vector<2x8x8xf32>
    %67 = math.exp %66 : vector<2x8x8xf32>
    %cst_31 = arith.constant dense<0.000000e+00> : vector<2x8xf32>
    %68 = vector.multi_reduction <add>, %67, %cst_31 [2] : vector<2x8x8xf32> to vector<2x8xf32>
    %69 = vector.shape_cast %68 : vector<2x8xf32> to vector<2x8x1xf32>
    %cst_32 = arith.constant 1.000000e-30 : f32
    %70 = vector.broadcast %cst_32 : f32 to vector<2x8x1xf32>
    %71 = arith.maximumf %69, %70 : vector<2x8x1xf32>
    %72 = tpu.reciprocal %71 {approx = true} : vector<2x8x1xf32> -> vector<2x8x1xf32>
    %73 = vector.broadcast %72 : vector<2x8x1xf32> to vector<2x8x8xf32>
    %74 = arith.mulf %67, %73 : vector<2x8x8xf32>
    "tpu.trace_start"() <{level = 10 : i32, message = "bqk,bkd->bqd"}> : () -> ()
    %cst_33 = arith.constant dense<0.000000e+00> : vector<2x8x8xf32>
    %75 = tpu.matmul %74, %57, %cst_33 {dimension_numbers = #tpu.dot_dimension_numbers<[2], [1], [1], [2], [0, 0, 0, 1, 1, 2], [0], [0]>} : vector<2x8x8xf32>, vector<2x8x8xf32>, vector<2x8x8xf32> -> vector<2x8x8xf32>
    "tpu.trace_stop"() : () -> ()
    %76 = vector.shape_cast %75 : vector<2x8x8xf32> to vector<16x8xf32>
    %c0_34 = arith.constant 0 : index
    %c8 = arith.constant 8 : index
    %77 = vector.load %arg20[%c0_34, %c8] : memref<16x32xf32, #tpu.memory_space<vmem>>, vector<16x8xf32>
    tpu.vector_store %arg20[%c0_34, %c8], %76 {strides = array<i32>} : memref<16x32xf32, #tpu.memory_space<vmem>>, vector<16x8xf32>,
    %78 = vector.extract_strided_slice %29 {offsets = [0, 0, 16], sizes = [2, 8, 8], strides = [1, 1, 1]} : vector<2x8x32xf32> to vector<2x8x8xf32>
    %79 = vector.extract_strided_slice %30 {offsets = [0, 0, 16], sizes = [2, 8, 8], strides = [1, 1, 1]} : vector<2x8x32xf32> to vector<2x8x8xf32>
    %80 = vector.extract_strided_slice %31 {offsets = [0, 0, 16], sizes = [2, 8, 8], strides = [1, 1, 1]} : vector<2x8x32xf32> to vector<2x8x8xf32>
    "tpu.trace_start"() <{level = 10 : i32, message = "bqd,bkd->bqk"}> : () -> ()
    %cst_35 = arith.constant dense<0.000000e+00> : vector<2x8x8xf32>
    %81 = tpu.matmul %78, %79, %cst_35 {dimension_numbers = #tpu.dot_dimension_numbers<[2], [2], [1], [1], [0, 0, 0, 1, 1, 1], [0], [0]>} : vector<2x8x8xf32>, vector<2x8x8xf32>, vector<2x8x8xf32> -> vector<2x8x8xf32>
    "tpu.trace_stop"() : () -> ()
    %cst_36 = arith.constant 0.353553385 : f32
    %82 = vector.broadcast %cst_36 : f32 to vector<2x8x8xf32>
    %83 = arith.mulf %81, %82 : vector<2x8x8xf32>
    %cst_37 = arith.constant dense<0xFF800000> : vector<2x8xf32>
    %84 = vector.multi_reduction <maximumf>, %83, %cst_37 [2] : vector<2x8x8xf32> to vector<2x8xf32>
    %85 = vector.shape_cast %84 : vector<2x8xf32> to vector<2x8x1xf32>
    %cst_38 = arith.constant -1.000000e+30 : f32
    %86 = vector.broadcast %cst_38 : f32 to vector<2x8x1xf32>
    %87 = arith.maximumf %85, %86 : vector<2x8x1xf32>
    %88 = vector.broadcast %87 : vector<2x8x1xf32> to vector<2x8x8xf32>
    %89 = arith.subf %83, %88 : vector<2x8x8xf32>
    %90 = math.exp %89 : vector<2x8x8xf32>
    %cst_39 = arith.constant dense<0.000000e+00> : vector<2x8xf32>
    %91 = vector.multi_reduction <add>, %90, %cst_39 [2] : vector<2x8x8xf32> to vector<2x8xf32>
    %92 = vector.shape_cast %91 : vector<2x8xf32> to vector<2x8x1xf32>
    %cst_40 = arith.constant 1.000000e-30 : f32
    %93 = vector.broadcast %cst_40 : f32 to vector<2x8x1xf32>
    %94 = arith.maximumf %92, %93 : vector<2x8x1xf32>
    %95 = tpu.reciprocal %94 {approx = true} : vector<2x8x1xf32> -> vector<2x8x1xf32>
    %96 = vector.broadcast %95 : vector<2x8x1xf32> to vector<2x8x8xf32>
    %97 = arith.mulf %90, %96 : vector<2x8x8xf32>
    "tpu.trace_start"() <{level = 10 : i32, message = "bqk,bkd->bqd"}> : () -> ()
    %cst_41 = arith.constant dense<0.000000e+00> : vector<2x8x8xf32>
    %98 = tpu.matmul %97, %80, %cst_41 {dimension_numbers = #tpu.dot_dimension_numbers<[2], [1], [1], [2], [0, 0, 0, 1, 1, 2], [0], [0]>} : vector<2x8x8xf32>, vector<2x8x8xf32>, vector<2x8x8xf32> -> vector<2x8x8xf32>
    "tpu.trace_stop"() : () -> ()
    %99 = vector.shape_cast %98 : vector<2x8x8xf32> to vector<16x8xf32>
    %c0_42 = arith.constant 0 : index
    %c16 = arith.constant 16 : index
    %100 = vector.load %arg20[%c0_42, %c16] : memref<16x32xf32, #tpu.memory_space<vmem>>, vector<16x8xf32>
    tpu.vector_store %arg20[%c0_42, %c16], %99 {strides = array<i32>} : memref<16x32xf32, #tpu.memory_space<vmem>>, vector<16x8xf32>,
    %101 = vector.extract_strided_slice %29 {offsets = [0, 0, 24], sizes = [2, 8, 8], strides = [1, 1, 1]} : vector<2x8x32xf32> to vector<2x8x8xf32>
    %102 = vector.extract_strided_slice %30 {offsets = [0, 0, 24], sizes = [2, 8, 8], strides = [1, 1, 1]} : vector<2x8x32xf32> to vector<2x8x8xf32>
    %103 = vector.extract_strided_slice %31 {offsets = [0, 0, 24], sizes = [2, 8, 8], strides = [1, 1, 1]} : vector<2x8x32xf32> to vector<2x8x8xf32>
    "tpu.trace_start"() <{level = 10 : i32, message = "bqd,bkd->bqk"}> : () -> ()
    %cst_43 = arith.constant dense<0.000000e+00> : vector<2x8x8xf32>
    %104 = tpu.matmul %101, %102, %cst_43 {dimension_numbers = #tpu.dot_dimension_numbers<[2], [2], [1], [1], [0, 0, 0, 1, 1, 1], [0], [0]>} : vector<2x8x8xf32>, vector<2x8x8xf32>, vector<2x8x8xf32> -> vector<2x8x8xf32>
    "tpu.trace_stop"() : () -> ()
    %cst_44 = arith.constant 0.353553385 : f32
    %105 = vector.broadcast %cst_44 : f32 to vector<2x8x8xf32>
    %106 = arith.mulf %104, %105 : vector<2x8x8xf32>
    %cst_45 = arith.constant dense<0xFF800000> : vector<2x8xf32>
    %107 = vector.multi_reduction <maximumf>, %106, %cst_45 [2] : vector<2x8x8xf32> to vector<2x8xf32>
    %108 = vector.shape_cast %107 : vector<2x8xf32> to vector<2x8x1xf32>
    %cst_46 = arith.constant -1.000000e+30 : f32
    %109 = vector.broadcast %cst_46 : f32 to vector<2x8x1xf32>
    %110 = arith.maximumf %108, %109 : vector<2x8x1xf32>
    %111 = vector.broadcast %110 : vector<2x8x1xf32> to vector<2x8x8xf32>
    %112 = arith.subf %106, %111 : vector<2x8x8xf32>
    %113 = math.exp %112 : vector<2x8x8xf32>
    %cst_47 = arith.constant dense<0.000000e+00> : vector<2x8xf32>
    %114 = vector.multi_reduction <add>, %113, %cst_47 [2] : vector<2x8x8xf32> to vector<2x8xf32>
    %115 = vector.shape_cast %114 : vector<2x8xf32> to vector<2x8x1xf32>
    %cst_48 = arith.constant 1.000000e-30 : f32
    %116 = vector.broadcast %cst_48 : f32 to vector<2x8x1xf32>
    %117 = arith.maximumf %115, %116 : vector<2x8x1xf32>
    %118 = tpu.reciprocal %117 {approx = true} : vector<2x8x1xf32> -> vector<2x8x1xf32>
    %119 = vector.broadcast %118 : vector<2x8x1xf32> to vector<2x8x8xf32>
    %120 = arith.mulf %113, %119 : vector<2x8x8xf32>
    "tpu.trace_start"() <{level = 10 : i32, message = "bqk,bkd->bqd"}> : () -> ()
    %cst_49 = arith.constant dense<0.000000e+00> : vector<2x8x8xf32>
    %121 = tpu.matmul %120, %103, %cst_49 {dimension_numbers = #tpu.dot_dimension_numbers<[2], [1], [1], [2], [0, 0, 0, 1, 1, 2], [0], [0]>} : vector<2x8x8xf32>, vector<2x8x8xf32>, vector<2x8x8xf32> -> vector<2x8x8xf32>
    "tpu.trace_stop"() : () -> ()
    %122 = vector.shape_cast %121 : vector<2x8x8xf32> to vector<16x8xf32>
    %c0_50 = arith.constant 0 : index
    %c24 = arith.constant 24 : index
    %123 = vector.load %arg20[%c0_50, %c24] : memref<16x32xf32, #tpu.memory_space<vmem>>, vector<16x8xf32>
    tpu.vector_store %arg20[%c0_50, %c24], %122 {strides = array<i32>} : memref<16x32xf32, #tpu.memory_space<vmem>>, vector<16x8xf32>,
    %c0_51 = arith.constant 0 : index
    %c0_52 = arith.constant 0 : index
    %124 = vector.load %arg20[%c0_51, %c0_52] : memref<16x32xf32, #tpu.memory_space<vmem>>, vector<16x32xf32>
    %c0_53 = arith.constant 0 : index
    %c0_54 = arith.constant 0 : index
    %c0_55 = arith.constant 0 : index
    %125 = vector.load %arg8[%c0_53, %c0_54, %c0_55] : memref<2x32x32xf32, #tpu.memory_space<vmem>>, vector<1x32x32xf32>
    %126 = vector.shape_cast %125 : vector<1x32x32xf32> to vector<32x32xf32>
    %cst_56 = arith.constant dense<0.000000e+00> : vector<16x32xf32>
    %127 = tpu.matmul %124, %126, %cst_56 {dimension_numbers = #tpu.dot_dimension_numbers<[1], [0], [0], [1], [0, 0, 1, 1], [], []>} : vector<16x32xf32>, vector<32x32xf32>, vector<16x32xf32> -> vector<16x32xf32>
    %c0_57 = arith.constant 0 : index
    %c0_58 = arith.constant 0 : index
    %c0_59 = arith.constant 0 : index
    %128 = vector.load %arg9[%c0_57, %c0_58, %c0_59] : memref<2x1x32xf32, #tpu.memory_space<vmem>>, vector<1x1x32xf32>
    %129 = vector.shape_cast %128 : vector<1x1x32xf32> to vector<1x32xf32>
    %130 = vector.broadcast %129 : vector<1x32xf32> to vector<16x32xf32>
    %131 = arith.addf %127, %130 : vector<16x32xf32>
    %132 = arith.addf %24, %131 : vector<16x32xf32>
    %c0_60 = arith.constant 0 : index
    %c0_61 = arith.constant 0 : index
    %c0_62 = arith.constant 0 : index
    %133 = vector.load %arg10[%c0_60, %c0_61, %c0_62] : memref<2x1x32xf32, #tpu.memory_space<vmem>>, vector<1x1x32xf32>
    %134 = vector.shape_cast %133 : vector<1x1x32xf32> to vector<1x32xf32>
    %c0_63 = arith.constant 0 : index
    %c0_64 = arith.constant 0 : index
    %c0_65 = arith.constant 0 : index
    %135 = vector.load %arg11[%c0_63, %c0_64, %c0_65] : memref<2x1x32xf32, #tpu.memory_space<vmem>>, vector<1x1x32xf32>
    %136 = vector.shape_cast %135 : vector<1x1x32xf32> to vector<1x32xf32>
    %137 = vector.shape_cast %132 : vector<16x32xf32> to vector<2x8x32xf32>
    %cst_66 = arith.constant dense<0.000000e+00> : vector<2x32xf32>
    %138 = vector.multi_reduction <add>, %137, %cst_66 [1] : vector<2x8x32xf32> to vector<2x32xf32>
    %139 = vector.shape_cast %138 : vector<2x32xf32> to vector<2x1x32xf32>
    %cst_67 = arith.constant 8.000000e+00 : f32
    %140 = vector.broadcast %cst_67 : f32 to vector<2x1x32xf32>
    %141 = arith.divf %139, %140 : vector<2x1x32xf32>
    %142 = vector.broadcast %141 : vector<2x1x32xf32> to vector<2x8x32xf32>
    %143 = arith.subf %137, %142 : vector<2x8x32xf32>
    %144 = arith.mulf %143, %143 : vector<2x8x32xf32>
    %cst_68 = arith.constant dense<0.000000e+00> : vector<2x32xf32>
    %145 = vector.multi_reduction <add>, %144, %cst_68 [1] : vector<2x8x32xf32> to vector<2x32xf32>
    %146 = vector.shape_cast %145 : vector<2x32xf32> to vector<2x1x32xf32>
    %cst_69 = arith.constant 8.000000e+00 : f32
    %147 = vector.broadcast %cst_69 : f32 to vector<2x1x32xf32>
    %148 = arith.divf %146, %147 : vector<2x1x32xf32>
    %cst_70 = arith.constant 9.99999974E-6 : f32
    %149 = vector.broadcast %cst_70 : f32 to vector<2x1x32xf32>
    %150 = arith.addf %148, %149 : vector<2x1x32xf32>
    %151 = math.rsqrt %150 : vector<2x1x32xf32>
    %152 = vector.broadcast %151 : vector<2x1x32xf32> to vector<2x8x32xf32>
    %153 = arith.mulf %143, %152 : vector<2x8x32xf32>
    %154 = vector.shape_cast %134 : vector<1x32xf32> to vector<1x1x32xf32>
    %155 = vector.broadcast %154 : vector<1x1x32xf32> to vector<2x8x32xf32>
    %156 = arith.mulf %153, %155 : vector<2x8x32xf32>
    %157 = vector.shape_cast %136 : vector<1x32xf32> to vector<1x1x32xf32>
    %158 = vector.broadcast %157 : vector<1x1x32xf32> to vector<2x8x32xf32>
    %159 = arith.addf %156, %158 : vector<2x8x32xf32>
    %160 = vector.shape_cast %159 : vector<2x8x32xf32> to vector<16x32xf32>
    %c0_71 = arith.constant 0 : index
    %c0_72 = arith.constant 0 : index
    %c0_73 = arith.constant 0 : index
    %161 = vector.load %arg12[%c0_71, %c0_72, %c0_73] : memref<2x32x64xf32, #tpu.memory_space<vmem>>, vector<1x32x64xf32>
    %162 = vector.shape_cast %161 : vector<1x32x64xf32> to vector<32x64xf32>
    %cst_74 = arith.constant dense<0.000000e+00> : vector<16x64xf32>
    %163 = tpu.matmul %160, %162, %cst_74 {dimension_numbers = #tpu.dot_dimension_numbers<[1], [0], [0], [1], [0, 0, 1, 1], [], []>} : vector<16x32xf32>, vector<32x64xf32>, vector<16x64xf32> -> vector<16x64xf32>
    %c0_75 = arith.constant 0 : index
    %c0_76 = arith.constant 0 : index
    %c0_77 = arith.constant 0 : index
    %164 = vector.load %arg13[%c0_75, %c0_76, %c0_77] : memref<2x1x64xf32, #tpu.memory_space<vmem>>, vector<1x1x64xf32>
    %165 = vector.shape_cast %164 : vector<1x1x64xf32> to vector<1x64xf32>
    %166 = vector.broadcast %165 : vector<1x64xf32> to vector<16x64xf32>
    %167 = arith.addf %163, %166 : vector<16x64xf32>
    %cst_78 = arith.constant 0.000000e+00 : f32
    %168 = vector.broadcast %cst_78 : f32 to vector<16x64xf32>
    %169 = arith.maximumf %167, %168 : vector<16x64xf32>
    %c0_79 = arith.constant 0 : index
    %c0_80 = arith.constant 0 : index
    %c0_81 = arith.constant 0 : index
    %170 = vector.load %arg14[%c0_79, %c0_80, %c0_81] : memref<2x64x32xf32, #tpu.memory_space<vmem>>, vector<1x64x32xf32>
    %171 = vector.shape_cast %170 : vector<1x64x32xf32> to vector<64x32xf32>
    %cst_82 = arith.constant dense<0.000000e+00> : vector<16x32xf32>
    %172 = tpu.matmul %169, %171, %cst_82 {dimension_numbers = #tpu.dot_dimension_numbers<[1], [0], [0], [1], [0, 0, 1, 1], [], []>} : vector<16x64xf32>, vector<64x32xf32>, vector<16x32xf32> -> vector<16x32xf32>
    %c0_83 = arith.constant 0 : index
    %c0_84 = arith.constant 0 : index
    %c0_85 = arith.constant 0 : index
    %173 = vector.load %arg15[%c0_83, %c0_84, %c0_85] : memref<2x1x32xf32, #tpu.memory_space<vmem>>, vector<1x1x32xf32>
    %174 = vector.shape_cast %173 : vector<1x1x32xf32> to vector<1x32xf32>
    %175 = vector.broadcast %174 : vector<1x32xf32> to vector<16x32xf32>
    %176 = arith.addf %172, %175 : vector<16x32xf32>
    %177 = arith.addf %160, %176 : vector<16x32xf32>
    %c0_86 = arith.constant 0 : index
    %c0_87 = arith.constant 0 : index
    %c0_88 = arith.constant 0 : index
    %178 = vector.load %arg16[%c0_86, %c0_87, %c0_88] : memref<2x1x32xf32, #tpu.memory_space<vmem>>, vector<1x1x32xf32>
    %179 = vector.shape_cast %178 : vector<1x1x32xf32> to vector<1x32xf32>
    %c0_89 = arith.constant 0 : index
    %c0_90 = arith.constant 0 : index
    %c0_91 = arith.constant 0 : index
    %180 = vector.load %arg17[%c0_89, %c0_90, %c0_91] : memref<2x1x32xf32, #tpu.memory_space<vmem>>, vector<1x1x32xf32>
    %181 = vector.shape_cast %180 : vector<1x1x32xf32> to vector<1x32xf32>
    %182 = vector.shape_cast %177 : vector<16x32xf32> to vector<2x8x32xf32>
    %cst_92 = arith.constant dense<0.000000e+00> : vector<2x32xf32>
    %183 = vector.multi_reduction <add>, %182, %cst_92 [1] : vector<2x8x32xf32> to vector<2x32xf32>
    %184 = vector.shape_cast %183 : vector<2x32xf32> to vector<2x1x32xf32>
    %cst_93 = arith.constant 8.000000e+00 : f32
    %185 = vector.broadcast %cst_93 : f32 to vector<2x1x32xf32>
    %186 = arith.divf %184, %185 : vector<2x1x32xf32>
    %187 = vector.broadcast %186 : vector<2x1x32xf32> to vector<2x8x32xf32>
    %188 = arith.subf %182, %187 : vector<2x8x32xf32>
    %189 = arith.mulf %188, %188 : vector<2x8x32xf32>
    %cst_94 = arith.constant dense<0.000000e+00> : vector<2x32xf32>
    %190 = vector.multi_reduction <add>, %189, %cst_94 [1] : vector<2x8x32xf32> to vector<2x32xf32>
    %191 = vector.shape_cast %190 : vector<2x32xf32> to vector<2x1x32xf32>
    %cst_95 = arith.constant 8.000000e+00 : f32
    %192 = vector.broadcast %cst_95 : f32 to vector<2x1x32xf32>
    %193 = arith.divf %191, %192 : vector<2x1x32xf32>
    %cst_96 = arith.constant 9.99999974E-6 : f32
    %194 = vector.broadcast %cst_96 : f32 to vector<2x1x32xf32>
    %195 = arith.addf %193, %194 : vector<2x1x32xf32>
    %196 = math.rsqrt %195 : vector<2x1x32xf32>
    %197 = vector.broadcast %196 : vector<2x1x32xf32> to vector<2x8x32xf32>
    %198 = arith.mulf %188, %197 : vector<2x8x32xf32>
    %199 = vector.shape_cast %179 : vector<1x32xf32> to vector<1x1x32xf32>
    %200 = vector.broadcast %199 : vector<1x1x32xf32> to vector<2x8x32xf32>
    %201 = arith.mulf %198, %200 : vector<2x8x32xf32>
    %202 = vector.shape_cast %181 : vector<1x32xf32> to vector<1x1x32xf32>
    %203 = vector.broadcast %202 : vector<1x1x32xf32> to vector<2x8x32xf32>
    %204 = arith.addf %201, %203 : vector<2x8x32xf32>
    %205 = vector.shape_cast %204 : vector<2x8x32xf32> to vector<16x32xf32>
    %c1 = arith.constant 1 : index
    %c0_97 = arith.constant 0 : index
    %c0_98 = arith.constant 0 : index
    %206 = vector.load %arg7[%c1, %c0_97, %c0_98] : memref<2x32x96xf32, #tpu.memory_space<vmem>>, vector<1x32x96xf32>
    %207 = vector.shape_cast %206 : vector<1x32x96xf32> to vector<32x96xf32>
    %cst_99 = arith.constant dense<0.000000e+00> : vector<16x96xf32>
    %208 = tpu.matmul %205, %207, %cst_99 {dimension_numbers = #tpu.dot_dimension_numbers<[1], [0], [0], [1], [0, 0, 1, 1], [], []>} : vector<16x32xf32>, vector<32x96xf32>, vector<16x96xf32> -> vector<16x96xf32>
    %209 = vector.shape_cast %208 : vector<16x96xf32> to vector<2x8x96xf32>
    %210 = vector.extract_strided_slice %209 {offsets = [0, 0, 0], sizes = [2, 8, 32], strides = [1, 1, 1]} : vector<2x8x96xf32> to vector<2x8x32xf32>
    %211 = vector.extract_strided_slice %209 {offsets = [0, 0, 32], sizes = [2, 8, 32], strides = [1, 1, 1]} : vector<2x8x96xf32> to vector<2x8x32xf32>
    %212 = vector.extract_strided_slice %209 {offsets = [0, 0, 64], sizes = [2, 8, 32], strides = [1, 1, 1]} : vector<2x8x96xf32> to vector<2x8x32xf32>
    %213 = vector.extract_strided_slice %210 {offsets = [0, 0, 0], sizes = [2, 8, 8], strides = [1, 1, 1]} : vector<2x8x32xf32> to vector<2x8x8xf32>
    %214 = vector.extract_strided_slice %211 {offsets = [0, 0, 0], sizes = [2, 8, 8], strides = [1, 1, 1]} : vector<2x8x32xf32> to vector<2x8x8xf32>
    %215 = vector.extract_strided_slice %212 {offsets = [0, 0, 0], sizes = [2, 8, 8], strides = [1, 1, 1]} : vector<2x8x32xf32> to vector<2x8x8xf32>
    "tpu.trace_start"() <{level = 10 : i32, message = "bqd,bkd->bqk"}> : () -> ()
    %cst_100 = arith.constant dense<0.000000e+00> : vector<2x8x8xf32>
    %216 = tpu.matmul %213, %214, %cst_100 {dimension_numbers = #tpu.dot_dimension_numbers<[2], [2], [1], [1], [0, 0, 0, 1, 1, 1], [0], [0]>} : vector<2x8x8xf32>, vector<2x8x8xf32>, vector<2x8x8xf32> -> vector<2x8x8xf32>
    "tpu.trace_stop"() : () -> ()
    %cst_101 = arith.constant 0.353553385 : f32
    %217 = vector.broadcast %cst_101 : f32 to vector<2x8x8xf32>
    %218 = arith.mulf %216, %217 : vector<2x8x8xf32>
    %cst_102 = arith.constant dense<0xFF800000> : vector<2x8xf32>
    %219 = vector.multi_reduction <maximumf>, %218, %cst_102 [2] : vector<2x8x8xf32> to vector<2x8xf32>
    %220 = vector.shape_cast %219 : vector<2x8xf32> to vector<2x8x1xf32>
    %cst_103 = arith.constant -1.000000e+30 : f32
    %221 = vector.broadcast %cst_103 : f32 to vector<2x8x1xf32>
    %222 = arith.maximumf %220, %221 : vector<2x8x1xf32>
    %223 = vector.broadcast %222 : vector<2x8x1xf32> to vector<2x8x8xf32>
    %224 = arith.subf %218, %223 : vector<2x8x8xf32>
    %225 = math.exp %224 : vector<2x8x8xf32>
    %cst_104 = arith.constant dense<0.000000e+00> : vector<2x8xf32>
    %226 = vector.multi_reduction <add>, %225, %cst_104 [2] : vector<2x8x8xf32> to vector<2x8xf32>
    %227 = vector.shape_cast %226 : vector<2x8xf32> to vector<2x8x1xf32>
    %cst_105 = arith.constant 1.000000e-30 : f32
    %228 = vector.broadcast %cst_105 : f32 to vector<2x8x1xf32>
    %229 = arith.maximumf %227, %228 : vector<2x8x1xf32>
    %230 = tpu.reciprocal %229 {approx = true} : vector<2x8x1xf32> -> vector<2x8x1xf32>
    %231 = vector.broadcast %230 : vector<2x8x1xf32> to vector<2x8x8xf32>
    %232 = arith.mulf %225, %231 : vector<2x8x8xf32>
    "tpu.trace_start"() <{level = 10 : i32, message = "bqk,bkd->bqd"}> : () -> ()
    %cst_106 = arith.constant dense<0.000000e+00> : vector<2x8x8xf32>
    %233 = tpu.matmul %232, %215, %cst_106 {dimension_numbers = #tpu.dot_dimension_numbers<[2], [1], [1], [2], [0, 0, 0, 1, 1, 2], [0], [0]>} : vector<2x8x8xf32>, vector<2x8x8xf32>, vector<2x8x8xf32> -> vector<2x8x8xf32>
    "tpu.trace_stop"() : () -> ()
    %234 = vector.shape_cast %233 : vector<2x8x8xf32> to vector<16x8xf32>
    %c0_107 = arith.constant 0 : index
    %c0_108 = arith.constant 0 : index
    %235 = vector.load %arg20[%c0_107, %c0_108] : memref<16x32xf32, #tpu.memory_space<vmem>>, vector<16x8xf32>
    tpu.vector_store %arg20[%c0_107, %c0_108], %234 {strides = array<i32>} : memref<16x32xf32, #tpu.memory_space<vmem>>, vector<16x8xf32>,
    %236 = vector.extract_strided_slice %210 {offsets = [0, 0, 8], sizes = [2, 8, 8], strides = [1, 1, 1]} : vector<2x8x32xf32> to vector<2x8x8xf32>
    %237 = vector.extract_strided_slice %211 {offsets = [0, 0, 8], sizes = [2, 8, 8], strides = [1, 1, 1]} : vector<2x8x32xf32> to vector<2x8x8xf32>
    %238 = vector.extract_strided_slice %212 {offsets = [0, 0, 8], sizes = [2, 8, 8], strides = [1, 1, 1]} : vector<2x8x32xf32> to vector<2x8x8xf32>
    "tpu.trace_start"() <{level = 10 : i32, message = "bqd,bkd->bqk"}> : () -> ()
    %cst_109 = arith.constant dense<0.000000e+00> : vector<2x8x8xf32>
    %239 = tpu.matmul %236, %237, %cst_109 {dimension_numbers = #tpu.dot_dimension_numbers<[2], [2], [1], [1], [0, 0, 0, 1, 1, 1], [0], [0]>} : vector<2x8x8xf32>, vector<2x8x8xf32>, vector<2x8x8xf32> -> vector<2x8x8xf32>
    "tpu.trace_stop"() : () -> ()
    %cst_110 = arith.constant 0.353553385 : f32
    %240 = vector.broadcast %cst_110 : f32 to vector<2x8x8xf32>
    %241 = arith.mulf %239, %240 : vector<2x8x8xf32>
    %cst_111 = arith.constant dense<0xFF800000> : vector<2x8xf32>
    %242 = vector.multi_reduction <maximumf>, %241, %cst_111 [2] : vector<2x8x8xf32> to vector<2x8xf32>
    %243 = vector.shape_cast %242 : vector<2x8xf32> to vector<2x8x1xf32>
    %cst_112 = arith.constant -1.000000e+30 : f32
    %244 = vector.broadcast %cst_112 : f32 to vector<2x8x1xf32>
    %245 = arith.maximumf %243, %244 : vector<2x8x1xf32>
    %246 = vector.broadcast %245 : vector<2x8x1xf32> to vector<2x8x8xf32>
    %247 = arith.subf %241, %246 : vector<2x8x8xf32>
    %248 = math.exp %247 : vector<2x8x8xf32>
    %cst_113 = arith.constant dense<0.000000e+00> : vector<2x8xf32>
    %249 = vector.multi_reduction <add>, %248, %cst_113 [2] : vector<2x8x8xf32> to vector<2x8xf32>
    %250 = vector.shape_cast %249 : vector<2x8xf32> to vector<2x8x1xf32>
    %cst_114 = arith.constant 1.000000e-30 : f32
    %251 = vector.broadcast %cst_114 : f32 to vector<2x8x1xf32>
    %252 = arith.maximumf %250, %251 : vector<2x8x1xf32>
    %253 = tpu.reciprocal %252 {approx = true} : vector<2x8x1xf32> -> vector<2x8x1xf32>
    %254 = vector.broadcast %253 : vector<2x8x1xf32> to vector<2x8x8xf32>
    %255 = arith.mulf %248, %254 : vector<2x8x8xf32>
    "tpu.trace_start"() <{level = 10 : i32, message = "bqk,bkd->bqd"}> : () -> ()
    %cst_115 = arith.constant dense<0.000000e+00> : vector<2x8x8xf32>
    %256 = tpu.matmul %255, %238, %cst_115 {dimension_numbers = #tpu.dot_dimension_numbers<[2], [1], [1], [2], [0, 0, 0, 1, 1, 2], [0], [0]>} : vector<2x8x8xf32>, vector<2x8x8xf32>, vector<2x8x8xf32> -> vector<2x8x8xf32>
    "tpu.trace_stop"() : () -> ()
    %257 = vector.shape_cast %256 : vector<2x8x8xf32> to vector<16x8xf32>
    %c0_116 = arith.constant 0 : index
    %c8_117 = arith.constant 8 : index
    %258 = vector.load %arg20[%c0_116, %c8_117] : memref<16x32xf32, #tpu.memory_space<vmem>>, vector<16x8xf32>
    tpu.vector_store %arg20[%c0_116, %c8_117], %257 {strides = array<i32>} : memref<16x32xf32, #tpu.memory_space<vmem>>, vector<16x8xf32>,
    %259 = vector.extract_strided_slice %210 {offsets = [0, 0, 16], sizes = [2, 8, 8], strides = [1, 1, 1]} : vector<2x8x32xf32> to vector<2x8x8xf32>
    %260 = vector.extract_strided_slice %211 {offsets = [0, 0, 16], sizes = [2, 8, 8], strides = [1, 1, 1]} : vector<2x8x32xf32> to vector<2x8x8xf32>
    %261 = vector.extract_strided_slice %212 {offsets = [0, 0, 16], sizes = [2, 8, 8], strides = [1, 1, 1]} : vector<2x8x32xf32> to vector<2x8x8xf32>
    "tpu.trace_start"() <{level = 10 : i32, message = "bqd,bkd->bqk"}> : () -> ()
    %cst_118 = arith.constant dense<0.000000e+00> : vector<2x8x8xf32>
    %262 = tpu.matmul %259, %260, %cst_118 {dimension_numbers = #tpu.dot_dimension_numbers<[2], [2], [1], [1], [0, 0, 0, 1, 1, 1], [0], [0]>} : vector<2x8x8xf32>, vector<2x8x8xf32>, vector<2x8x8xf32> -> vector<2x8x8xf32>
    "tpu.trace_stop"() : () -> ()
    %cst_119 = arith.constant 0.353553385 : f32
    %263 = vector.broadcast %cst_119 : f32 to vector<2x8x8xf32>
    %264 = arith.mulf %262, %263 : vector<2x8x8xf32>
    %cst_120 = arith.constant dense<0xFF800000> : vector<2x8xf32>
    %265 = vector.multi_reduction <maximumf>, %264, %cst_120 [2] : vector<2x8x8xf32> to vector<2x8xf32>
    %266 = vector.shape_cast %265 : vector<2x8xf32> to vector<2x8x1xf32>
    %cst_121 = arith.constant -1.000000e+30 : f32
    %267 = vector.broadcast %cst_121 : f32 to vector<2x8x1xf32>
    %268 = arith.maximumf %266, %267 : vector<2x8x1xf32>
    %269 = vector.broadcast %268 : vector<2x8x1xf32> to vector<2x8x8xf32>
    %270 = arith.subf %264, %269 : vector<2x8x8xf32>
    %271 = math.exp %270 : vector<2x8x8xf32>
    %cst_122 = arith.constant dense<0.000000e+00> : vector<2x8xf32>
    %272 = vector.multi_reduction <add>, %271, %cst_122 [2] : vector<2x8x8xf32> to vector<2x8xf32>
    %273 = vector.shape_cast %272 : vector<2x8xf32> to vector<2x8x1xf32>
    %cst_123 = arith.constant 1.000000e-30 : f32
    %274 = vector.broadcast %cst_123 : f32 to vector<2x8x1xf32>
    %275 = arith.maximumf %273, %274 : vector<2x8x1xf32>
    %276 = tpu.reciprocal %275 {approx = true} : vector<2x8x1xf32> -> vector<2x8x1xf32>
    %277 = vector.broadcast %276 : vector<2x8x1xf32> to vector<2x8x8xf32>
    %278 = arith.mulf %271, %277 : vector<2x8x8xf32>
    "tpu.trace_start"() <{level = 10 : i32, message = "bqk,bkd->bqd"}> : () -> ()
    %cst_124 = arith.constant dense<0.000000e+00> : vector<2x8x8xf32>
    %279 = tpu.matmul %278, %261, %cst_124 {dimension_numbers = #tpu.dot_dimension_numbers<[2], [1], [1], [2], [0, 0, 0, 1, 1, 2], [0], [0]>} : vector<2x8x8xf32>, vector<2x8x8xf32>, vector<2x8x8xf32> -> vector<2x8x8xf32>
    "tpu.trace_stop"() : () -> ()
    %280 = vector.shape_cast %279 : vector<2x8x8xf32> to vector<16x8xf32>
    %c0_125 = arith.constant 0 : index
    %c16_126 = arith.constant 16 : index
    %281 = vector.load %arg20[%c0_125, %c16_126] : memref<16x32xf32, #tpu.memory_space<vmem>>, vector<16x8xf32>
    tpu.vector_store %arg20[%c0_125, %c16_126], %280 {strides = array<i32>} : memref<16x32xf32, #tpu.memory_space<vmem>>, vector<16x8xf32>,
    %282 = vector.extract_strided_slice %210 {offsets = [0, 0, 24], sizes = [2, 8, 8], strides = [1, 1, 1]} : vector<2x8x32xf32> to vector<2x8x8xf32>
    %283 = vector.extract_strided_slice %211 {offsets = [0, 0, 24], sizes = [2, 8, 8], strides = [1, 1, 1]} : vector<2x8x32xf32> to vector<2x8x8xf32>
    %284 = vector.extract_strided_slice %212 {offsets = [0, 0, 24], sizes = [2, 8, 8], strides = [1, 1, 1]} : vector<2x8x32xf32> to vector<2x8x8xf32>
    "tpu.trace_start"() <{level = 10 : i32, message = "bqd,bkd->bqk"}> : () -> ()
    %cst_127 = arith.constant dense<0.000000e+00> : vector<2x8x8xf32>
    %285 = tpu.matmul %282, %283, %cst_127 {dimension_numbers = #tpu.dot_dimension_numbers<[2], [2], [1], [1], [0, 0, 0, 1, 1, 1], [0], [0]>} : vector<2x8x8xf32>, vector<2x8x8xf32>, vector<2x8x8xf32> -> vector<2x8x8xf32>
    "tpu.trace_stop"() : () -> ()
    %cst_128 = arith.constant 0.353553385 : f32
    %286 = vector.broadcast %cst_128 : f32 to vector<2x8x8xf32>
    %287 = arith.mulf %285, %286 : vector<2x8x8xf32>
    %cst_129 = arith.constant dense<0xFF800000> : vector<2x8xf32>
    %288 = vector.multi_reduction <maximumf>, %287, %cst_129 [2] : vector<2x8x8xf32> to vector<2x8xf32>
    %289 = vector.shape_cast %288 : vector<2x8xf32> to vector<2x8x1xf32>
    %cst_130 = arith.constant -1.000000e+30 : f32
    %290 = vector.broadcast %cst_130 : f32 to vector<2x8x1xf32>
    %291 = arith.maximumf %289, %290 : vector<2x8x1xf32>
    %292 = vector.broadcast %291 : vector<2x8x1xf32> to vector<2x8x8xf32>
    %293 = arith.subf %287, %292 : vector<2x8x8xf32>
    %294 = math.exp %293 : vector<2x8x8xf32>
    %cst_131 = arith.constant dense<0.000000e+00> : vector<2x8xf32>
    %295 = vector.multi_reduction <add>, %294, %cst_131 [2] : vector<2x8x8xf32> to vector<2x8xf32>
    %296 = vector.shape_cast %295 : vector<2x8xf32> to vector<2x8x1xf32>
    %cst_132 = arith.constant 1.000000e-30 : f32
    %297 = vector.broadcast %cst_132 : f32 to vector<2x8x1xf32>
    %298 = arith.maximumf %296, %297 : vector<2x8x1xf32>
    %299 = tpu.reciprocal %298 {approx = true} : vector<2x8x1xf32> -> vector<2x8x1xf32>
    %300 = vector.broadcast %299 : vector<2x8x1xf32> to vector<2x8x8xf32>
    %301 = arith.mulf %294, %300 : vector<2x8x8xf32>
    "tpu.trace_start"() <{level = 10 : i32, message = "bqk,bkd->bqd"}> : () -> ()
    %cst_133 = arith.constant dense<0.000000e+00> : vector<2x8x8xf32>
    %302 = tpu.matmul %301, %284, %cst_133 {dimension_numbers = #tpu.dot_dimension_numbers<[2], [1], [1], [2], [0, 0, 0, 1, 1, 2], [0], [0]>} : vector<2x8x8xf32>, vector<2x8x8xf32>, vector<2x8x8xf32> -> vector<2x8x8xf32>
    "tpu.trace_stop"() : () -> ()
    %303 = vector.shape_cast %302 : vector<2x8x8xf32> to vector<16x8xf32>
    %c0_134 = arith.constant 0 : index
    %c24_135 = arith.constant 24 : index
    %304 = vector.load %arg20[%c0_134, %c24_135] : memref<16x32xf32, #tpu.memory_space<vmem>>, vector<16x8xf32>
    tpu.vector_store %arg20[%c0_134, %c24_135], %303 {strides = array<i32>} : memref<16x32xf32, #tpu.memory_space<vmem>>, vector<16x8xf32>,
    %c0_136 = arith.constant 0 : index
    %c0_137 = arith.constant 0 : index
    %305 = vector.load %arg20[%c0_136, %c0_137] : memref<16x32xf32, #tpu.memory_space<vmem>>, vector<16x32xf32>
    %c1_138 = arith.constant 1 : index
    %c0_139 = arith.constant 0 : index
    %c0_140 = arith.constant 0 : index
    %306 = vector.load %arg8[%c1_138, %c0_139, %c0_140] : memref<2x32x32xf32, #tpu.memory_space<vmem>>, vector<1x32x32xf32>
    %307 = vector.shape_cast %306 : vector<1x32x32xf32> to vector<32x32xf32>
    %cst_141 = arith.constant dense<0.000000e+00> : vector<16x32xf32>
    %308 = tpu.matmul %305, %307, %cst_141 {dimension_numbers = #tpu.dot_dimension_numbers<[1], [0], [0], [1], [0, 0, 1, 1], [], []>} : vector<16x32xf32>, vector<32x32xf32>, vector<16x32xf32> -> vector<16x32xf32>
    %c1_142 = arith.constant 1 : index
    %c0_143 = arith.constant 0 : index
    %c0_144 = arith.constant 0 : index
    %309 = vector.load %arg9[%c1_142, %c0_143, %c0_144] : memref<2x1x32xf32, #tpu.memory_space<vmem>>, vector<1x1x32xf32>
    %310 = vector.shape_cast %309 : vector<1x1x32xf32> to vector<1x32xf32>
    %311 = vector.broadcast %310 : vector<1x32xf32> to vector<16x32xf32>
    %312 = arith.addf %308, %311 : vector<16x32xf32>
    %313 = arith.addf %205, %312 : vector<16x32xf32>
    %c1_145 = arith.constant 1 : index
    %c0_146 = arith.constant 0 : index
    %c0_147 = arith.constant 0 : index
    %314 = vector.load %arg10[%c1_145, %c0_146, %c0_147] : memref<2x1x32xf32, #tpu.memory_space<vmem>>, vector<1x1x32xf32>
    %315 = vector.shape_cast %314 : vector<1x1x32xf32> to vector<1x32xf32>
    %c1_148 = arith.constant 1 : index
    %c0_149 = arith.constant 0 : index
    %c0_150 = arith.constant 0 : index
    %316 = vector.load %arg11[%c1_148, %c0_149, %c0_150] : memref<2x1x32xf32, #tpu.memory_space<vmem>>, vector<1x1x32xf32>
    %317 = vector.shape_cast %316 : vector<1x1x32xf32> to vector<1x32xf32>
    %318 = vector.shape_cast %313 : vector<16x32xf32> to vector<2x8x32xf32>
    %cst_151 = arith.constant dense<0.000000e+00> : vector<2x32xf32>
    %319 = vector.multi_reduction <add>, %318, %cst_151 [1] : vector<2x8x32xf32> to vector<2x32xf32>
    %320 = vector.shape_cast %319 : vector<2x32xf32> to vector<2x1x32xf32>
    %cst_152 = arith.constant 8.000000e+00 : f32
    %321 = vector.broadcast %cst_152 : f32 to vector<2x1x32xf32>
    %322 = arith.divf %320, %321 : vector<2x1x32xf32>
    %323 = vector.broadcast %322 : vector<2x1x32xf32> to vector<2x8x32xf32>
    %324 = arith.subf %318, %323 : vector<2x8x32xf32>
    %325 = arith.mulf %324, %324 : vector<2x8x32xf32>
    %cst_153 = arith.constant dense<0.000000e+00> : vector<2x32xf32>
    %326 = vector.multi_reduction <add>, %325, %cst_153 [1] : vector<2x8x32xf32> to vector<2x32xf32>
    %327 = vector.shape_cast %326 : vector<2x32xf32> to vector<2x1x32xf32>
    %cst_154 = arith.constant 8.000000e+00 : f32
    %328 = vector.broadcast %cst_154 : f32 to vector<2x1x32xf32>
    %329 = arith.divf %327, %328 : vector<2x1x32xf32>
    %cst_155 = arith.constant 9.99999974E-6 : f32
    %330 = vector.broadcast %cst_155 : f32 to vector<2x1x32xf32>
    %331 = arith.addf %329, %330 : vector<2x1x32xf32>
    %332 = math.rsqrt %331 : vector<2x1x32xf32>
    %333 = vector.broadcast %332 : vector<2x1x32xf32> to vector<2x8x32xf32>
    %334 = arith.mulf %324, %333 : vector<2x8x32xf32>
    %335 = vector.shape_cast %315 : vector<1x32xf32> to vector<1x1x32xf32>
    %336 = vector.broadcast %335 : vector<1x1x32xf32> to vector<2x8x32xf32>
    %337 = arith.mulf %334, %336 : vector<2x8x32xf32>
    %338 = vector.shape_cast %317 : vector<1x32xf32> to vector<1x1x32xf32>
    %339 = vector.broadcast %338 : vector<1x1x32xf32> to vector<2x8x32xf32>
    %340 = arith.addf %337, %339 : vector<2x8x32xf32>
    %341 = vector.shape_cast %340 : vector<2x8x32xf32> to vector<16x32xf32>
    %c1_156 = arith.constant 1 : index
    %c0_157 = arith.constant 0 : index
    %c0_158 = arith.constant 0 : index
    %342 = vector.load %arg12[%c1_156, %c0_157, %c0_158] : memref<2x32x64xf32, #tpu.memory_space<vmem>>, vector<1x32x64xf32>
    %343 = vector.shape_cast %342 : vector<1x32x64xf32> to vector<32x64xf32>
    %cst_159 = arith.constant dense<0.000000e+00> : vector<16x64xf32>
    %344 = tpu.matmul %341, %343, %cst_159 {dimension_numbers = #tpu.dot_dimension_numbers<[1], [0], [0], [1], [0, 0, 1, 1], [], []>} : vector<16x32xf32>, vector<32x64xf32>, vector<16x64xf32> -> vector<16x64xf32>
    %c1_160 = arith.constant 1 : index
    %c0_161 = arith.constant 0 : index
    %c0_162 = arith.constant 0 : index
    %345 = vector.load %arg13[%c1_160, %c0_161, %c0_162] : memref<2x1x64xf32, #tpu.memory_space<vmem>>, vector<1x1x64xf32>
    %346 = vector.shape_cast %345 : vector<1x1x64xf32> to vector<1x64xf32>
    %347 = vector.broadcast %346 : vector<1x64xf32> to vector<16x64xf32>
    %348 = arith.addf %344, %347 : vector<16x64xf32>
    %cst_163 = arith.constant 0.000000e+00 : f32
    %349 = vector.broadcast %cst_163 : f32 to vector<16x64xf32>
    %350 = arith.maximumf %348, %349 : vector<16x64xf32>
    %c1_164 = arith.constant 1 : index
    %c0_165 = arith.constant 0 : index
    %c0_166 = arith.constant 0 : index
    %351 = vector.load %arg14[%c1_164, %c0_165, %c0_166] : memref<2x64x32xf32, #tpu.memory_space<vmem>>, vector<1x64x32xf32>
    %352 = vector.shape_cast %351 : vector<1x64x32xf32> to vector<64x32xf32>
    %cst_167 = arith.constant dense<0.000000e+00> : vector<16x32xf32>
    %353 = tpu.matmul %350, %352, %cst_167 {dimension_numbers = #tpu.dot_dimension_numbers<[1], [0], [0], [1], [0, 0, 1, 1], [], []>} : vector<16x64xf32>, vector<64x32xf32>, vector<16x32xf32> -> vector<16x32xf32>
    %c1_168 = arith.constant 1 : index
    %c0_169 = arith.constant 0 : index
    %c0_170 = arith.constant 0 : index
    %354 = vector.load %arg15[%c1_168, %c0_169, %c0_170] : memref<2x1x32xf32, #tpu.memory_space<vmem>>, vector<1x1x32xf32>
    %355 = vector.shape_cast %354 : vector<1x1x32xf32> to vector<1x32xf32>
    %356 = vector.broadcast %355 : vector<1x32xf32> to vector<16x32xf32>
    %357 = arith.addf %353, %356 : vector<16x32xf32>
    %358 = arith.addf %341, %357 : vector<16x32xf32>
    %c1_171 = arith.constant 1 : index
    %c0_172 = arith.constant 0 : index
    %c0_173 = arith.constant 0 : index
    %359 = vector.load %arg16[%c1_171, %c0_172, %c0_173] : memref<2x1x32xf32, #tpu.memory_space<vmem>>, vector<1x1x32xf32>
    %360 = vector.shape_cast %359 : vector<1x1x32xf32> to vector<1x32xf32>
    %c1_174 = arith.constant 1 : index
    %c0_175 = arith.constant 0 : index
    %c0_176 = arith.constant 0 : index
    %361 = vector.load %arg17[%c1_174, %c0_175, %c0_176] : memref<2x1x32xf32, #tpu.memory_space<vmem>>, vector<1x1x32xf32>
    %362 = vector.shape_cast %361 : vector<1x1x32xf32> to vector<1x32xf32>
    %363 = vector.shape_cast %358 : vector<16x32xf32> to vector<2x8x32xf32>
    %cst_177 = arith.constant dense<0.000000e+00> : vector<2x32xf32>
    %364 = vector.multi_reduction <add>, %363, %cst_177 [1] : vector<2x8x32xf32> to vector<2x32xf32>
    %365 = vector.shape_cast %364 : vector<2x32xf32> to vector<2x1x32xf32>
    %cst_178 = arith.constant 8.000000e+00 : f32
    %366 = vector.broadcast %cst_178 : f32 to vector<2x1x32xf32>
    %367 = arith.divf %365, %366 : vector<2x1x32xf32>
    %368 = vector.broadcast %367 : vector<2x1x32xf32> to vector<2x8x32xf32>
    %369 = arith.subf %363, %368 : vector<2x8x32xf32>
    %370 = arith.mulf %369, %369 : vector<2x8x32xf32>
    %cst_179 = arith.constant dense<0.000000e+00> : vector<2x32xf32>
    %371 = vector.multi_reduction <add>, %370, %cst_179 [1] : vector<2x8x32xf32> to vector<2x32xf32>
    %372 = vector.shape_cast %371 : vector<2x32xf32> to vector<2x1x32xf32>
    %cst_180 = arith.constant 8.000000e+00 : f32
    %373 = vector.broadcast %cst_180 : f32 to vector<2x1x32xf32>
    %374 = arith.divf %372, %373 : vector<2x1x32xf32>
    %cst_181 = arith.constant 9.99999974E-6 : f32
    %375 = vector.broadcast %cst_181 : f32 to vector<2x1x32xf32>
    %376 = arith.addf %374, %375 : vector<2x1x32xf32>
    %377 = math.rsqrt %376 : vector<2x1x32xf32>
    %378 = vector.broadcast %377 : vector<2x1x32xf32> to vector<2x8x32xf32>
    %379 = arith.mulf %369, %378 : vector<2x8x32xf32>
    %380 = vector.shape_cast %360 : vector<1x32xf32> to vector<1x1x32xf32>
    %381 = vector.broadcast %380 : vector<1x1x32xf32> to vector<2x8x32xf32>
    %382 = arith.mulf %379, %381 : vector<2x8x32xf32>
    %383 = vector.shape_cast %362 : vector<1x32xf32> to vector<1x1x32xf32>
    %384 = vector.broadcast %383 : vector<1x1x32xf32> to vector<2x8x32xf32>
    %385 = arith.addf %382, %384 : vector<2x8x32xf32>
    %386 = vector.shape_cast %385 : vector<2x8x32xf32> to vector<16x32xf32>
    %c0_182 = arith.constant 0 : index
    %c0_183 = arith.constant 0 : index
    %387 = vector.load %arg18[%c0_182, %c0_183] : memref<32x64xf32, #tpu.memory_space<vmem>>, vector<32x64xf32>
    %cst_184 = arith.constant dense<0.000000e+00> : vector<16x64xf32>
    %388 = tpu.matmul %386, %387, %cst_184 {dimension_numbers = #tpu.dot_dimension_numbers<[1], [0], [0], [1], [0, 0, 1, 1], [], []>} : vector<16x32xf32>, vector<32x64xf32>, vector<16x64xf32> -> vector<16x64xf32>
    %389 = tpu.concatenate %386, %388 in 1 : vector<16x32xf32>, vector<16x64xf32> -> vector<16x96xf32>
    %390 = vector.shape_cast %389 : vector<16x96xf32> to vector<2x8x96xf32>
    %c0_185 = arith.constant 0 : index
    %c0_186 = arith.constant 0 : index
    %c0_187 = arith.constant 0 : index
    %391 = vector.load %arg19[%c0_185, %c0_186, %c0_187] : memref<2x8x96xf32, #tpu.memory_space<vmem>>, vector<2x8x96xf32>
    tpu.vector_store %arg19[%c0_185, %c0_186, %c0_187], %390 {strides = array<i32>} : memref<2x8x96xf32, #tpu.memory_space<vmem>>, vector<2x8x96xf32>,
    return
  }
  func.func @transform_0(%arg0: i32) -> (i32, i32, i32) {
    %c0_i32 = arith.constant 0 : i32
    %c0_i32_0 = arith.constant 0 : i32
    %c0_i32_1 = arith.constant 0 : i32
    return %arg0, %c0_i32, %c0_i32_0 : i32, i32, i32
  }
  func.func @transform_1(%arg0: i32) -> (i32, i32) {
    %c0_i32 = arith.constant 0 : i32
    %c0_i32_0 = arith.constant 0 : i32
    %c0_i32_1 = arith.constant 0 : i32
    return %c0_i32, %c0_i32_0 : i32, i32
  }
  func.func @transform_2(%arg0: i32) -> (i32, i32) {
    %c0_i32 = arith.constant 0 : i32
    %c0_i32_0 = arith.constant 0 : i32
    %c0_i32_1 = arith.constant 0 : i32
    return %c0_i32, %c0_i32_0 : i32, i32
  }
  func.func @transform_3(%arg0: i32) -> (i32, i32) {
    %c0_i32 = arith.constant 0 : i32
    %c0_i32_0 = arith.constant 0 : i32
    %c0_i32_1 = arith.constant 0 : i32
    return %c0_i32, %c0_i32_0 : i32, i32
  }
  func.func @transform_4(%arg0: i32) -> (i32, i32) {
    %c0_i32 = arith.constant 0 : i32
    %c0_i32_0 = arith.constant 0 : i32
    %c0_i32_1 = arith.constant 0 : i32
    return %c0_i32, %c0_i32_0 : i32, i32
  }
  func.func @transform_5(%arg0: i32) -> (i32, i32) {
    %c0_i32 = arith.constant 0 : i32
    %c0_i32_0 = arith.constant 0 : i32
    %c0_i32_1 = arith.constant 0 : i32
    return %c0_i32, %c0_i32_0 : i32, i32
  }
  func.func @transform_6(%arg0: i32) -> (i32, i32, i32) {
    %c0_i32 = arith.constant 0 : i32
    %c0_i32_0 = arith.constant 0 : i32
    %c0_i32_1 = arith.constant 0 : i32
    %c0_i32_2 = arith.constant 0 : i32
    return %c0_i32, %c0_i32_0, %c0_i32_1 : i32, i32, i32
  }
  func.func @transform_7(%arg0: i32) -> (i32, i32, i32) {
    %c0_i32 = arith.constant 0 : i32
    %c0_i32_0 = arith.constant 0 : i32
    %c0_i32_1 = arith.constant 0 : i32
    %c0_i32_2 = arith.constant 0 : i32
    return %c0_i32, %c0_i32_0, %c0_i32_1 : i32, i32, i32
  }
  func.func @transform_8(%arg0: i32) -> (i32, i32, i32) {
    %c0_i32 = arith.constant 0 : i32
    %c0_i32_0 = arith.constant 0 : i32
    %c0_i32_1 = arith.constant 0 : i32
    %c0_i32_2 = arith.constant 0 : i32
    return %c0_i32, %c0_i32_0, %c0_i32_1 : i32, i32, i32
  }
  func.func @transform_9(%arg0: i32) -> (i32, i32, i32) {
    %c0_i32 = arith.constant 0 : i32
    %c0_i32_0 = arith.constant 0 : i32
    %c0_i32_1 = arith.constant 0 : i32
    %c0_i32_2 = arith.constant 0 : i32
    return %c0_i32, %c0_i32_0, %c0_i32_1 : i32, i32, i32
  }
  func.func @transform_10(%arg0: i32) -> (i32, i32, i32) {
    %c0_i32 = arith.constant 0 : i32
    %c0_i32_0 = arith.constant 0 : i32
    %c0_i32_1 = arith.constant 0 : i32
    %c0_i32_2 = arith.constant 0 : i32
    return %c0_i32, %c0_i32_0, %c0_i32_1 : i32, i32, i32
  }
  func.func @transform_11(%arg0: i32) -> (i32, i32, i32) {
    %c0_i32 = arith.constant 0 : i32
    %c0_i32_0 = arith.constant 0 : i32
    %c0_i32_1 = arith.constant 0 : i32
    %c0_i32_2 = arith.constant 0 : i32
    return %c0_i32, %c0_i32_0, %c0_i32_1 : i32, i32, i32
  }
  func.func @transform_12(%arg0: i32) -> (i32, i32, i32) {
    %c0_i32 = arith.constant 0 : i32
    %c0_i32_0 = arith.constant 0 : i32
    %c0_i32_1 = arith.constant 0 : i32
    %c0_i32_2 = arith.constant 0 : i32
    return %c0_i32, %c0_i32_0, %c0_i32_1 : i32, i32, i32
  }
  func.func @transform_13(%arg0: i32) -> (i32, i32, i32) {
    %c0_i32 = arith.constant 0 : i32
    %c0_i32_0 = arith.constant 0 : i32
    %c0_i32_1 = arith.constant 0 : i32
    %c0_i32_2 = arith.constant 0 : i32
    return %c0_i32, %c0_i32_0, %c0_i32_1 : i32, i32, i32
  }
  func.func @transform_14(%arg0: i32) -> (i32, i32, i32) {
    %c0_i32 = arith.constant 0 : i32
    %c0_i32_0 = arith.constant 0 : i32
    %c0_i32_1 = arith.constant 0 : i32
    %c0_i32_2 = arith.constant 0 : i32
    return %c0_i32, %c0_i32_0, %c0_i32_1 : i32, i32, i32
  }
  func.func @transform_15(%arg0: i32) -> (i32, i32, i32) {
    %c0_i32 = arith.constant 0 : i32
    %c0_i32_0 = arith.constant 0 : i32
    %c0_i32_1 = arith.constant 0 : i32
    %c0_i32_2 = arith.constant 0 : i32
    return %c0_i32, %c0_i32_0, %c0_i32_1 : i32, i32, i32
  }
  func.func @transform_16(%arg0: i32) -> (i32, i32, i32) {
    %c0_i32 = arith.constant 0 : i32
    %c0_i32_0 = arith.constant 0 : i32
    %c0_i32_1 = arith.constant 0 : i32
    %c0_i32_2 = arith.constant 0 : i32
    return %c0_i32, %c0_i32_0, %c0_i32_1 : i32, i32, i32
  }
  func.func @transform_17(%arg0: i32) -> (i32, i32) {
    %c0_i32 = arith.constant 0 : i32
    %c0_i32_0 = arith.constant 0 : i32
    %c0_i32_1 = arith.constant 0 : i32
    return %c0_i32, %c0_i32_0 : i32, i32
  }
  func.func @transform_18(%arg0: i32) -> (i32, i32, i32) {
    %c0_i32 = arith.constant 0 : i32
    %c0_i32_0 = arith.constant 0 : i32
    %c0_i32_1 = arith.constant 0 : i32
    return %arg0, %c0_i32, %c0_i32_0 : i32, i32, i32
  }
}

</mosaic_0001>

<bundles_post_ra>
// kernel: tpu_custom_call.1
= control target key start
LH: loop header
LB: loop body
LE: loop exit
PB: predicated region body
PF: predicated region fallthrough
CT: control target
= control target key end

     0   :  { %s6682_s0 = inlined_call_operand.vmem [shape: f32[4,8,3], index: 0, kind: input, shape index: {}]   ;;  %s6683_s1 = inlined_call_operand.vmem [shape: f32[8,1], index: 1, kind: input, shape index: {}]   ;;  %s6684_s2 = inlined_call_operand.vmem [shape: f32[3,32], index: 2, kind: input, shape index: {}]   ;;  %s6685_s3 = inlined_call_operand.hbm [shape: f32[1,32], index: 3, kind: input, shape index: {}]   ;;  %s6686_s4 = inlined_call_operand.vmem [shape: f32[3,32], index: 4, kind: input, shape index: {}]   ;;  %s6687_s5 = inlined_call_operand.hbm [shape: f32[1,32], index: 5, kind: input, shape index: {}]   ;;  %s6688_s6 = inlined_call_operand.vmem [shape: f32[2,32,96], index: 6, kind: input, shape index: {}]   ;;  %s6689_s7 = inlined_call_operand.vmem [shape: f32[2,32,32], index: 7, kind: input, shape index: {}]   ;;  %s6690_s8 = inlined_call_operand.vmem [shape: f32[2,1,32], index: 8, kind: input, shape index: {}]   ;;  %s6691_s9 = inlined_call_operand.vmem [shape: f32[2,1,32], index: 9, kind: input, shape index: {}]   ;;  %s6692_s10 = inlined_call_operand.hbm [shape: f32[2,1,32], index: 10, kind: input, shape index: {}]   ;;  %s6693_s11 = inlined_call_operand.vmem [shape: f32[2,32,64], index: 11, kind: input, shape index: {}]   ;;  %s6694_s12 = inlined_call_operand.hbm [shape: f32[2,1,64], index: 12, kind: input, shape index: {}]   ;;  %s6695_s13 = inlined_call_operand.vmem [shape: f32[2,64,32], index: 13, kind: input, shape index: {}]   ;;  %s6696_s14 = inlined_call_operand.vmem [shape: f32[2,1,32], index: 14, kind: input, shape index: {}]   ;;  %s6697_s15 = inlined_call_operand.hbm [shape: f32[2,1,32], index: 15, kind: input, shape index: {}]   ;;  %s6698_s16 = inlined_call_operand.vmem [shape: f32[2,1,32], index: 16, kind: input, shape index: {}]   ;;  %s6699_s17 = inlined_call_operand.hbm [shape: f32[32,64], index: 17, kind: input, shape index: {}]   ;;  %s6700_s18 = inlined_call_operand.hbm [shape: f32[4,8,96], index: 18, kind: output, shape index: {}]  }
   0x1   :  { %6730 = sst [smem:[#allocation26_spill]] %s6682_s0 }
   0x2   :  { %6731 = sst [smem:[#allocation27_spill]] %s6683_s1 }
   0x3   :  { %6732 = sst [smem:[#allocation28_spill]] %s6684_s2 }
   0x4   :  { %6733 = sst [smem:[#allocation29_spill]] %s6687_s5 }
   0x5   :  { %23 = vsyncpa [#allocation4], 0 }
   0x6   :  { %24 = vsyncpa [#allocation7], 0 }
   0x7   :  { %25 = vsyncpa [#allocation10], 0 }
   0x8   :  { %26 = vsyncpa [#allocation13], 0 }
   0x9   :  { %27 = vsyncpa [#allocation5], 0 }
   0xa   :  { %29 = vsyncpa [#allocation5 + $0x1], 0  ;;  %s5964_s27 = smov 0   ;;  %s5966_s28 = smov 0  }
   0xb   :  { %s5968_s29 = smov 0   ;;  %s5970_s30 = smov 0  }
   0xc LB: > { %6734 = sst [smem:[#allocation20_spill]] %s5825_s27  ;;  %s5985_s0 = sadd.s32 4294967295, %s5837_s30   ;;  %s5837_s30 = sphi %s5970_s30, %s6771_s30   ;;  %s5833_s29 = sphi %s5968_s29, %s6773_s29   ;;  %s5829_s28 = sphi %s5966_s28, %s6775_s28   ;;  %s5825_s27 = sphi %s5964_s27, %s6774_s27  }
   0xd   : > { %6735 = sst [smem:[#allocation21_spill]] %s5833_s29  ;;  %s4847_s19 = sadd.s32 4294967294, %s5837_s30  }
   0xe   : > { %6736 = sst [smem:[#allocation22_spill]] %s5837_s30  ;;  %s5989_s1 = sadd.s32 1, %s5837_s30  }
   0xf   : > { %6737 = sst [smem:[#allocation23_spill]] %s5989_s1  ;;  %s425_s20 = sadd.s32 1, %s5833_s29 }
  0x10   : > { %s422_s21 = ssub.s32 %s5837_s30, %s5989_s1  ;;  %p435_p0 = scmp.ne.s32.totalorder %s5833_s29, %s5829_s28 }
  0x11   : > { %p423_p1 = scmp.eq.s32.totalorder %s422_s21, 0  ;;  %p436_p2 = scmp.eq.s32.totalorder %s5985_s0, 1 }
  0x12   : > { %p441_p3 = scmp.ne.s32.totalorder %s5829_s28, %s5825_s27  ;;  %p442_p4 = scmp.eq.s32.totalorder %s4847_s19, 1 }
  0x13   : > { %s6000_s22 = scalar_select %p423_p1, %s5833_s29, %s425_s20  }
  0x14   : > { %p6002_p5 = por %p436_p2, %p435_p0  ;;  %p6006_p6 = por %p442_p4, %p441_p3 }
  0x15   : > { %6738 = sst [smem:[#allocation24_spill]] %s6000_s22  ;;  %p4848_p7 = scmp.ge.s32.totalorder %s5837_s30, 1 }
  0x16   : > { %s6740_s23 = scalar_select %p6006_p6, 1, 0 }
  0x17   : > { %p449_p8 = scmp.lt.s32.totalorder %s5837_s30, 3  ;;  %p6706_p9 = scmp.eq.s32.totalorder %s5985_s0, 0 }
  0x18   : > { %6741 = sst [smem:[#allocation25_spill]] %s6740_s23  ;;  %s5839_s25 = smov [#allocation6]  }
  0x19   : > { %p6013_p10 = pnand %p4848_p7, %p449_p8  ;;  %s482_s26 = sshll.u32 %s5839_s25, 4  ;;  %s483_s26 = int_to_ptr.vmem [resolvable:$true] %s482_s26 }
  0x1a   : > { %s5840_s20 = smov [#allocation9]   ;;  %s5841_s22 = smov [#allocation3]  }
  0x1b   : > { %p5427_p11 = pneg %p6013_p10  ;;  %s520_s21 = sshll.u32 %s5840_s20, 4  ;;  %s6025_s21 = int_to_ptr.vmem [resolvable:$true] %s520_s21 }
  0x1c   : > { %s468_s29 = sshll.u32 %s5841_s22, 4  ;;  %s5616_s25 = scalar_lea.vmem %s483_s26, 16  ;;  %s469_s29 = int_to_ptr.vmem [resolvable:$true] %s468_s29 }
  0x1d   : > { %p6021_p12 = pnand %p6706_p9, %p5427_p11  ;;  %p5617_p0 = scmp.ne.s32.totalorder %s483_s26, %s5616_s25 }
  0x1e   : > { %s5623_s23 = scalar_lea.vmem %s483_s26, 32  ;;  %p5624_p3 = scmp.lt.s32.totalorder %s483_s26, %s483_s26 }
  0x1f   : > { %p6029_p13 = pneg %p6021_p12  ;;  %p5625_p4 = scmp.lt.s32.totalorder %s5623_s23, %s5616_s25 }
  0x21   : > { %p5619_p1 = pnand %p5617_p0, %p6029_p13  ;;  %p5626_p7 = por %p5625_p4, %p5624_p3 }
  0x23   : > { %p5620_p2 = pneg %p5619_p1 }
  0x25   : > { %p5627_p8 = pnand %p5626_p7, %p5620_p2 }
  0x27   : > { %5630 = shalt.err (!%p5627_p8)
}
  0x28   : > { %s6745_s5 = sld [smem:[#allocation29_spill]]  ;;  %s5642_s27 = scalar_lea.vmem %s6025_s21, 32 }
  0x29   : > { %p5643_p11 = scmp.ne.s32.totalorder %s6025_s21, %s5642_s27  ;;  %p5650_p9 = scmp.lt.s32.totalorder %s6025_s21, %s6025_s21 }
  0x2a   : > { %p5651_p3 = scmp.lt.s32.totalorder %s5642_s27, %s5642_s27 }
  0x2b   : > { %p5645_p0 = pnand %p5643_p11, %p6029_p13 }
  0x2c   : > { %p5652_p2 = por %p5651_p3, %p5650_p9 }
  0x2d   : > { %p5646_p1 = pneg %p5645_p0 }
  0x2e   : > { %5433 = dma.hbm_to_vmem [thread:$0]  (!%p6021_p12), %s6745_s5, 16, %s483_s26, [#allocation7]  }
  0x2f   : > { %p5653_p4 = pnand %p5652_p2, %p5646_p1 }
  0x31   : > { %5656 = shalt.err (!%p5653_p4)
}
  0x32   : > { %s6708_s23 = smov 16   ;;  %s6710_s25 = smov 1  }
  0x33   : > { %5439 = dma.hbm_to_vmem [thread:$0]  (!%p6021_p12), %s6694_s12, 32, %s6025_s21, [#allocation10], %s6708_s23, %s6708_s23, %s6710_s25  }
  0x34   : > { %s5668_s20 = scalar_lea.vmem %s469_s29, 16  ;;  %s5675_s27 = scalar_lea.vmem %s469_s29, 32 }
  0x35   : > { %p5669_p7 = scmp.ne.s32.totalorder %s469_s29, %s5668_s20  ;;  %p5676_p11 = scmp.lt.s32.totalorder %s469_s29, %s469_s29 }
  0x36   : > { %p5677_p0 = scmp.lt.s32.totalorder %s5675_s27, %s5668_s20 }
  0x37   : > { %p5671_p9 = pnand %p5669_p7, %p6029_p13 }
  0x38   : > { %p5678_p1 = por %p5677_p0, %p5676_p11 }
  0x39   : > { %p5672_p8 = pneg %p5671_p9 }
  0x3b   : > { %p5679_p3 = pnand %p5678_p1, %p5672_p8 }
  0x3d   : > { %5682 = shalt.err (!%p5679_p3)
}
  0x3e   : > { %5430 = dma.hbm_to_vmem [thread:$0]  (!%p6021_p12), %s6685_s3, 16, %s469_s29, [#allocation4]  }
  0x3f   : > { %s5844_s21 = smov [#allocation8]   ;;  %s5845_s22 = smov [#allocation11]  }
  0x40   : > { %s504_s26 = sshll.u32 %s5844_s21, 4  ;;  %s539_s23 = sshll.u32 %s5845_s22, 4  ;;  %s505_s26 = int_to_ptr.vmem [resolvable:$true] %s504_s26  ;;  %s540_s23 = int_to_ptr.vmem [resolvable:$true] %s539_s23 }
  0x41   : > { %s5694_s25 = scalar_lea.vmem %s505_s26, 32  ;;  %p5702_p9 = scmp.lt.s32.totalorder %s505_s26, %s505_s26 }
  0x42   : > { %p5695_p2 = scmp.ne.s32.totalorder %s505_s26, %s5694_s25  ;;  %p5703_p8 = scmp.lt.s32.totalorder %s5694_s25, %s5694_s25 }
  0x44   : > { %p5697_p4 = pnand %p5695_p2, %p6029_p13  ;;  %p5704_p11 = por %p5703_p8, %p5702_p9 }
  0x46   : > { %p5698_p7 = pneg %p5697_p4 }
  0x48   : > { %p5705_p0 = pnand %p5704_p11, %p5698_p7 }
  0x4a   : > { %5708 = shalt.err (!%p5705_p0)
}
  0x4b   : > { %s6746_s5 = smov 1   ;;  %s6747_s30 = smov 16  }
  0x4c   : > { %5436 = dma.hbm_to_vmem [thread:$0]  (!%p6021_p12), %s6692_s10, 32, %s505_s26, [#allocation7], %s6747_s30, %s6747_s30, %s6746_s5  }
  0x4d   : > { %s5720_s27 = scalar_lea.vmem %s540_s23, 32  ;;  %p5728_p4 = scmp.lt.s32.totalorder %s540_s23, %s540_s23 }
  0x4e   : > { %p5721_p1 = scmp.ne.s32.totalorder %s540_s23, %s5720_s27  ;;  %p5729_p9 = scmp.lt.s32.totalorder %s5720_s27, %s5720_s27 }
  0x50   : > { %p5723_p3 = pnand %p5721_p1, %p6029_p13  ;;  %p5730_p7 = por %p5729_p9, %p5728_p4 }
  0x52   : > { %p5724_p2 = pneg %p5723_p3 }
  0x54   : > { %p5731_p8 = pnand %p5730_p7, %p5724_p2 }
  0x56   : > { %5734 = shalt.err (!%p5731_p8)
}
  0x57   : > { %5442 = dma.hbm_to_vmem [thread:$0]  (!%p6021_p12), %s6697_s15, 32, %s540_s23, [#allocation10], %s6747_s30, %s6747_s30, %s6746_s5  }
  0x58   : > { %s5846_s26 = smov [#allocation12]  }
  0x59   : > { %s555_s22 = sshll.u32 %s5846_s26, 4  ;;  %s556_s22 = int_to_ptr.vmem [resolvable:$true] %s555_s22 }
  0x5a   : > { %s5746_s29 = scalar_lea.vmem %s556_s22, 512  ;;  %p5754_p3 = scmp.lt.s32.totalorder %s556_s22, %s556_s22 }
  0x5b   : > { %p5747_p11 = scmp.ne.s32.totalorder %s556_s22, %s5746_s29  ;;  %p5755_p2 = scmp.lt.s32.totalorder %s5746_s29, %s5746_s29 }
  0x5d   : > { %p5749_p0 = pnand %p5747_p11, %p6029_p13  ;;  %p5756_p4 = por %p5755_p2, %p5754_p3 }
  0x5f   : > { %p5750_p1 = pneg %p5749_p0 }
  0x61   : > { %p5757_p9 = pnand %p5756_p4, %p5750_p1 }
  0x63   : > { %5760 = shalt.err (!%p5757_p9)
}
  0x64   : > { %s5847_s20 = smov 128   ;;  %s5848_s27 = smov 8  }
  0x65   : > { %5445 = dma.hbm_to_vmem [thread:$0]  (!%p6021_p12), %s6699_s17, 512, %s556_s22, [#allocation13], %s5847_s20, %s5847_s20, %s5848_s27  }
  0x66   : > { %580 = sbr.rel (%p6013_p10) target bundleno = 7457 (0x1d21), region = 92  ;;  %p6748_p7 = scmp.eq.s32.totalorder (!%p6013_p10), %s5985_s0, 0 }
  0x6b   : > { %5804 = dma.done.wait (%p6748_p7), [#allocation4], 16   ;;  %p6749_p13 = pmov %p6748_p7 }
  0x6c   : > { %p6750_p8 = pmov %p6748_p7 }
  0x6d   : > { %5806 = vsyncadd (%p6749_p13), [#allocation4], 4294967280 }
  0x6e   : > { %5808 = dma.done.wait (%p6750_p8), [#allocation7], 48   ;;  %p6751_p11 = pmov %p6748_p7 }
  0x6f   : > { %p6752_p0 = pmov %p6748_p7 }
  0x70   : > { %5810 = vsyncadd (%p6751_p11), [#allocation7], 4294967248 }
  0x71   : > { %5812 = dma.done.wait (%p6752_p0), [#allocation10], 64   ;;  %p6753_p12 = pmov %p6752_p0 }
  0x72   : > { %p6754_p10 = pmov %p6752_p0 }
  0x73   : > { %5814 = vsyncadd (%p6753_p12), [#allocation10], 4294967232 }
  0x74   : > { %5816 = dma.done.wait (%p6754_p10), [#allocation13], 512   ;;  %p6755_p1 = pmov %p6752_p0 }
  0x75   : > { %s4864_s1 = sshll.u32 %s5985_s0, 1  ;;  %v5849_v0 = vmov 0   ;;  %vm679_vm0 = vcmask 1042432   ;;  %s6756_s5 = sld [smem:[#allocation26_spill]]  ;;  %vm672_vm1 = vcmask 23552   ;;  %v864_v7 = vld [vmem:[%s6688_s6 + $0x18] sm:$0xff] }
  0x76   : > { %5818 = vsyncadd (%p6755_p1), [#allocation13], 4294966784  ;;  %p655_p3 = scmp.lt.s32.totalorder %s4864_s1, 3  ;;  %5524 = vset.pattern.permute.xlu0 %v5849_v0  ;;  %s6757_s29 = sld [smem:[#allocation28_spill]]  ;;  %v758_v2 = vld [vmem:[%s6686_s4] sm:$0x7] }
  0x77   : > { %5121 = vmatprep.subr.msk.mxu1 %vm679_vm0, %v758_v2  ;;  %v863_v8 = vld [vmem:[%s6688_s6 + $0x10] sm:$0xff]  ;;  %v862_v9 = vld [vmem:[%s6688_s6 + $0x8] sm:$0xff]  ;;  %v861_v10 = vld [vmem:[%s6688_s6] sm:$0xff]  ;;  %vm865_vm2 = vcmask 261120   ;;  %v5850_v29 = vmov 0.0   ;;  %vm5851_vm3 = vmmov 0  }
  0x78   : > { %s6777_s1 = smov (!%p655_p3, %s4864_s1), 3  ;;  %5122 = vmatpush3.msk.msra.mxu1 %vm679_vm0, %v758_v2  ;;  %v4866_v12 = vld [vmem:[#allocation3] ss:$0 sm:$0xff]  ;;  %v4870_v13 = vld [vmem:[#allocation6] ss:$0 sm:$0xff]  ;;  %s5852_s20 = smov 96  }
  0x79   : > { %s4865_s24 = sshll.u32 %s6777_s1, 3  ;;  %s6758_s1 = sld [smem:[#allocation27_spill]]  ;;  %5137 = vmatprep.subr.mxu1 %v5850_v29  ;;  %vm950_vm4 = vcmask 64512   ;;  %vm1628_vm5 = vcmask 130112   ;;  %vm1975_vm6 = vcmask 195712   ;;  %vm2322_vm7 = vcmask 261312  }
  0x7a   : > { %s5853_s27 = smov 64   ;;  %s5854_s25 = smov 88   ;;  %vm2591_vm8 = vcmask 523264   ;;  %vm4708_vm9 = vcmask 785408  }
  0x7b   : > { %s658_s30 = scalar_lea.vmem %s6756_s5, %s4865_s24  ;;  %s5855_s21 = smov 120  }
  0x7c   : > { %v664_v1 = vld [vmem:[%s6757_s29] sm:$0x7]  ;;  %v662_v4 = vld [vmem:[%s658_s30 + $0x8] sm:$0xff]  ;;  %s6726_s24 = smov 80   ;;  %s6724_s19 = smov 112  }
  0x7d   : > { %v661_v3 = vld [vmem:[%s658_s30] sm:$0xff]  ;;  %5116 = vmatprep.subr.msk.mxu0 %vm679_vm0, %v664_v1  ;;  %s6722_s23 = smov 48   ;;  %s6720_s5 = smov 72  }
  0x7e   : > { %5117 = vmatpush3.msk.msra.mxu0 %vm679_vm0, %v664_v1  ;;  %5118 = vmatprep.mubr.msk.f32.mxu0 %vm672_vm1, %v661_v3  ;;  %s6718_s30 = smov 104   ;;  %s6716_s26 = smov 40  }
  0x7f   : > { %v663_v5 = vld [vmem:[%s6758_s1] sm:$0xff]  ;;  %5123 = vmatprep.mubr.msk.f32.mxu1 %vm672_vm1, %v661_v3  ;;  %5119 = vmatmul.mubr.msk.f32.vlgmr.msra.gmra.mxu0 %vm672_vm1, %v662_v4  ;;  %s6728_s1 = smov 56   ;;  %s6714_s22 = smov 8  }
  0x80   : > { %5124 = vmatmul.mubr.msk.f32.vlgmr.msra.gmra.mxu1 %vm672_vm1, %v662_v4  ;;  %846 = vperm.xlu0 %5524, %v663_v5   ;;  %v851_v6 = vsub.f32 1.0, %v663_v5  ;;  %s6712_s29 = smov 16  }
  0x81   : > { %5126 = vmatprep.subr.mxu0 %v864_v7  ;;  %5139 = vmatprep.mubr.msk.f32.mxu1 %vm5851_vm3, %v5850_v29 }
  0x82   : > { %5127 = vmatpush3.msra.mxu0 %v864_v7 }
  0x83   : > { %5128 = vmatprep.subr.mxu0 %v863_v8 }
  0x84   : > { %854 = vperm.xlu0 %5524, %v851_v6   ;;  %5129 = vmatpush3.msra.mxu0 %v863_v8 }
  0x85   : > { %5130 = vmatprep.subr.mxu0 %v862_v9 }
  0x86   : > { %5131 = vmatpush3.msra.mxu0 %v862_v9 }
  0x87   : > { %5132 = vmatprep.subr.mxu0 %v861_v10 }
  0x88   : > { %5133 = vmatpush3.msra.mxu0 %v861_v10 }
  0x89   : > { %5157 = vmatprep.subr.mxu0 %v5850_v29 }
  0xfb   : > { %v847_v11 = vpop.permute.xlu0 %846 }
  0xff   : > { %v855_v20 = vpop.permute.xlu0 %854 }
 0x13f   : > { %v5120_v14 = vpop.f32.mrf.mxu0 }
 0x140   : > { %v5125_v15 = vpop.f32.mrf.mxu1  ;;  %v755_v16 = vadd.f32 %v5120_v14, %v4866_v12 }
 0x141   : > { %v841_v17 = vadd.f32 %v5125_v15, %v4870_v13  ;;  %v749_v18 = vpop.f32.mrf.mxu0 }
 0x142   : > { %v835_v19 = vpop.f32.mrf.mxu1  ;;  %v750_v21 = vadd.f32 %v4866_v12, %v749_v18  ;;  %v850_v23 = vmul.f32 %v847_v11, %v755_v16 }
 0x143   : > { %v836_v22 = vadd.f32 %v4870_v13, %v835_v19  ;;  %v858_v24 = vmul.f32 %v855_v20, %v841_v17 }
 0x144   : > { %v849_v25 = vmul.f32 %v847_v11, %v750_v21 }
 0x145   : > { %v857_v26 = vmul.f32 %v855_v20, %v836_v22  ;;  %v6134_v28 = vadd.f32 %v858_v24, %v850_v23 }
 0x147   : > { %v6132_v27 = vadd.f32 %v857_v26, %v849_v25 }
 0x149   : > { %5134 = vmatprep.mubr.msk.f32.mxu0 %vm865_vm2, %v6132_v27 }
 0x14a   : > { %5135 = vmatmul.mubr.msk.f32.vlgmr.msra.gmra.mxu0 %vm865_vm2, %v6134_v28 }
 0x14b   : > { %5159 = vmatprep.mubr.msk.f32.mxu0 %vm5851_vm3, %v5850_v29 }
 0x20a   : > { %v6146_v30 = vpop.f32.mrf.mxu0 }
 0x20c   : > { %v6148_v31 = vpop.f32.mrf.mxu0 }
 0x20d   : > { %948 = vrot.lane.b32.xlu1 %v6148_v31, %s5852_s20 }
 0x211   : > { %1026 = vrot.lane.b32.xlu1 %v6146_v30, %s5852_s20 }
 0x27f   : > { %v949_v32 = vpop.permute.xlu1 %948 }
 0x280   : > { %5138 = vmatpush3.xpose.msk.msra.mxu1 %vm950_vm4, %v949_v32 }
 0x281   : > { %5142 = vmatprep.subr.mxu1 %v5850_v29 }
 0x283   : > { %5140 = vmatmul.mubr.msk.f32.vlgmr.msra.gmra.mxu1 %vm950_vm4, %v6148_v31  ;;  %v1027_v33 = vpop.permute.xlu1 %1026 }
 0x284   : > { %5143 = vmatpush3.xpose.msk.msra.mxu1 %vm950_vm4, %v1027_v33  ;;  %5144 = vmatprep.mubr.msk.f32.mxu1 %vm5851_vm3, %v5850_v29 }
 0x285   : > { %5147 = vmatprep.subr.mxu1 %v5850_v29 }
 0x287   : > { %5145 = vmatmul.mubr.msk.f32.vlgmr.msra.gmra.mxu1 %vm950_vm4, %v6146_v30 }
 0x288   : > { %5149 = vmatprep.mubr.msk.f32.mxu1 %vm5851_vm3, %v5850_v29 }
 0x343   : > { %v1021_v34 = vpop.f32.mrf.mxu1 }
 0x344   : > { %v1102_v35 = vmul.f32 0.35355338, %v1021_v34 }
 0x345   : > { %v5141_v36 = vpop.f32.mrf.mxu1 }
 0x346   : > { %v1104_v37 = vsel %vm950_vm4, %v1102_v35, -inf }
 0x347   : > { %1105 = vmax.xlane.f32.xlu0 %v1104_v37  ;;  %v1098_v38 = vpop.f32.mrf.mxu1 }
 0x348   : > { %v1103_v39 = vmul.f32 0.35355338, %v1098_v38 }
 0x349   : > { %v5146_v40 = vpop.f32.mrf.mxu1 }
 0x34a   : > { %v1107_v41 = vsel %vm950_vm4, %v1103_v39, -inf }
 0x34b   : > { %1108 = vmax.xlane.f32.xlu1 %v1107_v41 }
 0x35c   : > { %1130 = vrot.lane.b32.xlu1 %v6148_v31, %s5853_s27 }
 0x360   : > { %1286 = vrot.lane.b32.xlu1 %v6148_v31, %s5854_s25 }
 0x364   : > { %1364 = vrot.lane.b32.xlu1 %v6146_v30, %s5854_s25 }
 0x368   : > { %1362 = vrot.lane.b32.xlu1 %v6146_v30, %s5855_s21 }
 0x3d0   : > { %v1106_v42 = vpop.xlane.xlu0 %1105 }
 0x3d1   : > { %v1110_v43 = vmax.f32 %v1106_v42, -1e+30 }
 0x3d3   : > { %v1112_v44 = vsub.f32 %v1102_v35, %v1110_v43 }
 0x3d4   : > { %v1109_v45 = vpop.xlane.xlu1 %1108 }
 0x3d5   : > { %v1114_v46 = vmul.f32 1.442695, %v1112_v44  ;;  %v1111_v47 = vmax.f32 %v1109_v45, -1e+30 }
 0x3d7   : > { %5525 = vpow2.f32 %v1114_v46  ;;  %v1113_v48 = vsub.f32 %v1103_v39, %v1111_v47 }
 0x3d8   : > { %v1131_v49 = vpop.permute.xlu1 %1130 }
 0x3d9   : > { %v1116_v50 = vmul.f32 1.442695, %v1113_v48  ;;  %5148 = vmatpush3.msra.mxu1 %v1131_v49 }
 0x3da   : > { %5152 = vmatprep.subr.mxu1 %v5850_v29 }
 0x3db   : > { %5527 = vpow2.f32 %v1116_v50 }
 0x3dc   : > { %v1287_v51 = vpop.permute.xlu1 %1286 }
 0x3dd   : > { %5158 = vmatpush3.xpose.msk.msra.mxu0 %vm950_vm4, %v1287_v51 }
 0x3de   : > { %5167 = vmatprep.subr.mxu0 %v5850_v29 }
 0x3e0   : > { %v1365_v1 = vpop.permute.xlu1 %1364 }
 0x3e4   : > { %v5526_v52 = vpop.eup %5525  ;;  %v1363_v3 = vpop.permute.xlu1 %1362 }
 0x3e5   : > { %v1118_v53 = vsel %vm950_vm4, %v5526_v52, 0.0 }
 0x3e6   : > { %1119 = vadd.xlane.f32.xlu0 %v1118_v53 }
 0x3e8   : > { %v5528_v54 = vpop.eup %5527 }
 0x3e9   : > { %v1121_v55 = vsel %vm950_vm4, %v5528_v54, 0.0 }
 0x3ea   : > { %1122 = vadd.xlane.f32.xlu0 %v1121_v55 }
 0x400   : > { %1206 = vrot.lane.b32.xlu0 %v6146_v30, %s5853_s27 }
 0x404   : > { %1284 = vrot.lane.b32.xlu0 %v6148_v31, %s5855_s21 }
 0x46f   : > { %v1120_v56 = vpop.xlane.xlu0 %1119 }
 0x470   : > { %v1124_v57 = vmax.f32 %v1120_v56, 1e-30 }
 0x472   : > { %5529 = vrcp.f32 %v1124_v57 }
 0x473   : > { %v1123_v58 = vpop.xlane.xlu0 %1122 }
 0x474   : > { %v1125_v59 = vmax.f32 %v1123_v58, 1e-30 }
 0x476   : > { %5531 = vrcp.f32 %v1125_v59 }
 0x477   : > { %v1207_v60 = vpop.permute.xlu0 %1206 }
 0x47b   : > { %v1285_v61 = vpop.permute.xlu0 %1284 }
 0x47c   : > { %5160 = vmatmul.mubr.msk.f32.vlgmr.msra.gmra.mxu0 %vm950_vm4, %v1285_v61 }
 0x47d   : > { %5169 = vmatprep.mubr.msk.f32.mxu0 %vm5851_vm3, %v5850_v29 }
 0x47f   : > { %v5530_v62 = vpop.eup %5529 }
 0x480   : > { %v1128_v63 = vmul.f32 %v5530_v62, %v5526_v52 }
 0x482   : > { %5150 = vmatmul.mubr.msk.f32.vlgmr.msra.gmra.mxu1 %vm950_vm4, %v1128_v63 }
 0x483   : > { %v5532_v0 = vpop.eup %5531  ;;  %5153 = vmatpush3.msra.mxu1 %v1207_v60  ;;  %5154 = vmatprep.mubr.msk.f32.mxu1 %vm5851_vm3, %v5850_v29 }
 0x484   : > { %5162 = vmatprep.subr.mxu1 %v5850_v29  ;;  %v1129_v2 = vmul.f32 %v5532_v0, %v5528_v54 }
 0x486   : > { %5155 = vmatmul.mubr.msk.f32.vlgmr.msra.gmra.mxu1 %vm950_vm4, %v1129_v2 }
 0x487   : > { %5163 = vmatpush3.xpose.msk.msra.mxu1 %vm950_vm4, %v1365_v1  ;;  %5164 = vmatprep.mubr.msk.f32.mxu1 %vm5851_vm3, %v5850_v29 }
 0x488   : > { %5172 = vmatprep.subr.mxu1 %v5850_v29 }
 0x48a   : > { %5165 = vmatmul.mubr.msk.f32.vlgmr.msra.gmra.mxu1 %vm950_vm4, %v1363_v3 }
 0x48b   : > { %5174 = vmatprep.mubr.msk.f32.mxu1 %vm5851_vm3, %v5850_v29 }
 0x53c   : > { %v1358_v4 = vpop.f32.mrf.mxu0 }
 0x53d   : > { %v1440_v5 = vmul.f32 0.35355338, %v1358_v4 }
 0x53e   : > { %v5161_v6 = vpop.f32.mrf.mxu0 }
 0x53f   : > { %v1442_v7 = vsel %vm950_vm4, %v1440_v5, -inf }
 0x540   : > { %1443 = vmax.xlane.f32.xlu0 %v1442_v7 }
 0x542   : > { %v1202_v8 = vpop.f32.mrf.mxu1 }
 0x543   : > { %1282 = vst.msk [vmem:[#allocation2] sm:$0xff] %vm950_vm4, %v1202_v8 }
 0x544   : > { %v5151_v9 = vpop.f32.mrf.mxu1 }
 0x546   : > { %v1278_v10 = vpop.f32.mrf.mxu1 }
 0x547   : > { %1283 = vst.msk [vmem:[#allocation2 + $0x8] sm:$0xff] %vm950_vm4, %v1278_v10 }
 0x548   : > { %v5156_v11 = vpop.f32.mrf.mxu1 }
 0x54a   : > { %v1436_v12 = vpop.f32.mrf.mxu1 }
 0x54b   : > { %v1441_v13 = vmul.f32 0.35355338, %v1436_v12 }
 0x54c   : > { %v5166_v14 = vpop.f32.mrf.mxu1 }
 0x54d   : > { %v1445_v15 = vsel %vm950_vm4, %v1441_v13, -inf }
 0x54e   : > { %1446 = vmax.xlane.f32.xlu1 %v1445_v15 }
 0x55f   : > { %1468 = vrot.lane.b32.xlu1 %v6148_v31, %s6728_s1 }
 0x563   : > { %1633 = vrot.lane.b32.xlu1 %v6148_v31, %s6726_s24 }
 0x567   : > { %1711 = vrot.lane.b32.xlu1 %v6146_v30, %s6726_s24  ;;  %s6764_s24 = smov 104  }
 0x56b   : > { %1709 = vrot.lane.b32.xlu1 %v6146_v30, %s6724_s19 }
 0x5c9   : > { %v1444_v16 = vpop.xlane.xlu0 %1443 }
 0x5ca   : > { %v1448_v17 = vmax.f32 %v1444_v16, -1e+30 }
 0x5cc   : > { %v1450_v18 = vsub.f32 %v1440_v5, %v1448_v17 }
 0x5ce   : > { %v1452_v19 = vmul.f32 1.442695, %v1450_v18 }
 0x5d0   : > { %5533 = vpow2.f32 %v1452_v19 }
 0x5d7   : > { %v1447_v20 = vpop.xlane.xlu1 %1446 }
 0x5d8   : > { %v1449_v21 = vmax.f32 %v1447_v20, -1e+30 }
 0x5da   : > { %v1451_v22 = vsub.f32 %v1441_v13, %v1449_v21 }
 0x5db   : > { %v1469_v23 = vpop.permute.xlu1 %1468 }
 0x5dc   : > { %v1454_v24 = vmul.f32 1.442695, %v1451_v22  ;;  %5168 = vmatpush3.msra.mxu0 %v1469_v23 }
 0x5dd   : > { %v5534_v25 = vpop.eup %5533  ;;  %5177 = vmatprep.subr.mxu0 %v5850_v29 }
 0x5de   : > { %5535 = vpow2.f32 %v1454_v24  ;;  %v1456_v26 = vsel %vm950_vm4, %v5534_v25, 0.0 }
 0x5df   : > { %1457 = vadd.xlane.f32.xlu0 %v1456_v26  ;;  %v1634_v41 = vpop.permute.xlu1 %1633 }
 0x5e3   : > { %v1712_v44 = vpop.permute.xlu1 %1711 }
 0x5e7   : > { %v1710_v46 = vpop.permute.xlu1 %1709 }
 0x5eb   : > { %v5536_v32 = vpop.eup %5535 }
 0x5ec   : > { %v1459_v33 = vsel %vm950_vm4, %v5536_v32, 0.0 }
 0x5ed   : > { %1460 = vadd.xlane.f32.xlu0 %v1459_v33 }
 0x603   : > { %1544 = vrot.lane.b32.xlu0 %v6146_v30, %s6728_s1  ;;  %s6763_s1 = smov 72  }
 0x607   : > { %1631 = vrot.lane.b32.xlu0 %v6148_v31, %s6724_s19  ;;  %s6765_s19 = smov 40  }
 0x668   : > { %v1458_v34 = vpop.xlane.xlu0 %1457 }
 0x669   : > { %v1462_v35 = vmax.f32 %v1458_v34, 1e-30 }
 0x66b   : > { %5537 = vrcp.f32 %v1462_v35 }
 0x676   : > { %v1461_v36 = vpop.xlane.xlu0 %1460 }
 0x677   : > { %v1463_v37 = vmax.f32 %v1461_v36, 1e-30 }
 0x678   : > { %v5538_v38 = vpop.eup %5537 }
 0x679   : > { %5539 = vrcp.f32 %v1463_v37  ;;  %v1466_v39 = vmul.f32 %v5538_v38, %v5534_v25 }
 0x67a   : > { %v1545_v40 = vpop.permute.xlu0 %1544 }
 0x67b   : > { %5170 = vmatmul.mubr.msk.f32.vlgmr.msra.gmra.mxu0 %vm950_vm4, %v1466_v39  ;;  %5173 = vmatpush3.msra.mxu1 %v1545_v40 }
 0x67c   : > { %5178 = vmatpush3.xpose.msk.msra.mxu0 %vm950_vm4, %v1634_v41  ;;  %5179 = vmatprep.mubr.msk.f32.mxu0 %vm5851_vm3, %v5850_v29 }
 0x67d   : > { %5182 = vmatprep.subr.mxu1 %v5850_v29  ;;  %5187 = vmatprep.subr.mxu0 %v5850_v29 }
 0x67e   : > { %v1632_v42 = vpop.permute.xlu0 %1631 }
 0x67f   : > { %5180 = vmatmul.mubr.msk.f32.vlgmr.msra.gmra.mxu0 %vm950_vm4, %v1632_v42 }
 0x680   : > { %5189 = vmatprep.mubr.msk.f32.mxu0 %vm5851_vm3, %v5850_v29 }
 0x686   : > { %v5540_v43 = vpop.eup %5539 }
 0x687   : > { %v1467_v45 = vmul.f32 %v5540_v43, %v5536_v32 }
 0x689   : > { %5175 = vmatmul.mubr.msk.f32.vlgmr.msra.gmra.mxu1 %vm950_vm4, %v1467_v45 }
 0x68a   : > { %5183 = vmatpush3.xpose.msk.msra.mxu1 %vm950_vm4, %v1712_v44  ;;  %5184 = vmatprep.mubr.msk.f32.mxu1 %vm5851_vm3, %v5850_v29 }
 0x68b   : > { %5192 = vmatprep.subr.mxu1 %v5850_v29 }
 0x68d   : > { %5185 = vmatmul.mubr.msk.f32.vlgmr.msra.gmra.mxu1 %vm950_vm4, %v1710_v46 }
 0x68e   : > { %5194 = vmatprep.mubr.msk.f32.mxu1 %vm5851_vm3, %v5850_v29 }
 0x73b   : > { %v6236_v47 = vpop.f32.mrf.mxu0 }
 0x73d   : > { %v5171_v48 = vpop.f32.mrf.mxu0 }
 0x73f   : > { %v1705_v49 = vpop.f32.mrf.mxu0 }
 0x740   : > { %v1787_v50 = vmul.f32 0.35355338, %v1705_v49 }
 0x741   : > { %v5181_v51 = vpop.f32.mrf.mxu0 }
 0x742   : > { %v1789_v52 = vsel %vm950_vm4, %v1787_v50, -inf }
 0x743   : > { %1790 = vmax.xlane.f32.xlu0 %v1789_v52 }
 0x749   : > { %v6239_v53 = vpop.f32.mrf.mxu1 }
 0x74b   : > { %v5176_v54 = vpop.f32.mrf.mxu1 }
 0x74d   : > { %v1783_v55 = vpop.f32.mrf.mxu1 }
 0x74e   : > { %v1788_v56 = vmul.f32 0.35355338, %v1783_v55 }
 0x74f   : > { %v5186_v57 = vpop.f32.mrf.mxu1 }
 0x750   : > { %v1792_v58 = vsel %vm950_vm4, %v1788_v56, -inf }
 0x751   : > { %1793 = vmax.xlane.f32.xlu1 %v1792_v58 }
 0x762   : > { %1815 = vrot.lane.b32.xlu1 %v6148_v31, %s6722_s23 }
 0x766   : > { %1980 = vrot.lane.b32.xlu1 %v6148_v31, %s6720_s5 }
 0x76a   : > { %2058 = vrot.lane.b32.xlu1 %v6146_v30, %s6720_s5  ;;  %s6767_s5 = smov 16  }
 0x76e   : > { %2056 = vrot.lane.b32.xlu1 %v6146_v30, %s6718_s30 }
 0x7cc   : > { %v1791_v59 = vpop.xlane.xlu0 %1790 }
 0x7cd   : > { %v1795_v60 = vmax.f32 %v1791_v59, -1e+30 }
 0x7cf   : > { %v1797_v61 = vsub.f32 %v1787_v50, %v1795_v60 }
 0x7d1   : > { %v1799_v62 = vmul.f32 1.442695, %v1797_v61 }
 0x7d3   : > { %5541 = vpow2.f32 %v1799_v62 }
 0x7da   : > { %v1794_v63 = vpop.xlane.xlu1 %1793 }
 0x7db   : > { %v1796_v0 = vmax.f32 %v1794_v63, -1e+30 }
 0x7dd   : > { %v1798_v1 = vsub.f32 %v1788_v56, %v1796_v0  ;;  %v2330_v0 = vld [vmem:[%s6689_s7 + $0x18] sm:$0xff] }
 0x7de   : > { %v1816_v2 = vpop.permute.xlu1 %1815 }
 0x7df   : > { %v1801_v3 = vmul.f32 1.442695, %v1798_v1  ;;  %5188 = vmatpush3.msra.mxu0 %v1816_v2  ;;  %v2329_v1 = vld [vmem:[%s6689_s7 + $0x10] sm:$0xff]  ;;  %v2328_v2 = vld [vmem:[%s6689_s7 + $0x8] sm:$0xff] }
 0x7e0   : > { %v5542_v4 = vpop.eup %5541  ;;  %5197 = vmatprep.subr.mxu0 %v5850_v29 }
 0x7e1   : > { %5543 = vpow2.f32 %v1801_v3  ;;  %v1803_v5 = vsel %vm950_vm4, %v5542_v4, 0.0  ;;  %v2327_v3 = vld [vmem:[%s6689_s7] sm:$0xff] }
 0x7e2   : > { %1804 = vadd.xlane.f32.xlu0 %v1803_v5  ;;  %v1981_v15 = vpop.permute.xlu1 %1980 }
 0x7e6   : > { %v2059_v18 = vpop.permute.xlu1 %2058 }
 0x7ea   : > { %v2057_v20 = vpop.permute.xlu1 %2056 }
 0x7ee   : > { %v5544_v6 = vpop.eup %5543 }
 0x7ef   : > { %v1806_v7 = vsel %vm950_vm4, %v5544_v6, 0.0 }
 0x7f0   : > { %1807 = vadd.xlane.f32.xlu0 %v1806_v7 }
 0x806   : > { %1891 = vrot.lane.b32.xlu0 %v6146_v30, %s6722_s23  ;;  %s6766_s23 = smov 8  }
 0x80a   : > { %1978 = vrot.lane.b32.xlu0 %v6148_v31, %s6718_s30 }
 0x86b   : > { %v1805_v8 = vpop.xlane.xlu0 %1804 }
 0x86c   : > { %v1809_v9 = vmax.f32 %v1805_v8, 1e-30 }
 0x86e   : > { %5545 = vrcp.f32 %v1809_v9 }
 0x879   : > { %v1808_v10 = vpop.xlane.xlu0 %1807 }
 0x87a   : > { %v1810_v11 = vmax.f32 %v1808_v10, 1e-30  ;;  %v2485_v10 = vld [vmem:[%s6693_s11 + $0x18] sm:$0xff] }
 0x87b   : > { %v5546_v12 = vpop.eup %5545 }
 0x87c   : > { %5547 = vrcp.f32 %v1810_v11  ;;  %v1813_v13 = vmul.f32 %v5546_v12, %v5542_v4  ;;  %v2484_v11 = vld [vmem:[%s6693_s11 + $0x10] sm:$0xff]  ;;  %v2483_v12 = vld [vmem:[%s6693_s11 + $0x8] sm:$0xff] }
 0x87d   : > { %v1892_v14 = vpop.permute.xlu0 %1891 }
 0x87e   : > { %5190 = vmatmul.mubr.msk.f32.vlgmr.msra.gmra.mxu0 %vm950_vm4, %v1813_v13  ;;  %5193 = vmatpush3.msra.mxu1 %v1892_v14  ;;  %v2482_v13 = vld [vmem:[%s6693_s11] sm:$0xff]  ;;  %v2583_v14 = vld [vmem:[%s6695_s13 + $0x38] sm:$0xff] }
 0x87f   : > { %5198 = vmatpush3.xpose.msk.msra.mxu0 %vm950_vm4, %v1981_v15  ;;  %5199 = vmatprep.mubr.msk.f32.mxu0 %vm5851_vm3, %v5850_v29  ;;  %v2582_v15 = vld [vmem:[%s6695_s13 + $0x30] sm:$0xff] }
 0x880   : > { %5202 = vmatprep.subr.mxu1 %v5850_v29  ;;  %5207 = vmatprep.subr.mxu0 %v5850_v29 }
 0x881   : > { %v1979_v16 = vpop.permute.xlu0 %1978 }
 0x882   : > { %5200 = vmatmul.mubr.msk.f32.vlgmr.msra.gmra.mxu0 %vm950_vm4, %v1979_v16  ;;  %v2581_v16 = vld [vmem:[%s6695_s13 + $0x28] sm:$0xff] }
 0x883   : > { %5209 = vmatprep.mubr.msk.f32.mxu0 %vm5851_vm3, %v5850_v29 }
 0x889   : > { %v5548_v17 = vpop.eup %5547 }
 0x88a   : > { %v1814_v19 = vmul.f32 %v5548_v17, %v5544_v6  ;;  %v2580_v17 = vld [vmem:[%s6695_s13 + $0x20] sm:$0xff] }
 0x88c   : > { %5195 = vmatmul.mubr.msk.f32.vlgmr.msra.gmra.mxu1 %vm950_vm4, %v1814_v19 }
 0x88d   : > { %5203 = vmatpush3.xpose.msk.msra.mxu1 %vm950_vm4, %v2059_v18  ;;  %5204 = vmatprep.mubr.msk.f32.mxu1 %vm5851_vm3, %v5850_v29  ;;  %v4900_v18 = vld [vmem:[%s6690_s8] ss:$0 sm:$0xff] }
 0x88e   : > { %5212 = vmatprep.subr.mxu1 %v5850_v29 }
 0x890   : > { %5205 = vmatmul.mubr.msk.f32.vlgmr.msra.gmra.mxu1 %vm950_vm4, %v2057_v20 }
 0x891   : > { %5214 = vmatprep.mubr.msk.f32.mxu1 %vm5851_vm3, %v5850_v29 }
 0x93e   : > { %v1887_v21 = vpop.f32.mrf.mxu0 }
 0x940   : > { %v5191_v22 = vpop.f32.mrf.mxu0 }
 0x942   : > { %v2052_v23 = vpop.f32.mrf.mxu0 }
 0x943   : > { %v2134_v24 = vmul.f32 0.35355338, %v2052_v23 }
 0x944   : > { %v5201_v25 = vpop.f32.mrf.mxu0 }
 0x945   : > { %v2136_v26 = vsel %vm950_vm4, %v2134_v24, -inf }
 0x946   : > { %2137 = vmax.xlane.f32.xlu0 %v2136_v26 }
 0x94c   : > { %v1963_v32 = vpop.f32.mrf.mxu1 }
 0x94e   : > { %v5196_v33 = vpop.f32.mrf.mxu1 }
 0x950   : > { %v2130_v34 = vpop.f32.mrf.mxu1 }
 0x951   : > { %v2135_v35 = vmul.f32 0.35355338, %v2130_v34 }
 0x952   : > { %v5206_v36 = vpop.f32.mrf.mxu1 }
 0x953   : > { %v2139_v37 = vsel %vm950_vm4, %v2135_v35, -inf }
 0x954   : > { %2140 = vmax.xlane.f32.xlu1 %v2139_v37 }
 0x965   : > { %2162 = vrot.lane.b32.xlu1 %v6148_v31, %s6716_s26 }
 0x969   : > { %1622 = vrot.lane.b32.xlu1 %v6236_v47, %s6714_s22 }
 0x96d   : > { %1624 = vrot.lane.b32.xlu1 %v6239_v53, %s6714_s22  ;;  %s5867_s22 = smov [#allocation14]  }
 0x971   : > { %1971 = vrot.lane.b32.xlu1 %v1963_v32, %s6712_s29 }
 0x9cf   : > { %v2138_v38 = vpop.xlane.xlu0 %2137 }
 0x9d0   : > { %v2142_v39 = vmax.f32 %v2138_v38, -1e+30 }
 0x9d2   : > { %v2144_v40 = vsub.f32 %v2134_v24, %v2142_v39 }
 0x9d4   : > { %v2146_v41 = vmul.f32 1.442695, %v2144_v40 }
 0x9d6   : > { %5549 = vpow2.f32 %v2146_v41 }
 0x9dd   : > { %v2141_v42 = vpop.xlane.xlu1 %2140 }
 0x9de   : > { %v2143_v43 = vmax.f32 %v2141_v42, -1e+30 }
 0x9e0   : > { %v2145_v44 = vsub.f32 %v2135_v35, %v2143_v43 }
 0x9e1   : > { %v2163_v45 = vpop.permute.xlu1 %2162 }
 0x9e2   : > { %v2148_v31 = vmul.f32 1.442695, %v2145_v44  ;;  %5208 = vmatpush3.msra.mxu0 %v2163_v45 }
 0x9e3   : > { %v5550_v46 = vpop.eup %5549  ;;  %5217 = vmatprep.subr.mxu0 %v2330_v0 }
 0x9e4   : > { %5551 = vpow2.f32 %v2148_v31  ;;  %v2150_v47 = vsel %vm950_vm4, %v5550_v46, 0.0 }
 0x9e5   : > { %2151 = vadd.xlane.f32.xlu0 %v2150_v47  ;;  %v1623_v48 = vpop.permute.xlu1 %1622 }
 0x9e6   : > { %1629 = vst.msk [vmem:[#allocation2] sm:$0xff] %vm1628_vm5, %v1623_v48 }
 0x9e9   : > { %v1625_v49 = vpop.permute.xlu1 %1624 }
 0x9ea   : > { %1630 = vst.msk [vmem:[#allocation2 + $0x8] sm:$0xff] %vm1628_vm5, %v1625_v49 }
 0x9ed   : > { %v1972_v50 = vpop.permute.xlu1 %1971 }
 0x9ee   : > { %1977 = vst.msk [vmem:[#allocation2 + $0x8] sm:$0xff] %vm1975_vm6, %v1972_v50 }
 0x9f1   : > { %v5552_v51 = vpop.eup %5551 }
 0x9f2   : > { %v2153_v52 = vsel %vm950_vm4, %v5552_v51, 0.0 }
 0x9f3   : > { %2154 = vadd.xlane.f32.xlu0 %v2153_v52 }
 0xa09   : > { %2238 = vrot.lane.b32.xlu0 %v6146_v30, %s6716_s26 }
 0xa0d   : > { %1969 = vrot.lane.b32.xlu0 %v1887_v21, %s6712_s29  ;;  %s5865_s29 = smov 24  }
 0xa6e   : > { %v2152_v53 = vpop.xlane.xlu0 %2151 }
 0xa6f   : > { %v2156_v54 = vmax.f32 %v2152_v53, 1e-30 }
 0xa71   : > { %5553 = vrcp.f32 %v2156_v54 }
 0xa7c   : > { %v2155_v55 = vpop.xlane.xlu0 %2154 }
 0xa7d   : > { %v2157_v56 = vmax.f32 %v2155_v55, 1e-30 }
 0xa7e   : > { %v5554_v57 = vpop.eup %5553 }
 0xa7f   : > { %5555 = vrcp.f32 %v2157_v56  ;;  %v2160_v58 = vmul.f32 %v5554_v57, %v5550_v46 }
 0xa80   : > { %v2239_v59 = vpop.permute.xlu0 %2238 }
 0xa81   : > { %5210 = vmatmul.mubr.msk.f32.vlgmr.msra.gmra.mxu0 %vm950_vm4, %v2160_v58  ;;  %5213 = vmatpush3.msra.mxu1 %v2239_v59 }
 0xa82   : > { %5218 = vmatpush3.msra.mxu0 %v2330_v0  ;;  %5228 = vmatprep.subr.mxu1 %v2485_v10 }
 0xa83   : > { %5219 = vmatprep.subr.mxu0 %v2329_v1 }
 0xa84   : > { %v1970_v60 = vpop.permute.xlu0 %1969  ;;  %5220 = vmatpush3.msra.mxu0 %v2329_v1  ;;  %v4903_v1 = vld [vmem:[%s6691_s9] ss:$0 sm:$0xff] }
 0xa85   : > { %1976 = vst.msk [vmem:[#allocation2] sm:$0xff] %vm1975_vm6, %v1970_v60  ;;  %5221 = vmatprep.subr.mxu0 %v2328_v2 }
 0xa86   : > { %5222 = vmatpush3.msra.mxu0 %v2328_v2 }
 0xa87   : > { %5223 = vmatprep.subr.mxu0 %v2327_v3 }
 0xa88   : > { %5224 = vmatpush3.msra.mxu0 %v2327_v3 }
 0xa89   : > { %5239 = vmatprep.subr.mxu0 %v2583_v14 }
 0xa8c   : > { %v5556_v61 = vpop.eup %5555 }
 0xa8d   : > { %v2161_v62 = vmul.f32 %v5556_v61, %v5552_v51 }
 0xa8f   : > { %5215 = vmatmul.mubr.msk.f32.vlgmr.msra.gmra.mxu1 %vm950_vm4, %v2161_v62 }
 0xa90   : > { %5229 = vmatpush3.msra.mxu1 %v2485_v10  ;;  %v2579_v10 = vld [vmem:[%s6695_s13 + $0x18] sm:$0xff] }
 0xa91   : > { %5230 = vmatprep.subr.mxu1 %v2484_v11 }
 0xa92   : > { %5231 = vmatpush3.msra.mxu1 %v2484_v11  ;;  %v2578_v11 = vld [vmem:[%s6695_s13 + $0x10] sm:$0xff] }
 0xa93   : > { %5232 = vmatprep.subr.mxu1 %v2483_v12 }
 0xa94   : > { %5233 = vmatpush3.msra.mxu1 %v2483_v12  ;;  %v2577_v12 = vld [vmem:[%s6695_s13 + $0x8] sm:$0xff] }
 0xa95   : > { %5234 = vmatprep.subr.mxu1 %v2482_v13 }
 0xa96   : > { %5235 = vmatpush3.msra.mxu1 %v2482_v13  ;;  %v2576_v13 = vld [vmem:[%s6695_s13] sm:$0xff] }
 0xb41   : > { %v2234_v30 = vpop.f32.mrf.mxu0 }
 0xb42   : > { %2316 = vrot.lane.b32.xlu0 %v2234_v30, %s5865_s29 }
 0xb43   : > { %v5211_v63 = vpop.f32.mrf.mxu0 }
 0xb4f   : > { %v2310_v4 = vpop.f32.mrf.mxu1 }
 0xb50   : > { %2318 = vrot.lane.b32.xlu1 %v2310_v4, %s5865_s29 }
 0xb51   : > { %v5216_v5 = vpop.f32.mrf.mxu1 }
 0xbb4   : > { %v2317_v6 = vpop.permute.xlu0 %2316 }
 0xbb5   : > { %2323 = vst.msk [vmem:[#allocation2] sm:$0xff] %vm2322_vm7, %v2317_v6 }
 0xbbc   : > { %v2325_v7 = vld [vmem:[#allocation2] sm:$0xff] }
 0xbbd   : > { %5225 = vmatprep.mubr.msk.f32.mxu0 %vm865_vm2, %v2325_v7  ;;  %v4904_v7 = vld [vmem:[#allocation8] ss:$0 sm:$0xff] }
 0xbc2   : > { %v2319_v8 = vpop.permute.xlu1 %2318 }
 0xbc3   : > { %2324 = vst.msk [vmem:[#allocation2 + $0x8] sm:$0xff] %vm2322_vm7, %v2319_v8 }
 0xbca   : > { %v2326_v9 = vld [vmem:[#allocation2 + $0x8] sm:$0xff] }
 0xbcb   : > { %5226 = vmatmul.mubr.msk.f32.vlgmr.msra.gmra.mxu0 %vm865_vm2, %v2326_v9 }
 0xbcc   : > { %5240 = vmatpush3.msra.mxu0 %v2583_v14  ;;  %v4905_v14 = vld [vmem:[#allocation9] ss:$0 sm:$0xff] }
 0xbcd   : > { %5241 = vmatprep.subr.mxu0 %v2582_v15 }
 0xbce   : > { %5242 = vmatpush3.msra.mxu0 %v2582_v15 }
 0xbcf   : > { %5243 = vmatprep.subr.mxu0 %v2581_v16 }
 0xbd0   : > { %5244 = vmatpush3.msra.mxu0 %v2581_v16 }
 0xbd1   : > { %5245 = vmatprep.subr.mxu0 %v2580_v17 }
 0xbd2   : > { %5246 = vmatpush3.msra.mxu0 %v2580_v17 }
 0xbd3   : > { %5247 = vmatprep.subr.mxu0 %v2579_v10 }
 0xbd4   : > { %5248 = vmatpush3.msra.mxu0 %v2579_v10 }
 0xbd5   : > { %5249 = vmatprep.subr.mxu0 %v2578_v11 }
 0xbd6   : > { %5250 = vmatpush3.msra.mxu0 %v2578_v11 }
 0xbd7   : > { %5251 = vmatprep.subr.mxu0 %v2577_v12 }
 0xbd8   : > { %5252 = vmatpush3.msra.mxu0 %v2577_v12 }
 0xbd9   : > { %5253 = vmatprep.subr.mxu0 %v2576_v13 }
 0xbda   : > { %5254 = vmatpush3.msra.mxu0 %v2576_v13 }
 0xbdb   : > { %5279 = vmatprep.subr.mxu0 %v5850_v29 }
 0xc8b   : > { %v5227_v19 = vpop.f32.mrf.mxu0 }
 0xc8c   : > { %v2416_v20 = vadd.f32 %v5227_v19, %v4900_v18 }
 0xc8d   : > { %v2410_v21 = vpop.f32.mrf.mxu0 }
 0xc8e   : > { %v2420_v22 = vadd.f32 %v2416_v20, %v6134_v28  ;;  %v2411_v23 = vadd.f32 %v4900_v18, %v2410_v21  ;;  %v4916_v21 = vld [vmem:[%s6688_s6 + $0x38] sm:$0xff] }
 0xc8f   : > { %5258 = vmatprep.subr.mxu1 %v4916_v21 }
 0xc90   : > { %v2430_v24 = vsel %vm865_vm2, %v2420_v22, 0.0  ;;  %v2419_v25 = vadd.f32 %v2411_v23, %v6132_v27  ;;  %v4914_v23 = vld [vmem:[%s6688_s6 + $0x28] sm:$0xff] }
 0xc91   : > { %v2431_v26 = vrot.slane %v2430_v24, 4 }
 0xc92   : > { %v2423_v32 = vsel %vm865_vm2, %v2419_v25, 0.0 }
 0xc93   : > { %v2432_v33 = vadd.f32 %v2431_v26, %v2430_v24  ;;  %v2424_v34 = vrot.slane %v2423_v32, 4  ;;  %v4913_v24 = vld [vmem:[%s6688_s6 + $0x20] sm:$0xff] }
 0xc95   : > { %v2433_v35 = vrot.slane %v2432_v33, 2  ;;  %v2425_v36 = vadd.f32 %v2424_v34, %v2423_v32 }
 0xc97   : > { %v2434_v37 = vadd.f32 %v2433_v35, %v2432_v33  ;;  %v2426_v38 = vrot.slane %v2425_v36, 2 }
 0xc99   : > { %v2435_v39 = vrot.slane %v2434_v37, 1  ;;  %v2427_v40 = vadd.f32 %v2426_v38, %v2425_v36 }
 0xc9b   : > { %v2436_v41 = vadd.f32 %v2435_v39, %v2434_v37  ;;  %v2428_v42 = vrot.slane %v2427_v40, 1 }
 0xc9d   : > { %v2439_v43 = vmul.f32 0.125, %v2436_v41  ;;  %v2429_v28 = vadd.f32 %v2428_v42, %v2427_v40 }
 0xc9f   : > { %v2441_v44 = vsub.f32 %v2420_v22, %v2439_v43  ;;  %v2438_v45 = vmul.f32 0.125, %v2429_v28  ;;  %v4915_v22 = vld [vmem:[%s6688_s6 + $0x30] sm:$0xff] }
 0xca1   : > { %v2443_v31 = vmul.f32 %v2441_v44, %v2441_v44  ;;  %v2440_v46 = vsub.f32 %v2419_v25, %v2438_v45  ;;  %v4908_v25 = vld [vmem:[%s6696_s14] ss:$0 sm:$0xff] }
 0xca3   : > { %v2451_v27 = vsel %vm865_vm2, %v2443_v31, 0.0  ;;  %v2442_v47 = vmul.f32 %v2440_v46, %v2440_v46 }
 0xca4   : > { %v2452_v48 = vrot.slane %v2451_v27, 4 }
 0xca5   : > { %v2444_v49 = vsel %vm865_vm2, %v2442_v47, 0.0 }
 0xca6   : > { %v2453_v50 = vadd.f32 %v2452_v48, %v2451_v27  ;;  %v2445_v51 = vrot.slane %v2444_v49, 4 }
 0xca8   : > { %v2454_v52 = vrot.slane %v2453_v50, 2  ;;  %v2446_v53 = vadd.f32 %v2445_v51, %v2444_v49 }
 0xcaa   : > { %v2455_v54 = vadd.f32 %v2454_v52, %v2453_v50  ;;  %v2447_v55 = vrot.slane %v2446_v53, 2 }
 0xcac   : > { %v2456_v56 = vrot.slane %v2455_v54, 1  ;;  %v2448_v57 = vadd.f32 %v2447_v55, %v2446_v53 }
 0xcae   : > { %v2457_v58 = vadd.f32 %v2456_v56, %v2455_v54  ;;  %v2449_v59 = vrot.slane %v2448_v57, 1 }
 0xcb0   : > { %v2459_v60 = vmul.f32 0.125, %v2457_v58  ;;  %v2450_v61 = vadd.f32 %v2449_v59, %v2448_v57 }
 0xcb2   : > { %v2461_v62 = vadd.f32 1e-05, %v2459_v60  ;;  %v2458_v30 = vmul.f32 0.125, %v2450_v61 }
 0xcb4   : > { %5557 = vrsqrt.f32 %v2461_v62  ;;  %v2460_v63 = vadd.f32 1e-05, %v2458_v30 }
 0xcb6   : > { %5559 = vrsqrt.f32 %v2460_v63 }
 0xcc1   : > { %v5558_v0 = vpop.eup %5557 }
 0xcc2   : > { %v2465_v2 = vmul.f32 %v5558_v0, %v2441_v44 }
 0xcc3   : > { %v5560_v3 = vpop.eup %5559 }
 0xcc4   : > { %v2464_v4 = vmul.f32 %v5560_v3, %v2440_v46  ;;  %v2473_v5 = vmul.f32 %v4903_v1, %v2465_v2 }
 0xcc6   : > { %v2472_v6 = vmul.f32 %v4903_v1, %v2464_v4  ;;  %v2481_v9 = vadd.f32 %v4904_v7, %v2473_v5 }
 0xcc8   : > { %v2480_v8 = vadd.f32 %v4904_v7, %v2472_v6 }
 0xcca   : > { %5236 = vmatprep.mubr.msk.f32.mxu1 %vm865_vm2, %v2480_v8 }
 0xccb   : > { %5237 = vmatmul.mubr.msk.f32.vlgmr.msra.gmra.mxu1 %vm865_vm2, %v2481_v9 }
 0xccc   : > { %5259 = vmatpush3.msra.mxu1 %v4916_v21 }
 0xccd   : > { %5260 = vmatprep.subr.mxu1 %v4915_v22 }
 0xcce   : > { %5261 = vmatpush3.msra.mxu1 %v4915_v22 }
 0xccf   : > { %5262 = vmatprep.subr.mxu1 %v4914_v23 }
 0xcd0   : > { %5263 = vmatpush3.msra.mxu1 %v4914_v23 }
 0xcd1   : > { %5264 = vmatprep.subr.mxu1 %v4913_v24 }
 0xcd2   : > { %5265 = vmatpush3.msra.mxu1 %v4913_v24 }
 0xcd3   : > { %5269 = vmatprep.subr.mxu1 %v5850_v29 }
 0xd8b   : > { %v5238_v15 = vpop.f32.mrf.mxu1 }
 0xd8c   : > { %v2571_v16 = vadd.f32 %v5238_v15, %v4905_v14 }
 0xd8d   : > { %v2565_v17 = vpop.f32.mrf.mxu1 }
 0xd8e   : > { %v2566_v18 = vadd.f32 %v4905_v14, %v2565_v17  ;;  %v2575_v20 = vmax.f32 %v2571_v16, 0.0  ;;  %v4912_v14 = vld [vmem:[%s6698_s16] ss:$0 sm:$0xff] }
 0xd90   : > { %v2574_v19 = vmax.f32 %v2566_v18, 0.0 }
 0xd92   : > { %5255 = vmatprep.mubr.msk.f32.mxu0 %vm2591_vm8, %v2574_v19 }
 0xd93   : > { %5256 = vmatmul.mubr.msk.f32.vlgmr.msra.gmra.mxu0 %vm2591_vm8, %v2575_v20 }
 0xd94   : > { %5281 = vmatprep.mubr.msk.f32.mxu0 %vm5851_vm3, %v5850_v29 }
 0xe53   : > { %v5257_v26 = vpop.f32.mrf.mxu0 }
 0xe54   : > { %v2670_v32 = vadd.f32 %v5257_v26, %v4908_v25 }
 0xe55   : > { %v2664_v33 = vpop.f32.mrf.mxu0 }
 0xe56   : > { %v2674_v34 = vadd.f32 %v2670_v32, %v2481_v9  ;;  %v2665_v35 = vadd.f32 %v4908_v25, %v2664_v33 }
 0xe58   : > { %v2684_v36 = vsel %vm865_vm2, %v2674_v34, 0.0  ;;  %v2673_v37 = vadd.f32 %v2665_v35, %v2480_v8  ;;  %v4911_v8 = vld [vmem:[#allocation11] ss:$0 sm:$0xff] }
 0xe59   : > { %v2685_v38 = vrot.slane %v2684_v36, 4 }
 0xe5a   : > { %v2677_v39 = vsel %vm865_vm2, %v2673_v37, 0.0 }
 0xe5b   : > { %v2686_v40 = vadd.f32 %v2685_v38, %v2684_v36  ;;  %v2678_v41 = vrot.slane %v2677_v39, 4 }
 0xe5d   : > { %v2687_v42 = vrot.slane %v2686_v40, 2  ;;  %v2679_v43 = vadd.f32 %v2678_v41, %v2677_v39 }
 0xe5f   : > { %v2688_v28 = vadd.f32 %v2687_v42, %v2686_v40  ;;  %v2680_v44 = vrot.slane %v2679_v43, 2 }
 0xe61   : > { %v2689_v45 = vrot.slane %v2688_v28, 1  ;;  %v2681_v31 = vadd.f32 %v2680_v44, %v2679_v43 }
 0xe63   : > { %v2690_v46 = vadd.f32 %v2689_v45, %v2688_v28  ;;  %v2682_v27 = vrot.slane %v2681_v31, 1 }
 0xe65   : > { %v2692_v47 = vmul.f32 0.125, %v2690_v46  ;;  %v2683_v48 = vadd.f32 %v2682_v27, %v2681_v31 }
 0xe67   : > { %v2694_v49 = vsub.f32 %v2674_v34, %v2692_v47  ;;  %v2691_v50 = vmul.f32 0.125, %v2683_v48 }
 0xe69   : > { %v2696_v51 = vmul.f32 %v2694_v49, %v2694_v49  ;;  %v2693_v52 = vsub.f32 %v2673_v37, %v2691_v50 }
 0xe6b   : > { %v2704_v53 = vsel %vm865_vm2, %v2696_v51, 0.0  ;;  %v2695_v54 = vmul.f32 %v2693_v52, %v2693_v52 }
 0xe6c   : > { %v2705_v55 = vrot.slane %v2704_v53, 4 }
 0xe6d   : > { %v2697_v56 = vsel %vm865_vm2, %v2695_v54, 0.0 }
 0xe6e   : > { %v2706_v57 = vadd.f32 %v2705_v55, %v2704_v53  ;;  %v2698_v58 = vrot.slane %v2697_v56, 4 }
 0xe70   : > { %v2707_v59 = vrot.slane %v2706_v57, 2  ;;  %v2699_v60 = vadd.f32 %v2698_v58, %v2697_v56 }
 0xe72   : > { %v2708_v61 = vadd.f32 %v2707_v59, %v2706_v57  ;;  %v2700_v62 = vrot.slane %v2699_v60, 2 }
 0xe74   : > { %v2709_v30 = vrot.slane %v2708_v61, 1  ;;  %v2701_v63 = vadd.f32 %v2700_v62, %v2699_v60 }
 0xe76   : > { %v2710_v0 = vadd.f32 %v2709_v30, %v2708_v61  ;;  %v2702_v1 = vrot.slane %v2701_v63, 1 }
 0xe78   : > { %v2712_v2 = vmul.f32 0.125, %v2710_v0  ;;  %v2703_v3 = vadd.f32 %v2702_v1, %v2701_v63 }
 0xe7a   : > { %v2714_v4 = vadd.f32 1e-05, %v2712_v2  ;;  %v2711_v5 = vmul.f32 0.125, %v2703_v3 }
 0xe7c   : > { %5561 = vrsqrt.f32 %v2714_v4  ;;  %v2713_v6 = vadd.f32 1e-05, %v2711_v5 }
 0xe7e   : > { %5563 = vrsqrt.f32 %v2713_v6 }
 0xe89   : > { %v5562_v7 = vpop.eup %5561 }
 0xe8a   : > { %v2718_v9 = vmul.f32 %v5562_v7, %v2694_v49 }
 0xe8b   : > { %v5564_v10 = vpop.eup %5563 }
 0xe8c   : > { %v2717_v11 = vmul.f32 %v5564_v10, %v2693_v52  ;;  %v2726_v12 = vmul.f32 %v4911_v8, %v2718_v9 }
 0xe8e   : > { %v2725_v13 = vmul.f32 %v4911_v8, %v2717_v11  ;;  %v6392_v16 = vadd.f32 %v4912_v14, %v2726_v12 }
 0xe90   : > { %v6390_v15 = vadd.f32 %v4912_v14, %v2725_v13 }
 0xe92   : > { %5266 = vmatprep.mubr.msk.f32.mxu1 %vm865_vm2, %v6390_v15 }
 0xe93   : > { %5267 = vmatmul.mubr.msk.f32.vlgmr.msra.gmra.mxu1 %vm865_vm2, %v6392_v16 }
 0xe94   : > { %5271 = vmatprep.mubr.msk.f32.mxu1 %vm5851_vm3, %v5850_v29 }
 0xf53   : > { %v6400_v17 = vpop.f32.mrf.mxu1 }
 0xf54   : > { %2899 = vrot.lane.b32.xlu1 %v6400_v17, %s5852_s20 }
 0xf55   : > { %v6404_v18 = vpop.f32.mrf.mxu1 }
 0xf56   : > { %2822 = vrot.lane.b32.xlu0 %v6404_v18, %s5852_s20  ;;  %s6759_s20 = smov 56  }
 0xfc6   : > { %v2900_v20 = vpop.permute.xlu1 %2899 }
 0xfc8   : > { %v2823_v19 = vpop.permute.xlu0 %2822 }
 0xfc9   : > { %5270 = vmatpush3.xpose.msk.msra.mxu1 %vm950_vm4, %v2823_v19 }
 0xfca   : > { %5274 = vmatprep.subr.mxu1 %v5850_v29 }
 0xfcc   : > { %5272 = vmatmul.mubr.msk.f32.vlgmr.msra.gmra.mxu1 %vm950_vm4, %v6404_v18 }
 0xfcd   : > { %5275 = vmatpush3.xpose.msk.msra.mxu1 %vm950_vm4, %v2900_v20  ;;  %5276 = vmatprep.mubr.msk.f32.mxu1 %vm5851_vm3, %v5850_v29 }
 0xfce   : > { %5284 = vmatprep.subr.mxu1 %v5850_v29 }
 0xfd0   : > { %5277 = vmatmul.mubr.msk.f32.vlgmr.msra.gmra.mxu1 %vm950_vm4, %v6400_v17 }
 0xfd1   : > { %5286 = vmatprep.mubr.msk.f32.mxu1 %vm5851_vm3, %v5850_v29 }
0x108c   : > { %v2894_v21 = vpop.f32.mrf.mxu1 }
0x108d   : > { %v2975_v22 = vmul.f32 0.35355338, %v2894_v21 }
0x108e   : > { %v5273_v23 = vpop.f32.mrf.mxu1 }
0x108f   : > { %v2977_v24 = vsel %vm950_vm4, %v2975_v22, -inf }
0x1090   : > { %2978 = vmax.xlane.f32.xlu0 %v2977_v24  ;;  %v2971_v25 = vpop.f32.mrf.mxu1 }
0x1091   : > { %v2976_v26 = vmul.f32 0.35355338, %v2971_v25 }
0x1092   : > { %v5278_v32 = vpop.f32.mrf.mxu1 }
0x1093   : > { %v2980_v33 = vsel %vm950_vm4, %v2976_v26, -inf }
0x1094   : > { %2981 = vmax.xlane.f32.xlu1 %v2980_v33 }
0x10a5   : > { %3003 = vrot.lane.b32.xlu1 %v6404_v18, %s5853_s27 }
0x10a9   : > { %3159 = vrot.lane.b32.xlu1 %v6404_v18, %s5854_s25 }
0x10ad   : > { %3237 = vrot.lane.b32.xlu1 %v6400_v17, %s5854_s25  ;;  %s6761_s25 = smov 112  }
0x10b1   : > { %3235 = vrot.lane.b32.xlu1 %v6400_v17, %s5855_s21 }
0x1119   : > { %v2979_v34 = vpop.xlane.xlu0 %2978 }
0x111a   : > { %v2983_v35 = vmax.f32 %v2979_v34, -1e+30 }
0x111c   : > { %v2985_v36 = vsub.f32 %v2975_v22, %v2983_v35 }
0x111d   : > { %v2982_v37 = vpop.xlane.xlu1 %2981 }
0x111e   : > { %v2987_v38 = vmul.f32 1.442695, %v2985_v36  ;;  %v2984_v39 = vmax.f32 %v2982_v37, -1e+30 }
0x1120   : > { %5565 = vpow2.f32 %v2987_v38  ;;  %v2986_v40 = vsub.f32 %v2976_v26, %v2984_v39 }
0x1121   : > { %v3004_v41 = vpop.permute.xlu1 %3003 }
0x1122   : > { %v2989_v42 = vmul.f32 1.442695, %v2986_v40  ;;  %5280 = vmatpush3.msra.mxu0 %v3004_v41 }
0x1123   : > { %5289 = vmatprep.subr.mxu0 %v5850_v29 }
0x1124   : > { %5567 = vpow2.f32 %v2989_v42 }
0x1125   : > { %v3160_v49 = vpop.permute.xlu1 %3159 }
0x1129   : > { %v3238_v53 = vpop.permute.xlu1 %3237 }
0x112d   : > { %v5566_v43 = vpop.eup %5565  ;;  %v3236_v56 = vpop.permute.xlu1 %3235 }
0x112e   : > { %v2991_v28 = vsel %vm950_vm4, %v5566_v43, 0.0 }
0x112f   : > { %2992 = vadd.xlane.f32.xlu0 %v2991_v28 }
0x1131   : > { %v5568_v44 = vpop.eup %5567 }
0x1132   : > { %v2994_v45 = vsel %vm950_vm4, %v5568_v44, 0.0 }
0x1133   : > { %2995 = vadd.xlane.f32.xlu0 %v2994_v45 }
0x1149   : > { %3079 = vrot.lane.b32.xlu0 %v6400_v17, %s5853_s27  ;;  %s6760_s27 = smov 80  }
0x114d   : > { %3157 = vrot.lane.b32.xlu0 %v6404_v18, %s5855_s21  ;;  %s6762_s21 = smov 48  }
0x11b8   : > { %v2993_v31 = vpop.xlane.xlu0 %2992 }
0x11b9   : > { %v2997_v46 = vmax.f32 %v2993_v31, 1e-30 }
0x11bb   : > { %5569 = vrcp.f32 %v2997_v46 }
0x11bc   : > { %v2996_v27 = vpop.xlane.xlu0 %2995 }
0x11bd   : > { %v2998_v47 = vmax.f32 %v2996_v27, 1e-30 }
0x11bf   : > { %5571 = vrcp.f32 %v2998_v47 }
0x11c0   : > { %v3080_v48 = vpop.permute.xlu0 %3079 }
0x11c1   : > { %5285 = vmatpush3.msra.mxu1 %v3080_v48 }
0x11c2   : > { %5294 = vmatprep.subr.mxu1 %v5850_v29 }
0x11c4   : > { %v3158_v55 = vpop.permute.xlu0 %3157 }
0x11c8   : > { %v5570_v50 = vpop.eup %5569 }
0x11c9   : > { %v3001_v51 = vmul.f32 %v5570_v50, %v5566_v43 }
0x11cb   : > { %5282 = vmatmul.mubr.msk.f32.vlgmr.msra.gmra.mxu0 %vm950_vm4, %v3001_v51 }
0x11cc   : > { %v5572_v52 = vpop.eup %5571  ;;  %5290 = vmatpush3.xpose.msk.msra.mxu0 %vm950_vm4, %v3160_v49  ;;  %5291 = vmatprep.mubr.msk.f32.mxu0 %vm5851_vm3, %v5850_v29 }
0x11cd   : > { %v3002_v54 = vmul.f32 %v5572_v52, %v5568_v44  ;;  %5299 = vmatprep.subr.mxu0 %v5850_v29 }
0x11cf   : > { %5287 = vmatmul.mubr.msk.f32.vlgmr.msra.gmra.mxu1 %vm950_vm4, %v3002_v54  ;;  %5292 = vmatmul.mubr.msk.f32.vlgmr.msra.gmra.mxu0 %vm950_vm4, %v3158_v55 }
0x11d0   : > { %5295 = vmatpush3.xpose.msk.msra.mxu1 %vm950_vm4, %v3238_v53  ;;  %5296 = vmatprep.mubr.msk.f32.mxu1 %vm5851_vm3, %v5850_v29 }
0x11d1   : > { %5304 = vmatprep.subr.mxu1 %v5850_v29  ;;  %5301 = vmatprep.mubr.msk.f32.mxu0 %vm5851_vm3, %v5850_v29 }
0x11d3   : > { %5297 = vmatmul.mubr.msk.f32.vlgmr.msra.gmra.mxu1 %vm950_vm4, %v3236_v56 }
0x11d4   : > { %5306 = vmatprep.mubr.msk.f32.mxu1 %vm5851_vm3, %v5850_v29 }
0x128b   : > { %v3075_v57 = vpop.f32.mrf.mxu0 }
0x128c   : > { %3155 = vst.msk [vmem:[#allocation2] sm:$0xff] %vm950_vm4, %v3075_v57 }
0x128d   : > { %v5283_v58 = vpop.f32.mrf.mxu0 }
0x128f   : > { %v3151_v59 = vpop.f32.mrf.mxu1  ;;  %v3231_v60 = vpop.f32.mrf.mxu0 }
0x1290   : > { %3156 = vst.msk [vmem:[#allocation2 + $0x8] sm:$0xff] %vm950_vm4, %v3151_v59  ;;  %v3313_v61 = vmul.f32 0.35355338, %v3231_v60 }
0x1291   : > { %v5288_v62 = vpop.f32.mrf.mxu1  ;;  %v5293_v30 = vpop.f32.mrf.mxu0 }
0x1292   : > { %v3315_v63 = vsel %vm950_vm4, %v3313_v61, -inf }
0x1293   : > { %3316 = vmax.xlane.f32.xlu0 %v3315_v63  ;;  %v3309_v0 = vpop.f32.mrf.mxu1 }
0x1294   : > { %v3314_v1 = vmul.f32 0.35355338, %v3309_v0 }
0x1295   : > { %v5298_v2 = vpop.f32.mrf.mxu1 }
0x1296   : > { %v3318_v3 = vsel %vm950_vm4, %v3314_v1, -inf }
0x1297   : > { %3319 = vmax.xlane.f32.xlu1 %v3318_v3 }
0x12a8   : > { %3341 = vrot.lane.b32.xlu1 %v6404_v18, %s6759_s20 }
0x12ac   : > { %3505 = vrot.lane.b32.xlu1 %v6404_v18, %s6760_s27 }
0x12b0   : > { %3583 = vrot.lane.b32.xlu1 %v6400_v17, %s6760_s27  ;;  %s5866_s27 = smov 32  }
0x12b4   : > { %3581 = vrot.lane.b32.xlu1 %v6400_v17, %s6761_s25 }
0x131c   : > { %v3317_v4 = vpop.xlane.xlu0 %3316 }
0x131d   : > { %v3321_v5 = vmax.f32 %v3317_v4, -1e+30 }
0x131f   : > { %v3323_v6 = vsub.f32 %v3313_v61, %v3321_v5 }
0x1320   : > { %v3320_v7 = vpop.xlane.xlu1 %3319 }
0x1321   : > { %v3325_v8 = vmul.f32 1.442695, %v3323_v6  ;;  %v3322_v9 = vmax.f32 %v3320_v7, -1e+30 }
0x1323   : > { %5573 = vpow2.f32 %v3325_v8  ;;  %v3324_v10 = vsub.f32 %v3314_v1, %v3322_v9 }
0x1324   : > { %v3342_v11 = vpop.permute.xlu1 %3341 }
0x1325   : > { %v3327_v12 = vmul.f32 1.442695, %v3324_v10  ;;  %5300 = vmatpush3.msra.mxu0 %v3342_v11 }
0x1326   : > { %5309 = vmatprep.subr.mxu0 %v5850_v29 }
0x1327   : > { %5575 = vpow2.f32 %v3327_v12 }
0x1328   : > { %v3506_v26 = vpop.permute.xlu1 %3505 }
0x132c   : > { %v3584_v35 = vpop.permute.xlu1 %3583 }
0x1330   : > { %v5574_v13 = vpop.eup %5573  ;;  %v3582_v38 = vpop.permute.xlu1 %3581 }
0x1331   : > { %v3329_v14 = vsel %vm950_vm4, %v5574_v13, 0.0 }
0x1332   : > { %3330 = vadd.xlane.f32.xlu0 %v3329_v14 }
0x1334   : > { %v5576_v19 = vpop.eup %5575 }
0x1335   : > { %v3332_v20 = vsel %vm950_vm4, %v5576_v19, 0.0 }
0x1336   : > { %3333 = vadd.xlane.f32.xlu0 %v3332_v20 }
0x134c   : > { %3417 = vrot.lane.b32.xlu0 %v6400_v17, %s6759_s20  ;;  %s5765_s20 = sshll.u32 %s5867_s22, 4  ;;  %s5766_s20 = int_to_ptr.vmem [resolvable:$false] %s5765_s20 }
0x1350   : > { %3503 = vrot.lane.b32.xlu0 %v6404_v18, %s6761_s25  ;;  %s651_s25 = sand.u32 1, %s5829_s28  }
0x1351   : > { %s6641_s26 = scalar_lea.sflag [#allocation5], %s651_s25 }
0x13bb   : > { %v3331_v21 = vpop.xlane.xlu0 %3330 }
0x13bc   : > { %v3335_v22 = vmax.f32 %v3331_v21, 1e-30 }
0x13be   : > { %5577 = vrcp.f32 %v3335_v22 }
0x13bf   : > { %v3334_v23 = vpop.xlane.xlu0 %3333 }
0x13c0   : > { %v3336_v24 = vmax.f32 %v3334_v23, 1e-30 }
0x13c2   : > { %5579 = vrcp.f32 %v3336_v24 }
0x13c3   : > { %v3418_v25 = vpop.permute.xlu0 %3417 }
0x13c4   : > { %5305 = vmatpush3.msra.mxu1 %v3418_v25 }
0x13c5   : > { %5314 = vmatprep.subr.mxu1 %v5850_v29 }
0x13c7   : > { %v3504_v37 = vpop.permute.xlu0 %3503 }
0x13cb   : > { %v5578_v32 = vpop.eup %5577 }
0x13cc   : > { %v3339_v33 = vmul.f32 %v5578_v32, %v5574_v13 }
0x13ce   : > { %5302 = vmatmul.mubr.msk.f32.vlgmr.msra.gmra.mxu0 %vm950_vm4, %v3339_v33 }
0x13cf   : > { %v5580_v34 = vpop.eup %5579  ;;  %5310 = vmatpush3.xpose.msk.msra.mxu0 %vm950_vm4, %v3506_v26  ;;  %5311 = vmatprep.mubr.msk.f32.mxu0 %vm5851_vm3, %v5850_v29 }
0x13d0   : > { %v3340_v36 = vmul.f32 %v5580_v34, %v5576_v19  ;;  %5319 = vmatprep.subr.mxu0 %v5850_v29 }
0x13d2   : > { %5307 = vmatmul.mubr.msk.f32.vlgmr.msra.gmra.mxu1 %vm950_vm4, %v3340_v36  ;;  %5312 = vmatmul.mubr.msk.f32.vlgmr.msra.gmra.mxu0 %vm950_vm4, %v3504_v37 }
0x13d3   : > { %5315 = vmatpush3.xpose.msk.msra.mxu1 %vm950_vm4, %v3584_v35  ;;  %5316 = vmatprep.mubr.msk.f32.mxu1 %vm5851_vm3, %v5850_v29 }
0x13d4   : > { %5324 = vmatprep.subr.mxu1 %v5850_v29  ;;  %5321 = vmatprep.mubr.msk.f32.mxu0 %vm5851_vm3, %v5850_v29 }
0x13d6   : > { %5317 = vmatmul.mubr.msk.f32.vlgmr.msra.gmra.mxu1 %vm950_vm4, %v3582_v38 }
0x13d7   : > { %5326 = vmatprep.mubr.msk.f32.mxu1 %vm5851_vm3, %v5850_v29 }
0x148e   : > { %v6490_v39 = vpop.f32.mrf.mxu0 }
0x1490   : > { %v5303_v40 = vpop.f32.mrf.mxu0 }
0x1492   : > { %v6492_v41 = vpop.f32.mrf.mxu1  ;;  %v3577_v42 = vpop.f32.mrf.mxu0 }
0x1493   : > { %v3659_v43 = vmul.f32 0.35355338, %v3577_v42 }
0x1494   : > { %v5308_v28 = vpop.f32.mrf.mxu1  ;;  %v5313_v44 = vpop.f32.mrf.mxu0 }
0x1495   : > { %v3661_v45 = vsel %vm950_vm4, %v3659_v43, -inf }
0x1496   : > { %3662 = vmax.xlane.f32.xlu0 %v3661_v45  ;;  %v3655_v31 = vpop.f32.mrf.mxu1 }
0x1497   : > { %v3660_v46 = vmul.f32 0.35355338, %v3655_v31 }
0x1498   : > { %v5318_v27 = vpop.f32.mrf.mxu1 }
0x1499   : > { %v3664_v47 = vsel %vm950_vm4, %v3660_v46, -inf }
0x149a   : > { %3665 = vmax.xlane.f32.xlu1 %v3664_v47 }
0x14ab   : > { %3687 = vrot.lane.b32.xlu1 %v6404_v18, %s6762_s21 }
0x14af   : > { %3851 = vrot.lane.b32.xlu1 %v6404_v18, %s6763_s1 }
0x14b3   : > { %3929 = vrot.lane.b32.xlu1 %v6400_v17, %s6763_s1 }
0x14b7   : > { %3927 = vrot.lane.b32.xlu1 %v6400_v17, %s6764_s24 }
0x151f   : > { %v3663_v48 = vpop.xlane.xlu0 %3662 }
0x1520   : > { %v3667_v49 = vmax.f32 %v3663_v48, -1e+30 }
0x1522   : > { %v3669_v50 = vsub.f32 %v3659_v43, %v3667_v49 }
0x1523   : > { %v3666_v51 = vpop.xlane.xlu1 %3665 }
0x1524   : > { %v3671_v52 = vmul.f32 1.442695, %v3669_v50  ;;  %v3668_v53 = vmax.f32 %v3666_v51, -1e+30  ;;  %v4945_v51 = vld [vmem:[%s6689_s7 + $0x30] sm:$0xff] }
0x1526   : > { %5581 = vpow2.f32 %v3671_v52  ;;  %v3670_v54 = vsub.f32 %v3660_v46, %v3668_v53  ;;  %v4944_v52 = vld [vmem:[%s6689_s7 + $0x28] sm:$0xff]  ;;  %v4943_v53 = vld [vmem:[%s6689_s7 + $0x20] sm:$0xff] }
0x1527   : > { %v3688_v55 = vpop.permute.xlu1 %3687 }
0x1528   : > { %v3673_v56 = vmul.f32 1.442695, %v3670_v54  ;;  %5320 = vmatpush3.msra.mxu0 %v3688_v55 }
0x1529   : > { %5329 = vmatprep.subr.mxu0 %v5850_v29 }
0x152a   : > { %5583 = vpow2.f32 %v3673_v56 }
0x152b   : > { %v3852_v1 = vpop.permute.xlu1 %3851 }
0x152f   : > { %v3930_v5 = vpop.permute.xlu1 %3929 }
0x1533   : > { %v5582_v57 = vpop.eup %5581  ;;  %v3928_v8 = vpop.permute.xlu1 %3927 }
0x1534   : > { %v3675_v58 = vsel %vm950_vm4, %v5582_v57, 0.0 }
0x1535   : > { %3676 = vadd.xlane.f32.xlu0 %v3675_v58 }
0x1537   : > { %v5584_v59 = vpop.eup %5583 }
0x1538   : > { %v3678_v60 = vsel %vm950_vm4, %v5584_v59, 0.0 }
0x1539   : > { %3679 = vadd.xlane.f32.xlu0 %v3678_v60 }
0x154f   : > { %3763 = vrot.lane.b32.xlu0 %v6400_v17, %s6762_s21  ;;  %s4863_s21 = sshll.u32 %s651_s25, 4 }
0x1550   : > { %s653_s1 = scalar_lea.vmem [#allocation14], %s4863_s21 }
0x1553   : > { %3849 = vrot.lane.b32.xlu0 %v6404_v18, %s6764_s24  ;;  %s4725_s24 = sshll.u32 %s653_s1, 4  ;;  %s6632_s24 = int_to_ptr.vmem [resolvable:$true] %s4725_s24 }
0x1554   : > { %p5768_p7 = scmp.lt.s32.totalorder %s6632_s24, %s5766_s20 }
0x15be   : > { %v3677_v61 = vpop.xlane.xlu0 %3676 }
0x15bf   : > { %v3681_v62 = vmax.f32 %v3677_v61, 1e-30 }
0x15c1   : > { %5585 = vrcp.f32 %v3681_v62  ;;  %v4957_v62 = vld [vmem:[%s6693_s11 + $0x38] sm:$0xff] }
0x15c2   : > { %v3680_v30 = vpop.xlane.xlu0 %3679 }
0x15c3   : > { %v3682_v63 = vmax.f32 %v3680_v30, 1e-30  ;;  %v4956_v30 = vld [vmem:[%s6693_s11 + $0x30] sm:$0xff] }
0x15c5   : > { %5587 = vrcp.f32 %v3682_v63  ;;  %v4955_v63 = vld [vmem:[%s6693_s11 + $0x28] sm:$0xff] }
0x15c6   : > { %v3764_v0 = vpop.permute.xlu0 %3763 }
0x15c7   : > { %5325 = vmatpush3.msra.mxu1 %v3764_v0  ;;  %v4954_v0 = vld [vmem:[%s6693_s11 + $0x20] sm:$0xff] }
0x15c8   : > { %5334 = vmatprep.subr.mxu1 %v5850_v29 }
0x15ca   : > { %v3850_v7 = vpop.permute.xlu0 %3849 }
0x15ce   : > { %v5586_v2 = vpop.eup %5585 }
0x15cf   : > { %v3685_v3 = vmul.f32 %v5586_v2, %v5582_v57  ;;  %v4967_v2 = vld [vmem:[%s6695_s13 + $0x70] sm:$0xff] }
0x15d1   : > { %5322 = vmatmul.mubr.msk.f32.vlgmr.msra.gmra.mxu0 %vm950_vm4, %v3685_v3  ;;  %v4966_v3 = vld [vmem:[%s6695_s13 + $0x68] sm:$0xff] }
0x15d2   : > { %v5588_v4 = vpop.eup %5587  ;;  %5330 = vmatpush3.xpose.msk.msra.mxu0 %vm950_vm4, %v3852_v1  ;;  %5331 = vmatprep.mubr.msk.f32.mxu0 %vm5851_vm3, %v5850_v29  ;;  %v4968_v1 = vld [vmem:[%s6695_s13 + $0x78] sm:$0xff] }
0x15d3   : > { %v3686_v6 = vmul.f32 %v5588_v4, %v5584_v59  ;;  %5339 = vmatprep.subr.mxu0 %v5850_v29  ;;  %v4965_v4 = vld [vmem:[%s6695_s13 + $0x60] sm:$0xff] }
0x15d5   : > { %5327 = vmatmul.mubr.msk.f32.vlgmr.msra.gmra.mxu1 %vm950_vm4, %v3686_v6  ;;  %5332 = vmatmul.mubr.msk.f32.vlgmr.msra.gmra.mxu0 %vm950_vm4, %v3850_v7 }
0x15d6   : > { %5335 = vmatpush3.xpose.msk.msra.mxu1 %vm950_vm4, %v3930_v5  ;;  %5336 = vmatprep.mubr.msk.f32.mxu1 %vm5851_vm3, %v5850_v29  ;;  %v4948_v5 = vld [vmem:[%s6690_s8 + $0x1] ss:$0 sm:$0xff] }
0x15d7   : > { %5344 = vmatprep.subr.mxu1 %v5850_v29  ;;  %5341 = vmatprep.mubr.msk.f32.mxu0 %vm5851_vm3, %v5850_v29 }
0x15d9   : > { %5337 = vmatmul.mubr.msk.f32.vlgmr.msra.gmra.mxu1 %vm950_vm4, %v3928_v8 }
0x15da   : > { %5346 = vmatprep.mubr.msk.f32.mxu1 %vm5851_vm3, %v5850_v29 }
0x1691   : > { %v3759_v9 = vpop.f32.mrf.mxu0 }
0x1693   : > { %v5323_v10 = vpop.f32.mrf.mxu0 }
0x1695   : > { %v3835_v11 = vpop.f32.mrf.mxu1  ;;  %v3923_v12 = vpop.f32.mrf.mxu0 }
0x1696   : > { %v4005_v13 = vmul.f32 0.35355338, %v3923_v12 }
0x1697   : > { %v5328_v14 = vpop.f32.mrf.mxu1  ;;  %v5333_v19 = vpop.f32.mrf.mxu0 }
0x1698   : > { %v4007_v20 = vsel %vm950_vm4, %v4005_v13, -inf }
0x1699   : > { %4008 = vmax.xlane.f32.xlu0 %v4007_v20  ;;  %v4001_v21 = vpop.f32.mrf.mxu1 }
0x169a   : > { %v4006_v22 = vmul.f32 0.35355338, %v4001_v21 }
0x169b   : > { %v5338_v23 = vpop.f32.mrf.mxu1 }
0x169c   : > { %v4010_v24 = vsel %vm950_vm4, %v4006_v22, -inf }
0x169d   : > { %4011 = vmax.xlane.f32.xlu1 %v4010_v24 }
0x16ae   : > { %4033 = vrot.lane.b32.xlu1 %v6404_v18, %s6765_s19 }
0x16b2   : > { %3495 = vrot.lane.b32.xlu1 %v6490_v39, %s6766_s23 }
0x16b6   : > { %3497 = vrot.lane.b32.xlu1 %v6492_v41, %s6766_s23 }
0x16ba   : > { %3843 = vrot.lane.b32.xlu1 %v3835_v11, %s6767_s5 }
0x1722   : > { %v4009_v29 = vpop.xlane.xlu0 %4008 }
0x1723   : > { %v4013_v25 = vmax.f32 %v4009_v29, -1e+30 }
0x1725   : > { %v4015_v26 = vsub.f32 %v4005_v13, %v4013_v25 }
0x1726   : > { %v4012_v32 = vpop.xlane.xlu1 %4011 }
0x1727   : > { %v4017_v33 = vmul.f32 1.442695, %v4015_v26  ;;  %v4014_v34 = vmax.f32 %v4012_v32, -1e+30 }
0x1729   : > { %5589 = vpow2.f32 %v4017_v33  ;;  %v4016_v35 = vsub.f32 %v4006_v22, %v4014_v34 }
0x172a   : > { %v4034_v36 = vpop.permute.xlu1 %4033 }
0x172b   : > { %v4019_v37 = vmul.f32 1.442695, %v4016_v35  ;;  %5340 = vmatpush3.msra.mxu0 %v4034_v36 }
0x172d   : > { %5591 = vpow2.f32 %v4019_v37 }
0x172e   : > { %v3496_v18 = vpop.permute.xlu1 %3495 }
0x172f   : > { %3501 = vst.msk [vmem:[#allocation2] sm:$0xff] %vm1628_vm5, %v3496_v18 }
0x1732   : > { %v3498_v38 = vpop.permute.xlu1 %3497 }
0x1733   : > { %3502 = vst.msk [vmem:[#allocation2 + $0x8] sm:$0xff] %vm1628_vm5, %v3498_v38 }
0x1736   : > { %v5590_v39 = vpop.eup %5589  ;;  %v3844_v40 = vpop.permute.xlu1 %3843 }
0x1737   : > { %3848 = vst.msk [vmem:[#allocation2 + $0x8] sm:$0xff] %vm1975_vm6, %v3844_v40  ;;  %v4021_v41 = vsel %vm950_vm4, %v5590_v39, 0.0 }
0x1738   : > { %4022 = vadd.xlane.f32.xlu0 %v4021_v41 }
0x173a   : > { %v5592_v42 = vpop.eup %5591 }
0x173b   : > { %v4024_v43 = vsel %vm950_vm4, %v5592_v42, 0.0 }
0x173c   : > { %4025 = vadd.xlane.f32.xlu0 %v4024_v43 }
0x1752   : > { %4109 = vrot.lane.b32.xlu0 %v6400_v17, %s6765_s19  ;;  %v4946_v17 = vld [vmem:[%s6689_s7 + $0x38] sm:$0xff]  ;;  %s4983_s19 = sshll.u32 %s5985_s0, 8  ;;  %s5761_s0 = scalar_lea.vmem %s6632_s24, 256 }
0x1753   : > { %5349 = vmatprep.subr.mxu0 %v4946_v17  ;;  %s6638_s30 = scalar_lea.hbm %s6700_s18, %s4983_s19  ;;  %p5762_p2 = scmp.ne.s32.totalorder %s6632_s24, %s5761_s0 }
0x1755   : > { %p5763_p4 = pnand %p5762_p2, %p6002_p5 }
0x1756   : > { %3841 = vrot.lane.b32.xlu0 %v3759_v9, %s6767_s5 }
0x1757   : > { %p5764_p9 = pneg %p5763_p4 }
0x17c1   : > { %v4023_v28 = vpop.xlane.xlu0 %4022 }
0x17c2   : > { %v4027_v44 = vmax.f32 %v4023_v28, 1e-30 }
0x17c4   : > { %5593 = vrcp.f32 %v4027_v44 }
0x17c5   : > { %v4026_v45 = vpop.xlane.xlu0 %4025 }
0x17c6   : > { %v4028_v31 = vmax.f32 %v4026_v45, 1e-30 }
0x17c8   : > { %5595 = vrcp.f32 %v4028_v31 }
0x17c9   : > { %v4110_v46 = vpop.permute.xlu0 %4109 }
0x17ca   : > { %5345 = vmatpush3.msra.mxu1 %v4110_v46 }
0x17cb   : > { %5360 = vmatprep.subr.mxu1 %v4957_v62 }
0x17cd   : > { %v3842_v27 = vpop.permute.xlu0 %3841 }
0x17ce   : > { %3847 = vst.msk [vmem:[#allocation2] sm:$0xff] %vm1975_vm6, %v3842_v27 }
0x17d1   : > { %v5594_v47 = vpop.eup %5593 }
0x17d2   : > { %v4031_v48 = vmul.f32 %v5594_v47, %v5590_v39 }
0x17d4   : > { %5342 = vmatmul.mubr.msk.f32.vlgmr.msra.gmra.mxu0 %vm950_vm4, %v4031_v48 }
0x17d5   : > { %v5596_v49 = vpop.eup %5595  ;;  %5350 = vmatpush3.msra.mxu0 %v4946_v17 }
0x17d6   : > { %v4032_v50 = vmul.f32 %v5596_v49, %v5592_v42  ;;  %5351 = vmatprep.subr.mxu0 %v4945_v51 }
0x17d7   : > { %5352 = vmatpush3.msra.mxu0 %v4945_v51 }
0x17d8   : > { %5347 = vmatmul.mubr.msk.f32.vlgmr.msra.gmra.mxu1 %vm950_vm4, %v4032_v50  ;;  %5353 = vmatprep.subr.mxu0 %v4944_v52 }
0x17d9   : > { %5354 = vmatpush3.msra.mxu0 %v4944_v52  ;;  %5361 = vmatpush3.msra.mxu1 %v4957_v62  ;;  %v4952_v52 = vld [vmem:[%s6691_s9 + $0x1] ss:$0 sm:$0xff]  ;;  %v4963_v62 = vld [vmem:[%s6695_s13 + $0x50] sm:$0xff] }
0x17da   : > { %5355 = vmatprep.subr.mxu0 %v4943_v53  ;;  %5362 = vmatprep.subr.mxu1 %v4956_v30 }
0x17db   : > { %5356 = vmatpush3.msra.mxu0 %v4943_v53  ;;  %5363 = vmatpush3.msra.mxu1 %v4956_v30  ;;  %v4962_v30 = vld [vmem:[%s6695_s13 + $0x48] sm:$0xff] }
0x17dc   : > { %5364 = vmatprep.subr.mxu1 %v4955_v63  ;;  %5371 = vmatprep.subr.mxu0 %v4968_v1 }
0x17dd   : > { %5365 = vmatpush3.msra.mxu1 %v4955_v63  ;;  %v4961_v63 = vld [vmem:[%s6695_s13 + $0x40] sm:$0xff] }
0x17de   : > { %5366 = vmatprep.subr.mxu1 %v4954_v0 }
0x17df   : > { %5367 = vmatpush3.msra.mxu1 %v4954_v0  ;;  %v4958_v0 = vld [vmem:[#allocation9 + $0x1] ss:$0 sm:$0xff] }
0x1894   : > { %v4105_v54 = vpop.f32.mrf.mxu0 }
0x1895   : > { %4187 = vrot.lane.b32.xlu0 %v4105_v54, %s5865_s29 }
0x1896   : > { %v5343_v55 = vpop.f32.mrf.mxu0 }
0x1898   : > { %v4181_v56 = vpop.f32.mrf.mxu1 }
0x1899   : > { %4189 = vrot.lane.b32.xlu1 %v4181_v56, %s5865_s29 }
0x189a   : > { %v5348_v57 = vpop.f32.mrf.mxu1 }
0x1907   : > { %v4188_v58 = vpop.permute.xlu0 %4187 }
0x1908   : > { %4193 = vst.msk [vmem:[#allocation2] sm:$0xff] %vm2322_vm7, %v4188_v58  ;;  %v4953_v58 = vld [vmem:[#allocation8 + $0x1] ss:$0 sm:$0xff] }
0x190b   : > { %v4190_v59 = vpop.permute.xlu1 %4189 }
0x190c   : > { %4194 = vst.msk [vmem:[#allocation2 + $0x8] sm:$0xff] %vm2322_vm7, %v4190_v59 }
0x190f   : > { %v4195_v60 = vld [vmem:[#allocation2] sm:$0xff] }
0x1910   : > { %5357 = vmatprep.mubr.msk.f32.mxu0 %vm865_vm2, %v4195_v60 }
0x1913   : > { %v4196_v61 = vld [vmem:[#allocation2 + $0x8] sm:$0xff] }
0x1914   : > { %5358 = vmatmul.mubr.msk.f32.vlgmr.msra.gmra.mxu0 %vm865_vm2, %v4196_v61  ;;  %v4964_v61 = vld [vmem:[%s6695_s13 + $0x58] sm:$0xff] }
0x1915   : > { %5372 = vmatpush3.msra.mxu0 %v4968_v1 }
0x1916   : > { %5373 = vmatprep.subr.mxu0 %v4967_v2 }
0x1917   : > { %5374 = vmatpush3.msra.mxu0 %v4967_v2 }
0x1918   : > { %5375 = vmatprep.subr.mxu0 %v4966_v3 }
0x1919   : > { %5376 = vmatpush3.msra.mxu0 %v4966_v3 }
0x191a   : > { %5377 = vmatprep.subr.mxu0 %v4965_v4 }
0x191b   : > { %5378 = vmatpush3.msra.mxu0 %v4965_v4 }
0x191c   : > { %5379 = vmatprep.subr.mxu0 %v4964_v61 }
0x191d   : > { %5380 = vmatpush3.msra.mxu0 %v4964_v61 }
0x191e   : > { %5381 = vmatprep.subr.mxu0 %v4963_v62 }
0x191f   : > { %5382 = vmatpush3.msra.mxu0 %v4963_v62 }
0x1920   : > { %5383 = vmatprep.subr.mxu0 %v4962_v30 }
0x1921   : > { %5384 = vmatpush3.msra.mxu0 %v4962_v30 }
0x1922   : > { %5385 = vmatprep.subr.mxu0 %v4961_v63 }
0x1923   : > { %5386 = vmatpush3.msra.mxu0 %v4961_v63  ;;  %v4975_v63 = vld [vmem:[%s6698_s16 + $0x1] ss:$0 sm:$0xff] }
0x19d4   : > { %v5359_v6 = vpop.f32.mrf.mxu0 }
0x19d5   : > { %v4288_v7 = vadd.f32 %v5359_v6, %v4948_v5 }
0x19d6   : > { %v4282_v8 = vpop.f32.mrf.mxu0 }
0x19d7   : > { %v4292_v9 = vadd.f32 %v4288_v7, %v6392_v16  ;;  %v4283_v10 = vadd.f32 %v4948_v5, %v4282_v8  ;;  %v4616_v7 = vld [vmem:[#allocation12 + $0x18] sm:$0xff]  ;;  %v4615_v8 = vld [vmem:[#allocation12 + $0x10] sm:$0xff] }
0x19d8   : > { %5390 = vmatprep.subr.mxu1 %v4616_v7 }
0x19d9   : > { %v4304_v11 = vsel %vm865_vm2, %v4292_v9, 0.0  ;;  %v4291_v12 = vadd.f32 %v4283_v10, %v6390_v15  ;;  %v4613_v10 = vld [vmem:[#allocation12] sm:$0xff] }
0x19da   : > { %v4305_v13 = vrot.slane %v4304_v11, 4 }
0x19db   : > { %v4297_v14 = vsel %vm865_vm2, %v4291_v12, 0.0 }
0x19dc   : > { %v4306_v19 = vadd.f32 %v4305_v13, %v4304_v11  ;;  %v4298_v20 = vrot.slane %v4297_v14, 4  ;;  %v4970_v11 = vld [vmem:[%s6696_s14 + $0x1] ss:$0 sm:$0xff] }
0x19de   : > { %v4307_v21 = vrot.slane %v4306_v19, 2  ;;  %v4299_v22 = vadd.f32 %v4298_v20, %v4297_v14 }
0x19e0   : > { %v4308_v23 = vadd.f32 %v4307_v21, %v4306_v19  ;;  %v4300_v24 = vrot.slane %v4299_v22, 2 }
0x19e2   : > { %v4309_v29 = vrot.slane %v4308_v23, 1  ;;  %v4301_v25 = vadd.f32 %v4300_v24, %v4299_v22 }
0x19e4   : > { %v4310_v26 = vadd.f32 %v4309_v29, %v4308_v23  ;;  %v4302_v32 = vrot.slane %v4301_v25, 1 }
0x19e6   : > { %v4312_v33 = vmul.f32 0.125, %v4310_v26  ;;  %v4303_v16 = vadd.f32 %v4302_v32, %v4301_v25 }
0x19e8   : > { %v4314_v34 = vsub.f32 %v4292_v9, %v4312_v33  ;;  %v4311_v35 = vmul.f32 0.125, %v4303_v16  ;;  %v4614_v9 = vld [vmem:[#allocation12 + $0x8] sm:$0xff] }
0x19ea   : > { %v4316_v36 = vmul.f32 %v4314_v34, %v4314_v34  ;;  %v4313_v37 = vsub.f32 %v4291_v12, %v4311_v35 }
0x19ec   : > { %v4324_v15 = vsel %vm865_vm2, %v4316_v36, 0.0  ;;  %v4315_v18 = vmul.f32 %v4313_v37, %v4313_v37 }
0x19ed   : > { %v4325_v38 = vrot.slane %v4324_v15, 4 }
0x19ee   : > { %v4317_v39 = vsel %vm865_vm2, %v4315_v18, 0.0 }
0x19ef   : > { %v4326_v40 = vadd.f32 %v4325_v38, %v4324_v15  ;;  %v4318_v41 = vrot.slane %v4317_v39, 4 }
0x19f1   : > { %v4327_v42 = vrot.slane %v4326_v40, 2  ;;  %v4319_v43 = vadd.f32 %v4318_v41, %v4317_v39 }
0x19f3   : > { %v4328_v28 = vadd.f32 %v4327_v42, %v4326_v40  ;;  %v4320_v44 = vrot.slane %v4319_v43, 2 }
0x19f5   : > { %v4329_v45 = vrot.slane %v4328_v28, 1  ;;  %v4321_v31 = vadd.f32 %v4320_v44, %v4319_v43 }
0x19f7   : > { %v4330_v46 = vadd.f32 %v4329_v45, %v4328_v28  ;;  %v4322_v27 = vrot.slane %v4321_v31, 1 }
0x19f9   : > { %v4332_v47 = vmul.f32 0.125, %v4330_v46  ;;  %v4323_v48 = vadd.f32 %v4322_v27, %v4321_v31 }
0x19fb   : > { %v4334_v49 = vadd.f32 1e-05, %v4332_v47  ;;  %v4331_v50 = vmul.f32 0.125, %v4323_v48 }
0x19fd   : > { %5597 = vrsqrt.f32 %v4334_v49  ;;  %v4333_v17 = vadd.f32 1e-05, %v4331_v50 }
0x19ff   : > { %5599 = vrsqrt.f32 %v4333_v17 }
0x1a0a   : > { %v5598_v51 = vpop.eup %5597 }
0x1a0b   : > { %v4338_v53 = vmul.f32 %v5598_v51, %v4314_v34 }
0x1a0c   : > { %v5600_v54 = vpop.eup %5599 }
0x1a0d   : > { %v4337_v55 = vmul.f32 %v5600_v54, %v4313_v37  ;;  %v4346_v56 = vmul.f32 %v4952_v52, %v4338_v53 }
0x1a0f   : > { %v4345_v57 = vmul.f32 %v4952_v52, %v4337_v55  ;;  %v4354_v60 = vadd.f32 %v4953_v58, %v4346_v56 }
0x1a11   : > { %v4353_v59 = vadd.f32 %v4953_v58, %v4345_v57  ;;  %v4974_v58 = vld [vmem:[#allocation11 + $0x1] ss:$0 sm:$0xff] }
0x1a13   : > { %5368 = vmatprep.mubr.msk.f32.mxu1 %vm865_vm2, %v4353_v59 }
0x1a14   : > { %5369 = vmatmul.mubr.msk.f32.vlgmr.msra.gmra.mxu1 %vm865_vm2, %v4354_v60 }
0x1a15   : > { %5391 = vmatpush3.msra.mxu1 %v4616_v7 }
0x1a16   : > { %5392 = vmatprep.subr.mxu1 %v4615_v8 }
0x1a17   : > { %5393 = vmatpush3.msra.mxu1 %v4615_v8 }
0x1a18   : > { %5394 = vmatprep.subr.mxu1 %v4614_v9 }
0x1a19   : > { %5395 = vmatpush3.msra.mxu1 %v4614_v9 }
0x1a1a   : > { %5396 = vmatprep.subr.mxu1 %v4613_v10 }
0x1a1b   : > { %5397 = vmatpush3.msra.mxu1 %v4613_v10 }
0x1ad4   : > { %v5370_v1 = vpop.f32.mrf.mxu1 }
0x1ad5   : > { %v4446_v2 = vadd.f32 %v5370_v1, %v4958_v0 }
0x1ad6   : > { %v4440_v3 = vpop.f32.mrf.mxu1 }
0x1ad7   : > { %v4441_v4 = vadd.f32 %v4958_v0, %v4440_v3  ;;  %v4450_v6 = vmax.f32 %v4446_v2, 0.0 }
0x1ad9   : > { %v4449_v5 = vmax.f32 %v4441_v4, 0.0 }
0x1adb   : > { %5387 = vmatprep.mubr.msk.f32.mxu0 %vm2591_vm8, %v4449_v5 }
0x1adc   : > { %5388 = vmatmul.mubr.msk.f32.vlgmr.msra.gmra.mxu0 %vm2591_vm8, %v4450_v6 }
0x1b9c   : > { %v5389_v12 = vpop.f32.mrf.mxu0 }
0x1b9d   : > { %v4546_v13 = vadd.f32 %v5389_v12, %v4970_v11 }
0x1b9e   : > { %v4540_v14 = vpop.f32.mrf.mxu0 }
0x1b9f   : > { %v4550_v19 = vadd.f32 %v4546_v13, %v4354_v60  ;;  %v4541_v20 = vadd.f32 %v4970_v11, %v4540_v14 }
0x1ba1   : > { %v4562_v21 = vsel %vm865_vm2, %v4550_v19, 0.0  ;;  %v4549_v22 = vadd.f32 %v4541_v20, %v4353_v59 }
0x1ba2   : > { %v4563_v23 = vrot.slane %v4562_v21, 4 }
0x1ba3   : > { %v4555_v24 = vsel %vm865_vm2, %v4549_v22, 0.0 }
0x1ba4   : > { %v4564_v29 = vadd.f32 %v4563_v23, %v4562_v21  ;;  %v4556_v25 = vrot.slane %v4555_v24, 4 }
0x1ba6   : > { %v4565_v26 = vrot.slane %v4564_v29, 2  ;;  %v4557_v32 = vadd.f32 %v4556_v25, %v4555_v24 }
0x1ba8   : > { %v4566_v33 = vadd.f32 %v4565_v26, %v4564_v29  ;;  %v4558_v16 = vrot.slane %v4557_v32, 2 }
0x1baa   : > { %v4567_v34 = vrot.slane %v4566_v33, 1  ;;  %v4559_v35 = vadd.f32 %v4558_v16, %v4557_v32 }
0x1bac   : > { %v4568_v36 = vadd.f32 %v4567_v34, %v4566_v33  ;;  %v4560_v37 = vrot.slane %v4559_v35, 1 }
0x1bae   : > { %v4570_v15 = vmul.f32 0.125, %v4568_v36  ;;  %v4561_v18 = vadd.f32 %v4560_v37, %v4559_v35 }
0x1bb0   : > { %v4572_v38 = vsub.f32 %v4550_v19, %v4570_v15  ;;  %v4569_v39 = vmul.f32 0.125, %v4561_v18 }
0x1bb2   : > { %v4574_v40 = vmul.f32 %v4572_v38, %v4572_v38  ;;  %v4571_v41 = vsub.f32 %v4549_v22, %v4569_v39 }
0x1bb4   : > { %v4582_v42 = vsel %vm865_vm2, %v4574_v40, 0.0  ;;  %v4573_v43 = vmul.f32 %v4571_v41, %v4571_v41 }
0x1bb5   : > { %v4583_v28 = vrot.slane %v4582_v42, 4 }
0x1bb6   : > { %v4575_v44 = vsel %vm865_vm2, %v4573_v43, 0.0 }
0x1bb7   : > { %v4584_v45 = vadd.f32 %v4583_v28, %v4582_v42  ;;  %v4576_v31 = vrot.slane %v4575_v44, 4 }
0x1bb9   : > { %v4585_v46 = vrot.slane %v4584_v45, 2  ;;  %v4577_v27 = vadd.f32 %v4576_v31, %v4575_v44 }
0x1bbb   : > { %v4586_v47 = vadd.f32 %v4585_v46, %v4584_v45  ;;  %v4578_v48 = vrot.slane %v4577_v27, 2 }
0x1bbd   : > { %v4587_v49 = vrot.slane %v4586_v47, 1  ;;  %v4579_v50 = vadd.f32 %v4578_v48, %v4577_v27 }
0x1bbf   : > { %v4588_v17 = vadd.f32 %v4587_v49, %v4586_v47  ;;  %v4580_v51 = vrot.slane %v4579_v50, 1 }
0x1bc1   : > { %v4590_v52 = vmul.f32 0.125, %v4588_v17  ;;  %v4581_v53 = vadd.f32 %v4580_v51, %v4579_v50 }
0x1bc3   : > { %v4592_v54 = vadd.f32 1e-05, %v4590_v52  ;;  %v4589_v55 = vmul.f32 0.125, %v4581_v53 }
0x1bc5   : > { %5601 = vrsqrt.f32 %v4592_v54  ;;  %v4591_v56 = vadd.f32 1e-05, %v4589_v55 }
0x1bc7   : > { %5603 = vrsqrt.f32 %v4591_v56 }
0x1bd2   : > { %v5602_v57 = vpop.eup %5601 }
0x1bd3   : > { %v4596_v59 = vmul.f32 %v5602_v57, %v4572_v38 }
0x1bd4   : > { %v5604_v60 = vpop.eup %5603 }
0x1bd5   : > { %v4595_v61 = vmul.f32 %v5604_v60, %v4571_v41  ;;  %v4604_v62 = vmul.f32 %v4974_v58, %v4596_v59 }
0x1bd7   : > { %v4603_v30 = vmul.f32 %v4974_v58, %v4595_v61  ;;  %v4612_v1 = vadd.f32 %v4975_v63, %v4604_v62 }
0x1bd9   : > { %v4611_v0 = vadd.f32 %v4975_v63, %v4603_v30 }
0x1bdb   : > { %5398 = vmatprep.mubr.msk.f32.mxu1 %vm865_vm2, %v4611_v0 }
0x1bdc   : > { %5399 = vmatmul.mubr.msk.f32.vlgmr.msra.gmra.mxu1 %vm865_vm2, %v4612_v1 }
0x1c9c   : > { %v5400_v2 = vpop.f32.mrf.mxu1 }
0x1c9d   : > { %4702 = vrot.lane.b32.xlu1 %v5400_v2, %s5866_s27 }
0x1c9e   : > { %v4689_v3 = vpop.f32.mrf.mxu1 }
0x1c9f   : > { %4700 = vrot.lane.b32.xlu0 %v4689_v3, %s5866_s27  ;;  %s5767_s27 = scalar_lea.vmem %s5766_s20, 512 }
0x1ca0   : > { %p5769_p13 = scmp.lt.s32.totalorder %s5767_s27, %s5761_s0 }
0x1ca2   : > { %p5770_p8 = por %p5769_p13, %p5768_p7 }
0x1ca4   : > { %p5771_p11 = pnand %p5770_p8, %p5764_p9 }
0x1d0f   : > { %v4703_v4 = vpop.permute.xlu1 %4702 }
0x1d10   : > { %v4707_v5 = vsel %vm865_vm2, %v4612_v1, %v4703_v4 }
0x1d11   : > { %4710 = vst.msk [vmem:[%s653_s1 + $0x8] sm:$0xff] %vm4708_vm9, %v4707_v5  ;;  %v4701_v6 = vpop.permute.xlu0 %4700 }
0x1d12   : > { %v4706_v7 = vsel %vm865_vm2, %v4611_v0, %v4701_v6 }
0x1d13   : > { %4709 = vst.msk [vmem:[%s653_s1] sm:$0xff] %vm4708_vm9, %v4706_v7 }
0x1d14   : > { %5774 = shalt.err (!%p5771_p11)
}
0x1d15   : > { %s5775_s25 = scalar_lea.hbm %s6638_s30, 256  ;;  %s5779_s19 = scalar_lea.hbm %s6700_s18, 512 }
0x1d16   : > { %p5776_p0 = scmp.ne.s32.totalorder %s6638_s30, %s5775_s25  ;;  %p5780_p1 = scmp.lt.s32.totalorder %s6638_s30, %s6700_s18 }
0x1d17   : > { %p5781_p3 = scmp.lt.s32.totalorder %s5779_s19, %s5775_s25 }
0x1d18   : > { %p5777_p12 = pnand %p5776_p0, %p6002_p5 }
0x1d19   : > { %p5782_p2 = por %p5781_p3, %p5780_p1 }
0x1d1a   : > { %p5778_p10 = pneg %p5777_p12 }
0x1d1c   : > { %p5783_p4 = pnand %p5782_p2, %p5778_p10 }
0x1d1e   : > { %5786 = shalt.err (!%p5783_p4)
}
0x1d1f   : > { %s5868_s0 = smov 128  }
0x1d20   : > { %5425 = dma.vmem_to_hbm [thread:$0]  (%p6002_p5), %s6632_s24, 256, %s6638_s30, %s6641_s26, %s5868_s0, %s5868_s0, %s6766_s23  }
0x1d21 PF: > { %s6768_s22 = sld [smem:[#allocation22_spill]] }
0x1d22   : > { %s6769_s20 = sld [smem:[#allocation20_spill]] }
0x1d27   : > { %p5462_p9 = scmp.ge.s32.totalorder %s6768_s22, 2 }
0x1d28   : > { %s4740_s21 = sand.u32 1, %s6769_s20  }
0x1d29   : > { %p5447_p7 = pnand %p5462_p9, %p6006_p6  ;;  %s4741_s25 = scalar_lea.sflag [#allocation5], %s4740_s21 }
0x1d2b   : > { %p5448_p13 = pneg %p5447_p7 }
0x1d2d   : > { %5820 = dma.done.wait (%p5448_p13), %s4741_s25, 256  }
0x1d2e   : > { %5822 = vsyncadd (%p5448_p13), %s4741_s25, 4294967040  ;;  %s6771_s30 = sld [smem:[#allocation23_spill]]  ;;  %s6774_s27 = smov %s5829_s28 }
0x1d2f   : > { %s6772_s2 = sld [smem:[#allocation21_spill]] }
0x1d30   : > { %s6773_s29 = sld [smem:[#allocation24_spill]] }
0x1d34   : > { %p32_p8 = scmp.ge.s32.totalorder %s6771_s30, 4  }
0x1d35   : > { %s6775_s28 = smov %s6772_s2 }
0x1d36   :  { %34 = sbr.rel (!%p32_p8) target bundleno = 12 (0xc), region = 163 }
0x1d3b   :  { %4746 = vsyncpa [#allocation4], 1 }
0x1d3c   :  { %4748 = vsyncpa [#allocation4 + $0x1], 1 }
0x1d3d   :  { %4749 = vsyncpa [#allocation7], 1 }
0x1d3e   :  { %4750 = vsyncpa [#allocation10], 1 }
0x1d3f   :  { %4751 = vsyncpa [#allocation13], 1 }
0x1d40   :  { %4752 = vsyncpa [#allocation5], 1 }
0x1d41   :  { %4754 = vsyncpa [#allocation5 + $0x1], 1 }

</bundles_post_ra>
